<compile_context>
chip_gen: v7x
topology: tpu7x:2x2x1
jax: 0.10.0
libtpu: 0.0.40
codegen_flags: <defaults>
</compile_context>

<pallas_src>
import functools

import numpy as np
import jax
import jax.numpy as jnp
from jax.experimental import pallas as pl
from jax.experimental.pallas import tpu as pltpu

PAD_N = 128                     # lane-dense width for the (tiny) action head
VMEM_LIMIT = 32 * 1024 * 1024   # safe on v5e/v6e (128 MiB) and v7x (64 MiB)


def _cdiv(a, b):
    return (a + b - 1) // b


def _round_up(x, m):
    return _cdiv(x, m) * m


def _conv_out(n, k, s):
    return (n - k) // s + 1


def _pick_tile_m(m, cap, align=16):
    """M-tile: multiple of `align` (bf16 sublane packing), <= cap, and >=2 grid
    steps whenever there is enough work so both v7x TensorCores get a share of
    the 'parallel' axis."""
    m_al = _round_up(m, align)
    if m_al >= 2 * align:
        return min(cap, _round_up(_cdiv(m_al, 2), align))
    return min(cap, m_al)


# ----------------------------------------------------------------------------
# Pallas kernel: tiled (x @ w + b) + ReLU, bf16 writeback   (conv1 path)
# ----------------------------------------------------------------------------
def _matmul_bias_relu_kernel(x_ref, w_ref, b_ref, o_ref):
    y = jnp.dot(x_ref[...], w_ref[...], preferred_element_type=jnp.float32)
    o_ref[...] = jnp.maximum(y + b_ref[...], 0.0).astype(o_ref.dtype)


def pallas_matmul_bias_relu(x_bf16, w_bf16, b_row, *, tile_m=1024):
    """relu(x @ w + b); x:(M,K) bf16, w:(K,N) bf16, b_row:(1,N) f32 -> (M,N) bf16."""
    M, K = x_bf16.shape
    N = w_bf16.shape[1]
    t = _pick_tile_m(M, tile_m)
    m_pad = _round_up(M, t)
    x_p = jnp.pad(x_bf16, ((0, m_pad - M), (0, 0))) if m_pad != M else x_bf16
    out = pl.pallas_call(
        _matmul_bias_relu_kernel,
        grid=(m_pad // t,),
        out_shape=jax.ShapeDtypeStruct((m_pad, N), jnp.bfloat16),
        in_specs=[
            pl.BlockSpec((t, K), lambda i: (i, 0)),
            pl.BlockSpec((K, N), lambda i: (0, 0)),   # weight stays resident
            pl.BlockSpec((1, N), lambda i: (0, 0)),
        ],
        out_specs=pl.BlockSpec((t, N), lambda i: (i, 0)),
        compiler_params=pltpu.CompilerParams(
            dimension_semantics=("parallel",),
            vmem_limit_bytes=VMEM_LIMIT,
        ),
    )(x_p, w_bf16, b_row)
    return out[:M] if m_pad != M else out


# ----------------------------------------------------------------------------
# Pallas kernel: fully fused conv-tail + MLP head
#   conv2(dense) + ReLU -> conv3(GEMM) + ReLU -> feature Linear + ReLU
#   -> fc1 + ReLU -> fc2 + ReLU -> out Linear -> masked Softmax
# All weights resident in VMEM; grid tiles the batch (M) axis only.
# ----------------------------------------------------------------------------
def _fused_head_kernel(x_ref, cw2_ref, cb2_ref, cw3_ref, cb3_ref,
                       lw_ref, lb_ref, f1w_ref, f1b_ref, f2w_ref, f2b_ref,
                       ow_ref, ob_ref, o_ref, *, action_dim):
    # conv2 folded to a dense GEMM over the flattened conv1 feature map
    h = jnp.dot(x_ref[...], cw2_ref[...], preferred_element_type=jnp.float32)
    h = jnp.maximum(h + cb2_ref[...], 0.0)

    # conv3 (1x1 spatial output) == plain GEMM
    g = jnp.dot(h.astype(cw3_ref.dtype), cw3_ref[...],
                preferred_element_type=jnp.float32)
    g = jnp.maximum(g + cb3_ref[...], 0.0)

    # NatureCNN feature linear
    f = jnp.dot(g.astype(lw_ref.dtype), lw_ref[...],
                preferred_element_type=jnp.float32)
    f = jnp.maximum(f + lb_ref[...], 0.0)

    # DenseMlp
    h1 = jnp.dot(f.astype(f1w_ref.dtype), f1w_ref[...],
                 preferred_element_type=jnp.float32)
    h1 = jnp.maximum(h1 + f1b_ref[...], 0.0)
    h2 = jnp.dot(h1.astype(f2w_ref.dtype), f2w_ref[...],
                 preferred_element_type=jnp.float32)
    h2 = jnp.maximum(h2 + f2b_ref[...], 0.0)

    logits = jnp.dot(h2.astype(ow_ref.dtype), ow_ref[...],
                     preferred_element_type=jnp.float32) + ob_ref[...]

    # mask zero-padded lanes (>= action_dim); logits stay f32 so -1e30 is safe
    lane = jax.lax.broadcasted_iota(jnp.int32, logits.shape, 1)
    logits = jnp.where(lane < action_dim, logits, -1e30)

    m = jnp.max(logits, axis=-1, keepdims=True)
    e = jnp.exp(logits - m)
    s = jnp.sum(e, axis=-1, keepdims=True)
    o_ref[...] = (e / s).astype(o_ref.dtype)      # exact normalization


def pallas_fused_head(x_bf16, kp, *, action_dim, tile_m=256):
    """x:(B, n_conv1_flat) bf16 -> probs:(B, action_dim). One fused pallas_call."""
    M, K = x_bf16.shape
    N2 = kp["cw2"].shape[1]
    N3 = kp["cw3"].shape[1]
    F = kp["lin_w"].shape[1]
    Hd = kp["fc1_w"].shape[1]
    P = kp["out_w"].shape[1]        # lane-dense padded action width (128)

    t = _pick_tile_m(M, tile_m)
    m_pad = _round_up(M, t)
    x_p = jnp.pad(x_bf16, ((0, m_pad - M), (0, 0))) if m_pad != M else x_bf16

    kernel = functools.partial(_fused_head_kernel, action_dim=action_dim)
    out = pl.pallas_call(
        kernel,
        grid=(m_pad // t,),
        out_shape=jax.ShapeDtypeStruct((m_pad, P), jnp.float32),
        in_specs=[
            pl.BlockSpec((t, K), lambda i: (i, 0)),
            pl.BlockSpec((K, N2), lambda i: (0, 0)),
            pl.BlockSpec((1, N2), lambda i: (0, 0)),
            pl.BlockSpec((N2, N3), lambda i: (0, 0)),
            pl.BlockSpec((1, N3), lambda i: (0, 0)),
            pl.BlockSpec((N3, F), lambda i: (0, 0)),
            pl.BlockSpec((1, F), lambda i: (0, 0)),
            pl.BlockSpec((F, Hd), lambda i: (0, 0)),
            pl.BlockSpec((1, Hd), lambda i: (0, 0)),
            pl.BlockSpec((Hd, Hd), lambda i: (0, 0)),
            pl.BlockSpec((1, Hd), lambda i: (0, 0)),
            pl.BlockSpec((Hd, P), lambda i: (0, 0)),
            pl.BlockSpec((1, P), lambda i: (0, 0)),
        ],
        out_specs=pl.BlockSpec((t, P), lambda i: (i, 0)),
        compiler_params=pltpu.CompilerParams(
            dimension_semantics=("parallel",),
            vmem_limit_bytes=VMEM_LIMIT,
        ),
    )(x_p, kp["cw2"], kp["cb2"], kp["cw3"], kp["cb3"],
      kp["lin_w"], kp["lin_b"], kp["fc1_w"], kp["fc1_b"],
      kp["fc2_w"], kp["fc2_b"], kp["out_w"], kp["out_b"])
    return out[:M, :action_dim]


# ----------------------------------------------------------------------------
# conv1 im2col (bf16, XLA glue) — patch element order = (ky, kx, ci)
# ----------------------------------------------------------------------------
def _im2col(x_nhwc, kh, kw, sh, sw):
    B, H, W, C = x_nhwc.shape
    Ho = (H - kh) // sh + 1
    Wo = (W - kw) // sw + 1
    cols = []
    for i in range(kh):
        for j in range(kw):
            cols.append(
                x_nhwc[:, i:i + (Ho - 1) * sh + 1:sh, j:j + (Wo - 1) * sw + 1:sw, :]
            )
    patches = jnp.stack(cols, axis=3)                    # (B, Ho, Wo, kh*kw, C)
    return patches.reshape(B * Ho * Wo, kh * kw * C), B, Ho, Wo


# ----------------------------------------------------------------------------
# One-time weight preparation (numpy, outside jit).
# ----------------------------------------------------------------------------
def _conv2_as_dense(w2, b2, h_in, w_in, stride):
    """Fold conv2 into a dense matrix acting on the NHWC-flattened conv1 output.
    Output columns are padded to a multiple of 128 lanes."""
    w2 = np.asarray(w2, np.float32)
    b2 = np.asarray(b2, np.float32)
    kh, kw, cin, cout = w2.shape
    ho, wo = _conv_out(h_in, kh, stride), _conv_out(w_in, kw, stride)
    n_out = ho * wo * cout
    n_pad = _round_up(n_out, 128)
    dense = np.zeros((h_in * w_in * cin, n_pad), np.float32)
    bias = np.zeros((n_pad,), np.float32)
    bias[:n_out] = np.tile(b2, ho * wo)
    for oy in range(ho):
        for ox in range(wo):
            col0 = (oy * wo + ox) * cout
            for ky in range(kh):
                for kx in range(kw):
                    row0 = ((oy * stride + ky) * w_in + (ox * stride + kx)) * cin
                    dense[row0:row0 + cin, col0:col0 + cout] = w2[ky, kx]
    return dense, bias


def _conv3_as_dense(w3, rows_pad):
    """conv3 with 1x1 spatial output == GEMM; rows match conv2's (padded) layout."""
    w3 = np.asarray(w3, np.float32)
    kh, kw, cin, cout = w3.shape
    dense = np.zeros((rows_pad, cout), np.float32)
    dense[:kh * kw * cin] = w3.reshape(kh * kw * cin, cout)
    return dense


def init_params(key, c_in, n_flat, feature_dim, hidden_dim, action_dim):
    ks = jax.random.split(key, 14)

    def w(k, shape, scale=0.05):
        return scale * jax.random.normal(k, shape, jnp.float32)

    return {
        "conv1_w": w(ks[0], (8, 8, c_in, 32)),  "conv1_b": w(ks[1], (32,)),
        "conv2_w": w(ks[2], (4, 4, 32, 64)),    "conv2_b": w(ks[3], (64,)),
        "conv3_w": w(ks[4], (3, 3, 64, 64)),    "conv3_b": w(ks[5], (64,)),
        "lin_w": w(ks[6], (n_flat, feature_dim)), "lin_b": w(ks[7], (feature_dim,)),
        "fc1_w": w(ks[8], (feature_dim, hidden_dim)),  "fc1_b": w(ks[9], (hidden_dim,)),
        "fc2_w": w(ks[10], (hidden_dim, hidden_dim)),  "fc2_b": w(ks[11], (hidden_dim,)),
        "out_w": w(ks[12], (hidden_dim, action_dim)),  "out_b": w(ks[13], (action_dim,)),
    }


def prepare_kernel_params(params, *, obs_hw, action_dim, pad_n=PAD_N):
    """bf16 weights, (1,N) f32 biases, conv2/conv3 folded to dense GEMMs,
    lane-dense padded output layer."""
    h0, w0 = obs_hw
    h1, w1 = _conv_out(h0, 8, 4), _conv_out(w0, 8, 4)
    h2, w2 = _conv_out(h1, 4, 2), _conv_out(w1, 4, 2)
    h3, w3 = _conv_out(h2, 3, 1), _conv_out(w2, 3, 1)
    assert h3 == 1 and w3 == 1, "fused head assumes conv3 output is 1x1 (36x36 obs)"
    # conv3 output is (C,1,1): torch NCHW flatten == channel order, so lin_w rows
    # need no permutation here.

    c1 = np.asarray(params["conv1_w"], np.float32)
    conv1_w2d = c1.reshape(-1, c1.shape[-1])             # (ky,kx,ci) row order

    cw2, cb2 = _conv2_as_dense(params["conv2_w"], params["conv2_b"], h1, w1, 2)
    cw3 = _conv3_as_dense(params["conv3_w"], cw2.shape[1])

    hd = params["out_w"].shape[0]
    out_w_p = np.zeros((hd, pad_n), np.float32)
    out_w_p[:, :action_dim] = np.asarray(params["out_w"], np.float32)
    out_b_p = np.zeros((pad_n,), np.float32)
    out_b_p[:action_dim] = np.asarray(params["out_b"], np.float32)

    def bf(x):
        return jnp.asarray(x, jnp.bfloat16)

    def row(x):
        return jnp.asarray(np.asarray(x, np.float32)).reshape(1, -1)

    return {
        "conv1_w2d": bf(conv1_w2d), "conv1_b": row(params["conv1_b"]),
        "cw2": bf(cw2),             "cb2": row(cb2),
        "cw3": bf(cw3),             "cb3": row(params["conv3_b"]),
        "lin_w": bf(params["lin_w"]), "lin_b": row(params["lin_b"]),
        "fc1_w": bf(params["fc1_w"]), "fc1_b": row(params["fc1_b"]),
        "fc2_w": bf(params["fc2_w"]), "fc2_b": row(params["fc2_b"]),
        "out_w": bf(out_w_p),       "out_b": row(out_b_p),
    }


# ----------------------------------------------------------------------------
# Forward pass (Pallas path).
# ----------------------------------------------------------------------------
def custom_discrete_actor_forward(kparams, obs_nchw, state=None, *, action_dim):
    # cast to bf16 first so the layout-transpose glue moves half the bytes
    x = jnp.transpose(obs_nchw.astype(jnp.bfloat16), (0, 2, 3, 1))   # NCHW -> NHWC
    patches, B, Ho, Wo = _im2col(x, 8, 8, 4, 4)                      # bf16 patches
    a1 = pallas_matmul_bias_relu(patches, kparams["conv1_w2d"],
                                 kparams["conv1_b"], tile_m=1024)    # (B*Ho*Wo, 32) bf16
    x_flat = a1.reshape(B, Ho * Wo * a1.shape[-1])                   # NHWC flatten
    probs = pallas_fused_head(x_flat, kparams, action_dim=action_dim)
    return probs, state


# ----------------------------------------------------------------------------
# Pure-JAX reference (same bf16-operand / f32-accumulate precision policy).
# ----------------------------------------------------------------------------
def reference_forward(params, obs_nchw):
    dn = ("NHWC", "HWIO", "NHWC")
    x = jnp.transpose(obs_nchw, (0, 2, 3, 1))

    def conv(x, w, b, s):
        y = jax.lax.conv_general_dilated(
            x.astype(jnp.bfloat16), w.astype(jnp.bfloat16), (s, s), "VALID",
            dimension_numbers=dn, preferred_element_type=jnp.float32)
        return jnp.maximum(y + b, 0.0)

    x = conv(x, params["conv1_w"], params["conv1_b"], 4)
    x = conv(x, params["conv2_w"], params["conv2_b"], 2)
    x = conv(x, params["conv3_w"], params["conv3_b"], 1)
    x = jnp.transpose(x, (0, 3, 1, 2)).reshape(x.shape[0], -1)   # torch NCHW flatten

    def lin(x, w, b):
        return jnp.dot(x.astype(jnp.bfloat16), w.astype(jnp.bfloat16),
                       preferred_element_type=jnp.float32) + b

    x = jnp.maximum(lin(x, params["lin_w"], params["lin_b"]), 0.0)
    x = jnp.maximum(lin(x, params["fc1_w"], params["fc1_b"]), 0.0)
    x = jnp.maximum(lin(x, params["fc2_w"], params["fc2_b"]), 0.0)
    logits = lin(x, params["out_w"], params["out_b"])
    return jax.nn.softmax(logits, axis=-1)


if __name__ == "__main__":
    # observation_space = Box(4, 36, 36): 36x36 is the smallest spatial size the
    # NatureCNN stack supports; conv stack output is 64 x 1 x 1 -> n_flat = 64.
    B, C, H, W = 2, 4, 36, 36
    feature_dim, hidden_dim, action_dim = 128, 128, 6
    n_flat = 64

    key = jax.random.PRNGKey(0)
    kp_key, kx_key = jax.random.split(key)
    params = init_params(kp_key, C, n_flat, feature_dim, hidden_dim, action_dim)
    kparams = prepare_kernel_params(params, obs_hw=(H, W), action_dim=action_dim)
    obs = jax.random.uniform(kx_key, (B, C, H, W), jnp.float32)

    fwd = jax.jit(functools.partial(custom_discrete_actor_forward, kparams,
                                    action_dim=action_dim))
    probs, state = fwd(obs)
    probs = jax.block_until_ready(probs)

    ref = reference_forward(params, obs)
    assert probs.shape == (B, action_dim)
    assert jnp.allclose(jnp.sum(probs, axis=-1), 1.0, atol=1e-5)
    assert jnp.allclose(probs, ref, atol=2e-3, rtol=2e-3), "mismatch vs JAX reference"

    print("KERNEL_OK")
</pallas_src>

<mosaic_0001>
module attributes {stable_mosaic.version = 11 : i64} {
  func.func @_matmul_bias_relu_kernel(%arg0: i32, %arg1: memref<64x256xbf16, #tpu.memory_space<vmem>>, %arg2: memref<256x32xbf16, #tpu.memory_space<vmem>>, %arg3: memref<1x32xf32, #tpu.memory_space<vmem>>, %arg4: memref<64x32xbf16, #tpu.memory_space<vmem>>) attributes {dimension_semantics = [#tpu.dimension_semantics<parallel>], iteration_bounds = array<i64: 2>, scalar_prefetch = 0 : i64, scratch_operands = 0 : i64, tpu.core_type = #tpu.core_type<tc>, window_params = [{transform_indices = @transform_0, window_bounds = array<i64: 64, 256>}, {pipeline_mode = #tpu.pipeline_mode<synchronous>, transform_indices = @transform_1, window_bounds = array<i64: 256, 32>}, {pipeline_mode = #tpu.pipeline_mode<synchronous>, transform_indices = @transform_2, window_bounds = array<i64: 1, 32>}, {transform_indices = @transform_3, window_bounds = array<i64: 64, 32>}]} {
    %c0 = arith.constant 0 : index
    %c0_0 = arith.constant 0 : index
    %0 = vector.load %arg1[%c0, %c0_0] : memref<64x256xbf16, #tpu.memory_space<vmem>>, vector<64x256xbf16>
    %c0_1 = arith.constant 0 : index
    %c0_2 = arith.constant 0 : index
    %1 = vector.load %arg2[%c0_1, %c0_2] : memref<256x32xbf16, #tpu.memory_space<vmem>>, vector<256x32xbf16>
    %cst = arith.constant dense<0.000000e+00> : vector<64x32xf32>
    %2 = tpu.matmul %0, %1, %cst {dimension_numbers = #tpu.dot_dimension_numbers<[1], [0], [0], [1], [0, 0, 1, 1], [], []>} : vector<64x256xbf16>, vector<256x32xbf16>, vector<64x32xf32> -> vector<64x32xf32>
    %c0_3 = arith.constant 0 : index
    %c0_4 = arith.constant 0 : index
    %3 = vector.load %arg3[%c0_3, %c0_4] : memref<1x32xf32, #tpu.memory_space<vmem>>, vector<1x32xf32>
    %4 = vector.broadcast %3 : vector<1x32xf32> to vector<64x32xf32>
    %5 = arith.addf %2, %4 : vector<64x32xf32>
    %cst_5 = arith.constant 0.000000e+00 : f32
    %6 = vector.broadcast %cst_5 : f32 to vector<64x32xf32>
    %7 = arith.maximumf %5, %6 : vector<64x32xf32>
    %8 = arith.truncf %7 : vector<64x32xf32> to vector<64x32xbf16>
    %c0_6 = arith.constant 0 : index
    %c0_7 = arith.constant 0 : index
    %9 = vector.load %arg4[%c0_6, %c0_7] : memref<64x32xbf16, #tpu.memory_space<vmem>>, vector<64x32xbf16>
    tpu.vector_store %arg4[%c0_6, %c0_7], %8 {strides = array<i32>} : memref<64x32xbf16, #tpu.memory_space<vmem>>, vector<64x32xbf16>,
    return
  }
  func.func @transform_0(%arg0: i32) -> (i32, i32) {
    %c0_i32 = arith.constant 0 : i32
    %c0_i32_0 = arith.constant 0 : i32
    return %arg0, %c0_i32 : i32, i32
  }
  func.func @transform_1(%arg0: i32) -> (i32, i32) {
    %c0_i32 = arith.constant 0 : i32
    %c0_i32_0 = arith.constant 0 : i32
    %c0_i32_1 = arith.constant 0 : i32
    return %c0_i32, %c0_i32_0 : i32, i32
  }
  func.func @transform_2(%arg0: i32) -> (i32, i32) {
    %c0_i32 = arith.constant 0 : i32
    %c0_i32_0 = arith.constant 0 : i32
    %c0_i32_1 = arith.constant 0 : i32
    return %c0_i32, %c0_i32_0 : i32, i32
  }
  func.func @transform_3(%arg0: i32) -> (i32, i32) {
    %c0_i32 = arith.constant 0 : i32
    %c0_i32_0 = arith.constant 0 : i32
    return %arg0, %c0_i32 : i32, i32
  }
}

module attributes {stable_mosaic.version = 11 : i64} {
  func.func @_fused_head_kernel(%arg0: i32, %arg1: memref<16x2048xbf16, #tpu.memory_space<vmem>>, %arg2: memref<2048x640xbf16, #tpu.memory_space<vmem>>, %arg3: memref<1x640xf32, #tpu.memory_space<vmem>>, %arg4: memref<640x64xbf16, #tpu.memory_space<vmem>>, %arg5: memref<1x64xf32, #tpu.memory_space<vmem>>, %arg6: memref<64x128xbf16, #tpu.memory_space<vmem>>, %arg7: memref<1x128xf32, #tpu.memory_space<vmem>>, %arg8: memref<128x128xbf16, #tpu.memory_space<vmem>>, %arg9: memref<1x128xf32, #tpu.memory_space<vmem>>, %arg10: memref<128x128xbf16, #tpu.memory_space<vmem>>, %arg11: memref<1x128xf32, #tpu.memory_space<vmem>>, %arg12: memref<128x128xbf16, #tpu.memory_space<vmem>>, %arg13: memref<1x128xf32, #tpu.memory_space<vmem>>, %arg14: memref<16x128xf32, #tpu.memory_space<vmem>>) attributes {dimension_semantics = [#tpu.dimension_semantics<parallel>], iteration_bounds = array<i64: 1>, scalar_prefetch = 0 : i64, scratch_operands = 0 : i64, tpu.core_type = #tpu.core_type<tc>, window_params = [{transform_indices = @transform_0, window_bounds = array<i64: 16, 2048>}, {pipeline_mode = #tpu.pipeline_mode<synchronous>, transform_indices = @transform_1, window_bounds = array<i64: 2048, 640>}, {pipeline_mode = #tpu.pipeline_mode<synchronous>, transform_indices = @transform_2, window_bounds = array<i64: 1, 640>}, {pipeline_mode = #tpu.pipeline_mode<synchronous>, transform_indices = @transform_3, window_bounds = array<i64: 640, 64>}, {pipeline_mode = #tpu.pipeline_mode<synchronous>, transform_indices = @transform_4, window_bounds = array<i64: 1, 64>}, {pipeline_mode = #tpu.pipeline_mode<synchronous>, transform_indices = @transform_5, window_bounds = array<i64: 64, 128>}, {pipeline_mode = #tpu.pipeline_mode<synchronous>, transform_indices = @transform_6, window_bounds = array<i64: 1, 128>}, {pipeline_mode = #tpu.pipeline_mode<synchronous>, transform_indices = @transform_7, window_bounds = array<i64: 128, 128>}, {pipeline_mode = #tpu.pipeline_mode<synchronous>, transform_indices = @transform_8, window_bounds = array<i64: 1, 128>}, {pipeline_mode = #tpu.pipeline_mode<synchronous>, transform_indices = @transform_9, window_bounds = array<i64: 128, 128>}, {pipeline_mode = #tpu.pipeline_mode<synchronous>, transform_indices = @transform_10, window_bounds = array<i64: 1, 128>}, {pipeline_mode = #tpu.pipeline_mode<synchronous>, transform_indices = @transform_11, window_bounds = array<i64: 128, 128>}, {pipeline_mode = #tpu.pipeline_mode<synchronous>, transform_indices = @transform_12, window_bounds = array<i64: 1, 128>}, {transform_indices = @transform_13, window_bounds = array<i64: 16, 128>}]} {
    %c0 = arith.constant 0 : index
    %c0_0 = arith.constant 0 : index
    %0 = vector.load %arg1[%c0, %c0_0] : memref<16x2048xbf16, #tpu.memory_space<vmem>>, vector<16x2048xbf16>
    %c0_1 = arith.constant 0 : index
    %c0_2 = arith.constant 0 : index
    %1 = vector.load %arg2[%c0_1, %c0_2] : memref<2048x640xbf16, #tpu.memory_space<vmem>>, vector<2048x640xbf16>
    %cst = arith.constant dense<0.000000e+00> : vector<16x640xf32>
    %2 = tpu.matmul %0, %1, %cst {dimension_numbers = #tpu.dot_dimension_numbers<[1], [0], [0], [1], [0, 0, 1, 1], [], []>} : vector<16x2048xbf16>, vector<2048x640xbf16>, vector<16x640xf32> -> vector<16x640xf32>
    %c0_3 = arith.constant 0 : index
    %c0_4 = arith.constant 0 : index
    %3 = vector.load %arg3[%c0_3, %c0_4] : memref<1x640xf32, #tpu.memory_space<vmem>>, vector<1x640xf32>
    %4 = vector.broadcast %3 : vector<1x640xf32> to vector<16x640xf32>
    %5 = arith.addf %2, %4 : vector<16x640xf32>
    %cst_5 = arith.constant 0.000000e+00 : f32
    %6 = vector.broadcast %cst_5 : f32 to vector<16x640xf32>
    %7 = arith.maximumf %5, %6 : vector<16x640xf32>
    %8 = arith.truncf %7 : vector<16x640xf32> to vector<16x640xbf16>
    %c0_6 = arith.constant 0 : index
    %c0_7 = arith.constant 0 : index
    %9 = vector.load %arg4[%c0_6, %c0_7] : memref<640x64xbf16, #tpu.memory_space<vmem>>, vector<640x64xbf16>
    %cst_8 = arith.constant dense<0.000000e+00> : vector<16x64xf32>
    %10 = tpu.matmul %8, %9, %cst_8 {dimension_numbers = #tpu.dot_dimension_numbers<[1], [0], [0], [1], [0, 0, 1, 1], [], []>} : vector<16x640xbf16>, vector<640x64xbf16>, vector<16x64xf32> -> vector<16x64xf32>
    %c0_9 = arith.constant 0 : index
    %c0_10 = arith.constant 0 : index
    %11 = vector.load %arg5[%c0_9, %c0_10] : memref<1x64xf32, #tpu.memory_space<vmem>>, vector<1x64xf32>
    %12 = vector.broadcast %11 : vector<1x64xf32> to vector<16x64xf32>
    %13 = arith.addf %10, %12 : vector<16x64xf32>
    %cst_11 = arith.constant 0.000000e+00 : f32
    %14 = vector.broadcast %cst_11 : f32 to vector<16x64xf32>
    %15 = arith.maximumf %13, %14 : vector<16x64xf32>
    %16 = arith.truncf %15 : vector<16x64xf32> to vector<16x64xbf16>
    %c0_12 = arith.constant 0 : index
    %c0_13 = arith.constant 0 : index
    %17 = vector.load %arg6[%c0_12, %c0_13] : memref<64x128xbf16, #tpu.memory_space<vmem>>, vector<64x128xbf16>
    %cst_14 = arith.constant dense<0.000000e+00> : vector<16x128xf32>
    %18 = tpu.matmul %16, %17, %cst_14 {dimension_numbers = #tpu.dot_dimension_numbers<[1], [0], [0], [1], [0, 0, 1, 1], [], []>} : vector<16x64xbf16>, vector<64x128xbf16>, vector<16x128xf32> -> vector<16x128xf32>
    %c0_15 = arith.constant 0 : index
    %c0_16 = arith.constant 0 : index
    %19 = vector.load %arg7[%c0_15, %c0_16] : memref<1x128xf32, #tpu.memory_space<vmem>>, vector<1x128xf32>
    %20 = vector.broadcast %19 : vector<1x128xf32> to vector<16x128xf32>
    %21 = arith.addf %18, %20 : vector<16x128xf32>
    %cst_17 = arith.constant 0.000000e+00 : f32
    %22 = vector.broadcast %cst_17 : f32 to vector<16x128xf32>
    %23 = arith.maximumf %21, %22 : vector<16x128xf32>
    %24 = arith.truncf %23 : vector<16x128xf32> to vector<16x128xbf16>
    %c0_18 = arith.constant 0 : index
    %c0_19 = arith.constant 0 : index
    %25 = vector.load %arg8[%c0_18, %c0_19] : memref<128x128xbf16, #tpu.memory_space<vmem>>, vector<128x128xbf16>
    %cst_20 = arith.constant dense<0.000000e+00> : vector<16x128xf32>
    %26 = tpu.matmul %24, %25, %cst_20 {dimension_numbers = #tpu.dot_dimension_numbers<[1], [0], [0], [1], [0, 0, 1, 1], [], []>} : vector<16x128xbf16>, vector<128x128xbf16>, vector<16x128xf32> -> vector<16x128xf32>
    %c0_21 = arith.constant 0 : index
    %c0_22 = arith.constant 0 : index
    %27 = vector.load %arg9[%c0_21, %c0_22] : memref<1x128xf32, #tpu.memory_space<vmem>>, vector<1x128xf32>
    %28 = vector.broadcast %27 : vector<1x128xf32> to vector<16x128xf32>
    %29 = arith.addf %26, %28 : vector<16x128xf32>
    %cst_23 = arith.constant 0.000000e+00 : f32
    %30 = vector.broadcast %cst_23 : f32 to vector<16x128xf32>
    %31 = arith.maximumf %29, %30 : vector<16x128xf32>
    %32 = arith.truncf %31 : vector<16x128xf32> to vector<16x128xbf16>
    %c0_24 = arith.constant 0 : index
    %c0_25 = arith.constant 0 : index
    %33 = vector.load %arg10[%c0_24, %c0_25] : memref<128x128xbf16, #tpu.memory_space<vmem>>, vector<128x128xbf16>
    %cst_26 = arith.constant dense<0.000000e+00> : vector<16x128xf32>
    %34 = tpu.matmul %32, %33, %cst_26 {dimension_numbers = #tpu.dot_dimension_numbers<[1], [0], [0], [1], [0, 0, 1, 1], [], []>} : vector<16x128xbf16>, vector<128x128xbf16>, vector<16x128xf32> -> vector<16x128xf32>
    %c0_27 = arith.constant 0 : index
    %c0_28 = arith.constant 0 : index
    %35 = vector.load %arg11[%c0_27, %c0_28] : memref<1x128xf32, #tpu.memory_space<vmem>>, vector<1x128xf32>
    %36 = vector.broadcast %35 : vector<1x128xf32> to vector<16x128xf32>
    %37 = arith.addf %34, %36 : vector<16x128xf32>
    %cst_29 = arith.constant 0.000000e+00 : f32
    %38 = vector.broadcast %cst_29 : f32 to vector<16x128xf32>
    %39 = arith.maximumf %37, %38 : vector<16x128xf32>
    %40 = arith.truncf %39 : vector<16x128xf32> to vector<16x128xbf16>
    %c0_30 = arith.constant 0 : index
    %c0_31 = arith.constant 0 : index
    %41 = vector.load %arg12[%c0_30, %c0_31] : memref<128x128xbf16, #tpu.memory_space<vmem>>, vector<128x128xbf16>
    %cst_32 = arith.constant dense<0.000000e+00> : vector<16x128xf32>
    %42 = tpu.matmul %40, %41, %cst_32 {dimension_numbers = #tpu.dot_dimension_numbers<[1], [0], [0], [1], [0, 0, 1, 1], [], []>} : vector<16x128xbf16>, vector<128x128xbf16>, vector<16x128xf32> -> vector<16x128xf32>
    %c0_33 = arith.constant 0 : index
    %c0_34 = arith.constant 0 : index
    %43 = vector.load %arg13[%c0_33, %c0_34] : memref<1x128xf32, #tpu.memory_space<vmem>>, vector<1x128xf32>
    %44 = vector.broadcast %43 : vector<1x128xf32> to vector<16x128xf32>
    %45 = arith.addf %42, %44 : vector<16x128xf32>
    %46 = tpu.iota {dimensions = array<i32: 1>} : vector<16x128xi32>
    %c6_i32 = arith.constant 6 : i32
    %47 = vector.broadcast %c6_i32 : i32 to vector<16x128xi32>
    %48 = arith.cmpi slt, %46, %47 : vector<16x128xi32>
    %cst_35 = arith.constant -1.000000e+30 : f32
    %49 = vector.broadcast %cst_35 : f32 to vector<16x128xf32>
    %50 = arith.select %48, %45, %49 : vector<16x128xi1>, vector<16x128xf32>
    %cst_36 = arith.constant dense<0xFF800000> : vector<16xf32>
    %51 = vector.multi_reduction <maximumf>, %50, %cst_36 [1] : vector<16x128xf32> to vector<16xf32>
    %52 = vector.shape_cast %51 : vector<16xf32> to vector<16x1xf32>
    %53 = vector.broadcast %52 : vector<16x1xf32> to vector<16x128xf32>
    %54 = arith.subf %50, %53 : vector<16x128xf32>
    %55 = math.exp %54 : vector<16x128xf32>
    %cst_37 = arith.constant dense<0.000000e+00> : vector<16xf32>
    %56 = vector.multi_reduction <add>, %55, %cst_37 [1] : vector<16x128xf32> to vector<16xf32>
    %57 = vector.shape_cast %56 : vector<16xf32> to vector<16x1xf32>
    %58 = vector.broadcast %57 : vector<16x1xf32> to vector<16x128xf32>
    %59 = arith.divf %55, %58 : vector<16x128xf32>
    %c0_38 = arith.constant 0 : index
    %c0_39 = arith.constant 0 : index
    %60 = vector.load %arg14[%c0_38, %c0_39] : memref<16x128xf32, #tpu.memory_space<vmem>>, vector<16x128xf32>
    tpu.vector_store %arg14[%c0_38, %c0_39], %59 {strides = array<i32>} : memref<16x128xf32, #tpu.memory_space<vmem>>, vector<16x128xf32>,
    return
  }
  func.func @transform_0(%arg0: i32) -> (i32, i32) {
    %c0_i32 = arith.constant 0 : i32
    %c0_i32_0 = arith.constant 0 : i32
    return %arg0, %c0_i32 : i32, i32
  }
  func.func @transform_1(%arg0: i32) -> (i32, i32) {
    %c0_i32 = arith.constant 0 : i32
    %c0_i32_0 = arith.constant 0 : i32
    %c0_i32_1 = arith.constant 0 : i32
    return %c0_i32, %c0_i32_0 : i32, i32
  }
  func.func @transform_2(%arg0: i32) -> (i32, i32) {
    %c0_i32 = arith.constant 0 : i32
    %c0_i32_0 = arith.constant 0 : i32
    %c0_i32_1 = arith.constant 0 : i32
    return %c0_i32, %c0_i32_0 : i32, i32
  }
  func.func @transform_3(%arg0: i32) -> (i32, i32) {
    %c0_i32 = arith.constant 0 : i32
    %c0_i32_0 = arith.constant 0 : i32
    %c0_i32_1 = arith.constant 0 : i32
    return %c0_i32, %c0_i32_0 : i32, i32
  }
  func.func @transform_4(%arg0: i32) -> (i32, i32) {
    %c0_i32 = arith.constant 0 : i32
    %c0_i32_0 = arith.constant 0 : i32
    %c0_i32_1 = arith.constant 0 : i32
    return %c0_i32, %c0_i32_0 : i32, i32
  }
  func.func @transform_5(%arg0: i32) -> (i32, i32) {
    %c0_i32 = arith.constant 0 : i32
    %c0_i32_0 = arith.constant 0 : i32
    %c0_i32_1 = arith.constant 0 : i32
    return %c0_i32, %c0_i32_0 : i32, i32
  }
  func.func @transform_6(%arg0: i32) -> (i32, i32) {
    %c0_i32 = arith.constant 0 : i32
    %c0_i32_0 = arith.constant 0 : i32
    %c0_i32_1 = arith.constant 0 : i32
    return %c0_i32, %c0_i32_0 : i32, i32
  }
  func.func @transform_7(%arg0: i32) -> (i32, i32) {
    %c0_i32 = arith.constant 0 : i32
    %c0_i32_0 = arith.constant 0 : i32
    %c0_i32_1 = arith.constant 0 : i32
    return %c0_i32, %c0_i32_0 : i32, i32
  }
  func.func @transform_8(%arg0: i32) -> (i32, i32) {
    %c0_i32 = arith.constant 0 : i32
    %c0_i32_0 = arith.constant 0 : i32
    %c0_i32_1 = arith.constant 0 : i32
    return %c0_i32, %c0_i32_0 : i32, i32
  }
  func.func @transform_9(%arg0: i32) -> (i32, i32) {
    %c0_i32 = arith.constant 0 : i32
    %c0_i32_0 = arith.constant 0 : i32
    %c0_i32_1 = arith.constant 0 : i32
    return %c0_i32, %c0_i32_0 : i32, i32
  }
  func.func @transform_10(%arg0: i32) -> (i32, i32) {
    %c0_i32 = arith.constant 0 : i32
    %c0_i32_0 = arith.constant 0 : i32
    %c0_i32_1 = arith.constant 0 : i32
    return %c0_i32, %c0_i32_0 : i32, i32
  }
  func.func @transform_11(%arg0: i32) -> (i32, i32) {
    %c0_i32 = arith.constant 0 : i32
    %c0_i32_0 = arith.constant 0 : i32
    %c0_i32_1 = arith.constant 0 : i32
    return %c0_i32, %c0_i32_0 : i32, i32
  }
  func.func @transform_12(%arg0: i32) -> (i32, i32) {
    %c0_i32 = arith.constant 0 : i32
    %c0_i32_0 = arith.constant 0 : i32
    %c0_i32_1 = arith.constant 0 : i32
    return %c0_i32, %c0_i32_0 : i32, i32
  }
  func.func @transform_13(%arg0: i32) -> (i32, i32) {
    %c0_i32 = arith.constant 0 : i32
    %c0_i32_0 = arith.constant 0 : i32
    return %arg0, %c0_i32 : i32, i32
  }
}

</mosaic_0001>

<bundles_post_ra>
// kernel: custom_discrete_actor_forward.2
= control target key start
LH: loop header
LB: loop body
LE: loop exit
PB: predicated region body
PF: predicated region fallthrough
CT: control target
= control target key end

     0   :  { %s705_s12 = smov 0   ;;  %s805_s0 = inlined_call_operand.vmem [shape: bf16[128,256], index: 0, kind: input, shape index: {}]   ;;  %s806_s1 = inlined_call_operand.vmem [shape: bf16[256,32], index: 1, kind: input, shape index: {}]   ;;  %s807_s2 = inlined_call_operand.vmem [shape: f32[1,32], index: 2, kind: input, shape index: {}]   ;;  %s808_s3 = inlined_call_operand.vmem [shape: bf16[128,32], index: 3, kind: output, shape index: {}]  }
   0x1 LB: > { %s531_s13 = sadd.s32 4294967295, %s683_s12   ;;  %p535_p0 = scmp.ge.s32.totalorder %s683_s12, 1  ;;  %s683_s12 = sphi %s705_s12, %s13_s12  }
   0x2   : > { %p139_p1 = scmp.lt.s32.totalorder %s683_s12, 3 }
   0x4   : > { %p140_p2 = pnand %p535_p0, %p139_p1 }
   0x5   : > { %v649_v0 = vld [vmem:[%s806_s1 + $0x40] sm:$0xff] (!%p140_p2)   ;;  %s536_s16 = sshll.u32 (!%p140_p2), %s531_s13, 3  ;;  %v651_v2 = vld [vmem:[%s806_s1 + $0x48] sm:$0xff] (!%p140_p2)   ;;  %v653_v4 = vld [vmem:[%s806_s1 + $0x50] sm:$0xff] (!%p140_p2)   ;;  %vm466_vm0 = vcmask (!%p140_p2), 257024  }
   0x6   : > { %143 = sbr.rel (%p140_p2) target bundleno = 270 (0x10e), region = 32  ;;  %v650_v1 = vld [vmem:[%s806_s1] sm:$0xff] (!%p140_p2)   ;;  %585 = vmatprep.subr.bf16.mxu0 (!%p140_p2), %v649_v0  ;;  %625 = vmatprep.subr.bf16.mxu1 (!%p140_p2), %v649_v0  ;;  %v652_v3 = vld [vmem:[%s806_s1 + $0x8] sm:$0xff] (!%p140_p2)   ;;  %p165_p3 = scmp.lt.s32.totalorder (!%p140_p2), %s536_s16, 15  ;;  %v654_v5 = vld [vmem:[%s806_s1 + $0x10] sm:$0xff] (!%p140_p2)  }
   0x7   : > { %586 = vmatpush3.bf16.msra.mxu0 (!%p140_p2), %v650_v1  ;;  %633 = vmatpush3.bf16.msra.mxu1 (!%p140_p2), %v650_v1  ;;  %v655_v6 = vld [vmem:[%s806_s1 + $0x58] sm:$0xff] (!%p140_p2)   ;;  %v657_v8 = vld [vmem:[%s806_s1 + $0x60] sm:$0xff] (!%p140_p2)   ;;  %v659_v10 = vld [vmem:[%s806_s1 + $0x68] sm:$0xff] (!%p140_p2)  }
   0x8   : > { %587 = vmatprep.subr.bf16.mxu0 (!%p140_p2), %v651_v2  ;;  %626 = vmatprep.subr.bf16.mxu1 (!%p140_p2), %v651_v2  ;;  %v656_v7 = vld [vmem:[%s806_s1 + $0x18] sm:$0xff] (!%p140_p2)   ;;  %v658_v9 = vld [vmem:[%s806_s1 + $0x20] sm:$0xff] (!%p140_p2)   ;;  %v660_v13 = vld [vmem:[%s806_s1 + $0x28] sm:$0xff] (!%p140_p2)  }
   0x9   : > { %v661_v14 = vld [vmem:[%s806_s1 + $0x70] sm:$0xff] (!%p140_p2)   ;;  %v663_v16 = vld [vmem:[%s806_s1 + $0x78] sm:$0xff] (!%p140_p2)   ;;  %v541_v26 = vld [vmem:[%s807_s2] ss:$0 sm:$0xff] (!%p140_p2) }
   0xa   : > { %v662_v15 = vld [vmem:[%s806_s1 + $0x30] sm:$0xff] (!%p140_p2)   ;;  %v664_v17 = vld [vmem:[%s806_s1 + $0x38] sm:$0xff] (!%p140_p2)  }
   0xb   : > { %588 = vmatpush3.bf16.msra.mxu0 (!%p140_p2), %v652_v3  ;;  %634 = vmatpush3.bf16.msra.mxu1 (!%p140_p2), %v652_v3 }
   0xc   : > { %589 = vmatprep.subr.bf16.mxu0 (!%p140_p2), %v653_v4  ;;  %627 = vmatprep.subr.bf16.mxu1 (!%p140_p2), %v653_v4 }
   0xd   : > { %s810_s16 = smov (!%p165_p3, %s536_s16), 15 }
   0xe   : > { %s576_s4 = sshll.u32 %s810_s16, 3  ;;  %s540_s28 = sshll.u32 %s810_s16, 2 }
   0xf   : > { %590 = vmatpush3.bf16.msra.mxu0 %v654_v5  ;;  %635 = vmatpush3.bf16.msra.mxu1 %v654_v5  ;;  %s746_s9 = scalar_lea.vmem %s805_s0, %s576_s4  ;;  %s784_s4 = scalar_lea.vmem %s808_s3, %s540_s28 }
  0x10   : > { %591 = vmatprep.subr.bf16.mxu0 %v655_v6  ;;  %628 = vmatprep.subr.bf16.mxu1 %v655_v6  ;;  %v667_v11 = vld [vmem:[%s746_s9 + $0x4] ss:$8 sps:$4 sm:$0xff]   ;;  %v665_v18 = vld [vmem:[%s746_s9] ss:$8 sps:$4 sm:$0xff]   ;;  %v671_v20 = vld [vmem:[%s746_s9 + $0x14] ss:$8 sps:$4 sm:$0xff]  }
  0x11   : > { %v670_v12 = vld [vmem:[%s746_s9 + $0x24] ss:$8 sps:$4 sm:$0xff]   ;;  %393 = vmatprep.mubr.bf16.mxu0 %v667_v11  ;;  %v668_v19 = vld [vmem:[%s746_s9 + $0x20] ss:$8 sps:$4 sm:$0xff]   ;;  %v673_v21 = vld [vmem:[%s746_s9 + $0x34] ss:$8 sps:$4 sm:$0xff]  }
  0x12   : > { %409 = vmatprep.mubr.bf16.mxu1 %v670_v12  ;;  %v675_v22 = vld [vmem:[%s746_s9 + $0x10] ss:$8 sps:$4 sm:$0xff]  }
  0x13   : > { %592 = vmatpush3.bf16.msra.mxu0 %v656_v7  ;;  %636 = vmatpush3.bf16.msra.mxu1 %v656_v7  ;;  %v676_v23 = vld [vmem:[%s746_s9 + $0x30] ss:$8 sps:$4 sm:$0xff]  }
  0x14   : > { %593 = vmatprep.subr.bf16.mxu0 %v657_v8  ;;  %629 = vmatprep.subr.bf16.mxu1 %v657_v8 }
  0x17   : > { %594 = vmatpush3.bf16.msra.mxu0 %v658_v9  ;;  %637 = vmatpush3.bf16.msra.mxu1 %v658_v9 }
  0x18   : > { %595 = vmatprep.subr.bf16.mxu0 %v659_v10  ;;  %630 = vmatprep.subr.bf16.mxu1 %v659_v10 }
  0x1b   : > { %596 = vmatpush3.bf16.msra.mxu0 %v660_v13  ;;  %638 = vmatpush3.bf16.msra.mxu1 %v660_v13 }
  0x1c   : > { %597 = vmatprep.subr.bf16.mxu0 %v661_v14  ;;  %631 = vmatprep.subr.bf16.mxu1 %v661_v14 }
  0x1f   : > { %598 = vmatpush3.bf16.msra.mxu0 %v662_v15  ;;  %639 = vmatpush3.bf16.msra.mxu1 %v662_v15 }
  0x20   : > { %599 = vmatprep.subr.bf16.mxu0 %v663_v16  ;;  %632 = vmatprep.subr.bf16.mxu1 %v663_v16 }
  0x23   : > { %600 = vmatpush3.bf16.msra.mxu0 %v664_v17  ;;  %640 = vmatpush3.bf16.msra.mxu1 %v664_v17 }
  0x26   : > { %394 = vmatmul.mubr.bf16.vlgmr.msra.gmra.mrb[0].mxu0 %v665_v18  ;;  %410 = vmatmul.mubr.bf16.vlgmr.msra.gmra.mrb[0].mxu1 %v668_v19 }
  0x27   : > { %401 = vmatprep.mubr.bf16.mxu0 %v671_v20  ;;  %417 = vmatprep.mubr.bf16.mxu1 %v673_v21 }
  0x2e   : > { %402 = vmatmul.mubr.bf16.gmra.mrb[4].mxu0 %v675_v22  ;;  %418 = vmatmul.mubr.bf16.gmra.mrb[4].mxu1 %v676_v23 }
  0xf9   : > { %v601_v24 = vpop.f32.mrb[0].mxu0  ;;  %v613_v25 = vpop.f32.mrb[0].mxu1 }
  0xfa   : > { %v602_v27 = vpop.f32.mrb[1].mxu0  ;;  %v614_v28 = vpop.f32.mrb[1].mxu1 }
  0xfb   : > { %v603_v29 = vadd.f32 %v602_v27, %v601_v24  ;;  %v615_v30 = vadd.f32 %v614_v28, %v613_v25  ;;  %v604_v31 = vpop.f32.mrb[2].mxu0  ;;  %v616_v32 = vpop.f32.mrb[2].mxu1 }
  0xfc   : > { %v605_v33 = vpop.f32.mrb[3].mxu0  ;;  %v617_v34 = vpop.f32.mrb[3].mxu1 }
  0xfd   : > { %v396_v35 = vadd.f32 %v603_v29, %v541_v26  ;;  %v412_v36 = vadd.f32 %v615_v30, %v541_v26  ;;  %v606_v37 = vadd.f32 %v605_v33, %v604_v31  ;;  %v618_v38 = vadd.f32 %v617_v34, %v616_v32 }
  0xff   : > { %v426_v39 = vmax.f32 %v396_v35, 0.0  ;;  %v430_v40 = vmax.f32 %v412_v36, 0.0  ;;  %v399_v41 = vadd.f32 %v606_v37, %v541_v26  ;;  %v415_v42 = vadd.f32 %v618_v38, %v541_v26 }
 0x101   : > { %v577_v43 = vpack.c.bf16 %v426_v39, %v426_v39  ;;  %v581_v44 = vpack.c.bf16 %v430_v40, %v430_v40  ;;  %v427_v45 = vmax.f32 %v399_v41, 0.0  ;;  %v431_v46 = vmax.f32 %v415_v42, 0.0  ;;  %v607_v47 = vpop.f32.mrb[4].mxu0  ;;  %v619_v48 = vpop.f32.mrb[4].mxu1 }
 0x102   : > { %v608_v49 = vpop.f32.mrb[5].mxu0  ;;  %v620_v50 = vpop.f32.mrb[5].mxu1 }
 0x103   : > { %467 = vst.msk [vmem:[%s784_s4] sm:$0xf] %vm466_vm0, %v577_v43  ;;  %471 = vst.msk [vmem:[%s784_s4 + $0x10] sm:$0xf] %vm466_vm0, %v581_v44  ;;  %v578_v51 = vpack.c.bf16 %v427_v45, %v427_v45  ;;  %v582_v52 = vpack.c.bf16 %v431_v46, %v431_v46  ;;  %v609_v53 = vadd.f32 %v608_v49, %v607_v47  ;;  %v610_v55 = vpop.f32.mrb[6].mxu0  ;;  %v622_v56 = vpop.f32.mrb[6].mxu1 }
 0x104   : > { %v621_v54 = vadd.f32 %v620_v50, %v619_v48  ;;  %v611_v57 = vpop.f32.mrb[7].mxu0  ;;  %v623_v58 = vpop.f32.mrb[7].mxu1 }
 0x105   : > { %468 = vst.msk [vmem:[%s784_s4 + $0x4] sm:$0xf] %vm466_vm0, %v578_v51  ;;  %472 = vst.msk [vmem:[%s784_s4 + $0x14] sm:$0xf] %vm466_vm0, %v582_v52  ;;  %v404_v59 = vadd.f32 %v609_v53, %v541_v26  ;;  %v612_v61 = vadd.f32 %v611_v57, %v610_v55  ;;  %v624_v62 = vadd.f32 %v623_v58, %v622_v56 }
 0x106   : > { %v420_v60 = vadd.f32 %v621_v54, %v541_v26 }
 0x107   : > { %v428_v63 = vmax.f32 %v404_v59, 0.0  ;;  %v407_v1 = vadd.f32 %v612_v61, %v541_v26  ;;  %v423_v2 = vadd.f32 %v624_v62, %v541_v26 }
 0x108   : > { %v432_v0 = vmax.f32 %v420_v60, 0.0 }
 0x109   : > { %v579_v3 = vpack.c.bf16 %v428_v63, %v428_v63  ;;  %v429_v5 = vmax.f32 %v407_v1, 0.0  ;;  %v433_v6 = vmax.f32 %v423_v2, 0.0 }
 0x10a   : > { %v583_v4 = vpack.c.bf16 %v432_v0, %v432_v0 }
 0x10b   : > { %469 = vst.msk [vmem:[%s784_s4 + $0x8] sm:$0xf] %vm466_vm0, %v579_v3  ;;  %v580_v7 = vpack.c.bf16 %v429_v5, %v429_v5  ;;  %v584_v8 = vpack.c.bf16 %v433_v6, %v433_v6 }
 0x10c   : > { %473 = vst.msk [vmem:[%s784_s4 + $0x18] sm:$0xf] %vm466_vm0, %v583_v4 }
 0x10d   : > { %470 = vst.msk [vmem:[%s784_s4 + $0xc] sm:$0xf] %vm466_vm0, %v580_v7  ;;  %474 = vst.msk [vmem:[%s784_s4 + $0x1c] sm:$0xf] %vm466_vm0, %v584_v8 }
 0x10e PF: > { %s13_s12 = sadd.s32 1, %s683_s12  }
 0x10f   : > { %p10_p4 = scmp.ge.s32.totalorder %s13_s12, 4  }
 0x111   :  { %12 = sbr.rel (!%p10_p4) target bundleno = 1 (0x1), region = 62 }

// kernel: custom_discrete_actor_forward.3
= control target key start
LH: loop header
LB: loop body
LE: loop exit
PB: predicated region body
PF: predicated region fallthrough
CT: control target
= control target key end

     0   :  { %vm8328_vm0 = vmmov 0   ;;  %vm5787_vm1 = vcmask 523264   ;;  %s10786_s1 = inlined_call_operand.vmem [shape: bf16[2048,640], index: 1, kind: input, shape index: {}]   ;;  %s10787_s0 = inlined_call_operand.vmem [shape: bf16[16,2048], index: 0, kind: input, shape index: {}]   ;;  %s10788_s3 = inlined_call_operand.vmem [shape: bf16[640,64], index: 3, kind: input, shape index: {}]   ;;  %s10789_s2 = inlined_call_operand.vmem [shape: f32[1,640], index: 2, kind: input, shape index: {}]   ;;  %s10790_s5 = inlined_call_operand.vmem [shape: bf16[64,128], index: 5, kind: input, shape index: {}]   ;;  %s10791_s4 = inlined_call_operand.vmem [shape: f32[1,64], index: 4, kind: input, shape index: {}]   ;;  %s10792_s7 = inlined_call_operand.vmem [shape: bf16[128,128], index: 7, kind: input, shape index: {}]   ;;  %s10793_s9 = inlined_call_operand.vmem [shape: bf16[128,128], index: 9, kind: input, shape index: {}]   ;;  %s10794_s6 = inlined_call_operand.vmem [shape: f32[1,128], index: 6, kind: input, shape index: {}]   ;;  %s10795_s11 = inlined_call_operand.vmem [shape: bf16[128,128], index: 11, kind: input, shape index: {}]   ;;  %s10796_s8 = inlined_call_operand.vmem [shape: f32[1,128], index: 8, kind: input, shape index: {}]   ;;  %s10797_s10 = inlined_call_operand.vmem [shape: f32[1,128], index: 10, kind: input, shape index: {}]   ;;  %s10798_s12 = inlined_call_operand.vmem [shape: f32[1,128], index: 12, kind: input, shape index: {}]   ;;  %s10799_s13 = inlined_call_operand.vmem [shape: f32[16,128], index: 13, kind: output, shape index: {}]  }
   0x1   :  { %v7355_v0 = vld [vmem:[%s10786_s1 + $0x4] ss:$20 sps:$4 sm:$0xff]   ;;  %v7357_v1 = vld [vmem:[%s10786_s1 + $0xc] ss:$20 sps:$4 sm:$0xff]   ;;  %v7360_v3 = vld [vmem:[%s10786_s1 + $0x8] ss:$20 sps:$4 sm:$0xff]  }
   0x2   :  { %4264 = vmatprep.subr.bf16.mxu0 %v7355_v0  ;;  %v7359_v2 = vld [vmem:[%s10786_s1] ss:$20 sps:$4 sm:$0xff]   ;;  %4608 = vmatprep.subr.bf16.mxu1 %v7357_v1  ;;  %v7365_v6 = vld [vmem:[%s10786_s1 + $0x28] ss:$20 sps:$4 sm:$0xff]   ;;  %v7366_v7 = vld [vmem:[%s10786_s1 + $0x30] ss:$20 sps:$4 sm:$0xff]  }
   0x3   :  { %v7361_v4 = vld [vmem:[%s10786_s1 + $0x2c] ss:$20 sps:$4 sm:$0xff]   ;;  %4265 = vmatpush1.bf16.msra.mxu0 %v7359_v2  ;;  %4609 = vmatpush1.bf16.msra.mxu1 %v7360_v3  ;;  %v7363_v5 = vld [vmem:[%s10786_s1 + $0x34] ss:$20 sps:$4 sm:$0xff]   ;;  %v7369_v9 = vld [vmem:[%s10786_s1 + $0x5c] ss:$20 sps:$4 sm:$0xff]  }
   0x4   :  { %4266 = vmatprep.subr.bf16.mxu0 %v7361_v4  ;;  %4610 = vmatprep.subr.bf16.mxu1 %v7363_v5  ;;  %v7367_v8 = vld [vmem:[%s10786_s1 + $0x54] ss:$20 sps:$4 sm:$0xff]   ;;  %v7371_v10 = vld [vmem:[%s10786_s1 + $0x50] ss:$20 sps:$4 sm:$0xff]   ;;  %v7372_v11 = vld [vmem:[%s10786_s1 + $0x58] ss:$20 sps:$4 sm:$0xff]  }
   0x5   :  { %v7373_v12 = vld [vmem:[%s10786_s1 + $0x7c] ss:$20 sps:$4 sm:$0xff]   ;;  %v7375_v13 = vld [vmem:[%s10786_s1 + $0x84] ss:$20 sps:$4 sm:$0xff]   ;;  %v7378_v15 = vld [vmem:[%s10786_s1 + $0x80] ss:$20 sps:$4 sm:$0xff]  }
   0x6   :  { %v7377_v14 = vld [vmem:[%s10786_s1 + $0x78] ss:$20 sps:$4 sm:$0xff]   ;;  %v7383_v18 = vld [vmem:[%s10786_s1 + $0xa0] ss:$20 sps:$4 sm:$0xff]   ;;  %v7384_v19 = vld [vmem:[%s10786_s1 + $0xa8] ss:$20 sps:$4 sm:$0xff]  }
   0x7   :  { %4267 = vmatpush1.bf16.msra.mxu0 %v7365_v6  ;;  %4611 = vmatpush1.bf16.msra.mxu1 %v7366_v7  ;;  %v7379_v16 = vld [vmem:[%s10786_s1 + $0xa4] ss:$20 sps:$4 sm:$0xff]   ;;  %v7381_v17 = vld [vmem:[%s10786_s1 + $0xac] ss:$20 sps:$4 sm:$0xff]   ;;  %v7387_v21 = vld [vmem:[%s10786_s1 + $0xd4] ss:$20 sps:$4 sm:$0xff]  }
   0x8   :  { %4268 = vmatprep.subr.bf16.mxu0 %v7367_v8  ;;  %4612 = vmatprep.subr.bf16.mxu1 %v7369_v9  ;;  %v7385_v20 = vld [vmem:[%s10786_s1 + $0xcc] ss:$20 sps:$4 sm:$0xff]   ;;  %v7389_v22 = vld [vmem:[%s10786_s1 + $0xc8] ss:$20 sps:$4 sm:$0xff]   ;;  %v7390_v23 = vld [vmem:[%s10786_s1 + $0xd0] ss:$20 sps:$4 sm:$0xff]  }
   0x9   :  { %v7391_v24 = vld [vmem:[%s10786_s1 + $0xf4] ss:$20 sps:$4 sm:$0xff]   ;;  %v7393_v25 = vld [vmem:[%s10786_s1 + $0xfc] ss:$20 sps:$4 sm:$0xff]   ;;  %v7396_v27 = vld [vmem:[%s10786_s1 + $0xf8] ss:$20 sps:$4 sm:$0xff]  }
   0xa   :  { %v7395_v26 = vld [vmem:[%s10786_s1 + $0xf0] ss:$20 sps:$4 sm:$0xff]   ;;  %v7401_v30 = vld [vmem:[%s10786_s1 + $0x118] ss:$20 sps:$4 sm:$0xff]   ;;  %v7402_v31 = vld [vmem:[%s10786_s1 + $0x120] ss:$20 sps:$4 sm:$0xff]  }
   0xb   :  { %4269 = vmatpush1.bf16.msra.mxu0 %v7371_v10  ;;  %4613 = vmatpush1.bf16.msra.mxu1 %v7372_v11  ;;  %v7397_v28 = vld [vmem:[%s10786_s1 + $0x11c] ss:$20 sps:$4 sm:$0xff]   ;;  %v7399_v29 = vld [vmem:[%s10786_s1 + $0x124] ss:$20 sps:$4 sm:$0xff]   ;;  %v7405_v33 = vld [vmem:[%s10786_s1 + $0x14c] ss:$20 sps:$4 sm:$0xff]  }
   0xc   :  { %4270 = vmatprep.subr.bf16.mxu0 %v7373_v12  ;;  %4614 = vmatprep.subr.bf16.mxu1 %v7375_v13  ;;  %v7403_v32 = vld [vmem:[%s10786_s1 + $0x144] ss:$20 sps:$4 sm:$0xff]   ;;  %v7407_v34 = vld [vmem:[%s10786_s1 + $0x140] ss:$20 sps:$4 sm:$0xff]   ;;  %v7408_v35 = vld [vmem:[%s10786_s1 + $0x148] ss:$20 sps:$4 sm:$0xff]  }
   0xd   :  { %v7409_v36 = vld [vmem:[%s10786_s1 + $0x16c] ss:$20 sps:$4 sm:$0xff]   ;;  %v7411_v37 = vld [vmem:[%s10786_s1 + $0x174] ss:$20 sps:$4 sm:$0xff]   ;;  %v7414_v39 = vld [vmem:[%s10786_s1 + $0x170] ss:$20 sps:$4 sm:$0xff]  }
   0xe   :  { %v7413_v38 = vld [vmem:[%s10786_s1 + $0x168] ss:$20 sps:$4 sm:$0xff]   ;;  %v7419_v42 = vld [vmem:[%s10786_s1 + $0x190] ss:$20 sps:$4 sm:$0xff]   ;;  %v7420_v43 = vld [vmem:[%s10786_s1 + $0x198] ss:$20 sps:$4 sm:$0xff]  }
   0xf   :  { %4271 = vmatpush1.bf16.msra.mxu0 %v7377_v14  ;;  %4615 = vmatpush1.bf16.msra.mxu1 %v7378_v15  ;;  %v7415_v40 = vld [vmem:[%s10786_s1 + $0x194] ss:$20 sps:$4 sm:$0xff]   ;;  %v7417_v41 = vld [vmem:[%s10786_s1 + $0x19c] ss:$20 sps:$4 sm:$0xff]   ;;  %v7423_v45 = vld [vmem:[%s10786_s1 + $0x1c4] ss:$20 sps:$4 sm:$0xff]  }
  0x10   :  { %4272 = vmatprep.subr.bf16.mxu0 %v7379_v16  ;;  %4616 = vmatprep.subr.bf16.mxu1 %v7381_v17  ;;  %v7421_v44 = vld [vmem:[%s10786_s1 + $0x1bc] ss:$20 sps:$4 sm:$0xff]   ;;  %v45_v46 = vld [vmem:[%s10787_s0] sm:$0xff]  ;;  %v7425_v48 = vld [vmem:[%s10786_s1 + $0x1b8] ss:$20 sps:$4 sm:$0xff]  }
  0x11   :  { %v53_v47 = vld [vmem:[%s10787_s0 + $0x40] sm:$0xff]  ;;  %v7432_v54 = vld [vmem:[%s10786_s1 + $0x1e8] ss:$20 sps:$4 sm:$0xff]   ;;  %v7444_v62 = vld [vmem:[%s10786_s1 + $0x238] ss:$20 sps:$4 sm:$0xff]  }
  0x12   :  { %v7426_v49 = vld [vmem:[%s10786_s1 + $0x1c0] ss:$20 sps:$4 sm:$0xff]   ;;  %v8549_v50 = vcombine.high %v45_v46, %v53_v47  ;;  %v7427_v51 = vld [vmem:[%s10786_s1 + $0x1e4] ss:$20 sps:$4 sm:$0xff]   ;;  %v7437_v57 = vld [vmem:[%s10786_s1 + $0x208] ss:$20 sps:$4 sm:$0xff]   ;;  %v8607_v5 = vcombine.low %v45_v46, %v53_v47 }
  0x13   :  { %4273 = vmatpush1.bf16.msra.mxu0 %v7383_v18  ;;  %4617 = vmatpush1.bf16.msra.mxu1 %v7384_v19  ;;  %v7429_v52 = vld [vmem:[%s10786_s1 + $0x1ec] ss:$20 sps:$4 sm:$0xff]   ;;  %v7435_v56 = vld [vmem:[%s10786_s1 + $0x214] ss:$20 sps:$4 sm:$0xff]   ;;  %v7438_v58 = vld [vmem:[%s10786_s1 + $0x210] ss:$20 sps:$4 sm:$0xff]  }
  0x14   :  { %4274 = vmatprep.subr.bf16.mxu0 %v7385_v20  ;;  %4618 = vmatprep.subr.bf16.mxu1 %v7387_v21  ;;  %v7431_v53 = vld [vmem:[%s10786_s1 + $0x1e0] ss:$20 sps:$4 sm:$0xff]   ;;  %v7441_v60 = vld [vmem:[%s10786_s1 + $0x23c] ss:$20 sps:$4 sm:$0xff]   ;;  %v7447_v0 = vld [vmem:[%s10786_s1 + $0x264] ss:$20 sps:$4 sm:$0xff]  }
  0x15   :  { %4296 = vmatprep.mubr.bf16.mxu0 %v8549_v50  ;;  %4640 = vmatprep.mubr.bf16.mxu1 %v8549_v50  ;;  %v7433_v55 = vld [vmem:[%s10786_s1 + $0x20c] ss:$20 sps:$4 sm:$0xff]   ;;  %v7439_v59 = vld [vmem:[%s10786_s1 + $0x234] ss:$20 sps:$4 sm:$0xff]   ;;  %v7443_v61 = vld [vmem:[%s10786_s1 + $0x230] ss:$20 sps:$4 sm:$0xff]  }
  0x16   :  { %v7445_v63 = vld [vmem:[%s10786_s1 + $0x25c] ss:$20 sps:$4 sm:$0xff]   ;;  %v7449_v1 = vld [vmem:[%s10786_s1 + $0x258] ss:$20 sps:$4 sm:$0xff]   ;;  %v7450_v2 = vld [vmem:[%s10786_s1 + $0x260] ss:$20 sps:$4 sm:$0xff]  }
  0x17   :  { %4275 = vmatpush1.bf16.msra.mxu0 %v7389_v22  ;;  %4619 = vmatpush1.bf16.msra.mxu1 %v7390_v23  ;;  %v7453_v3 = vld [vmem:[%s10786_s1 + $0x284] ss:$20 sps:$4 sm:$0xff]   ;;  %v7456_v4 = vld [vmem:[%s10786_s1 + $0x28c] ss:$20 sps:$4 sm:$0xff]   ;;  %v7454_v7 = vld [vmem:[%s10786_s1 + $0x288] ss:$20 sps:$4 sm:$0xff]  }
  0x18   :  { %4276 = vmatprep.subr.bf16.mxu0 %v7391_v24  ;;  %4620 = vmatprep.subr.bf16.mxu1 %v7393_v25  ;;  %v7451_v6 = vld [vmem:[%s10786_s1 + $0x280] ss:$20 sps:$4 sm:$0xff]   ;;  %v7457_v10 = vld [vmem:[%s10786_s1 + $0x2a8] ss:$20 sps:$4 sm:$0xff]   ;;  %v7460_v11 = vld [vmem:[%s10786_s1 + $0x2b0] ss:$20 sps:$4 sm:$0xff]  }
  0x19   :  { %v7459_v8 = vld [vmem:[%s10786_s1 + $0x2ac] ss:$20 sps:$4 sm:$0xff]   ;;  %v7462_v9 = vld [vmem:[%s10786_s1 + $0x2b4] ss:$20 sps:$4 sm:$0xff]   ;;  %v7468_v13 = vld [vmem:[%s10786_s1 + $0x2dc] ss:$20 sps:$4 sm:$0xff]  }
  0x1a   :  { %v7465_v12 = vld [vmem:[%s10786_s1 + $0x2d4] ss:$20 sps:$4 sm:$0xff]   ;;  %v7463_v14 = vld [vmem:[%s10786_s1 + $0x2d0] ss:$20 sps:$4 sm:$0xff]   ;;  %v7466_v15 = vld [vmem:[%s10786_s1 + $0x2d8] ss:$20 sps:$4 sm:$0xff]  }
  0x1b   :  { %4277 = vmatpush1.bf16.msra.mxu0 %v7395_v26  ;;  %4621 = vmatpush1.bf16.msra.mxu1 %v7396_v27  ;;  %v7471_v16 = vld [vmem:[%s10786_s1 + $0x2fc] ss:$20 sps:$4 sm:$0xff]   ;;  %v7474_v17 = vld [vmem:[%s10786_s1 + $0x304] ss:$20 sps:$4 sm:$0xff]   ;;  %v7472_v19 = vld [vmem:[%s10786_s1 + $0x300] ss:$20 sps:$4 sm:$0xff]  }
  0x1c   :  { %4278 = vmatprep.subr.bf16.mxu0 %v7397_v28  ;;  %4622 = vmatprep.subr.bf16.mxu1 %v7399_v29  ;;  %v7469_v18 = vld [vmem:[%s10786_s1 + $0x2f8] ss:$20 sps:$4 sm:$0xff]   ;;  %v7475_v22 = vld [vmem:[%s10786_s1 + $0x320] ss:$20 sps:$4 sm:$0xff]   ;;  %v7478_v23 = vld [vmem:[%s10786_s1 + $0x328] ss:$20 sps:$4 sm:$0xff]  }
  0x1d   :  { %v7477_v20 = vld [vmem:[%s10786_s1 + $0x324] ss:$20 sps:$4 sm:$0xff]   ;;  %v7480_v21 = vld [vmem:[%s10786_s1 + $0x32c] ss:$20 sps:$4 sm:$0xff]   ;;  %v7486_v25 = vld [vmem:[%s10786_s1 + $0x354] ss:$20 sps:$4 sm:$0xff]  }
  0x1e   :  { %v7483_v24 = vld [vmem:[%s10786_s1 + $0x34c] ss:$20 sps:$4 sm:$0xff]   ;;  %v7481_v26 = vld [vmem:[%s10786_s1 + $0x348] ss:$20 sps:$4 sm:$0xff]   ;;  %v7484_v27 = vld [vmem:[%s10786_s1 + $0x350] ss:$20 sps:$4 sm:$0xff]  }
  0x1f   :  { %4279 = vmatpush1.bf16.msra.mxu0 %v7401_v30  ;;  %4623 = vmatpush1.bf16.msra.mxu1 %v7402_v31  ;;  %v7489_v28 = vld [vmem:[%s10786_s1 + $0x374] ss:$20 sps:$4 sm:$0xff]   ;;  %v7492_v29 = vld [vmem:[%s10786_s1 + $0x37c] ss:$20 sps:$4 sm:$0xff]  }
  0x20   :  { %4280 = vmatprep.subr.bf16.mxu0 %v7403_v32  ;;  %4624 = vmatprep.subr.bf16.mxu1 %v7405_v33  ;;  %v8686_v30 = vld [vmem:[%s10787_s0 + $0x8] sm:$0xff]  ;;  %v7487_v32 = vld [vmem:[%s10786_s1 + $0x370] ss:$20 sps:$4 sm:$0xff]  }
  0x21   :  { %v8691_v31 = vld [vmem:[%s10787_s0 + $0x48] sm:$0xff]  ;;  %v7508_v46 = vld [vmem:[%s10786_s1 + $0x3f0] ss:$20 sps:$4 sm:$0xff]  }
  0x22   :  { %v7490_v33 = vld [vmem:[%s10786_s1 + $0x378] ss:$20 sps:$4 sm:$0xff]   ;;  %v7513_v47 = vld [vmem:[%s10786_s1 + $0x414] ss:$20 sps:$4 sm:$0xff]  }
  0x23   :  { %4281 = vmatpush1.bf16.msra.mxu0 %v7407_v34  ;;  %4625 = vmatpush1.bf16.msra.mxu1 %v7408_v35  ;;  %v8701_v34 = vcombine.high %v8686_v30, %v8691_v31  ;;  %v7495_v35 = vld [vmem:[%s10786_s1 + $0x39c] ss:$20 sps:$4 sm:$0xff]  }
  0x24   :  { %4282 = vmatprep.subr.bf16.mxu0 %v7409_v36  ;;  %4626 = vmatprep.subr.bf16.mxu1 %v7411_v37  ;;  %v7498_v36 = vld [vmem:[%s10786_s1 + $0x3a4] ss:$20 sps:$4 sm:$0xff]  }
  0x25   :  { %v7493_v37 = vld [vmem:[%s10786_s1 + $0x398] ss:$20 sps:$4 sm:$0xff]  }
  0x27   :  { %4283 = vmatpush1.bf16.msra.mxu0 %v7413_v38  ;;  %4627 = vmatpush1.bf16.msra.mxu1 %v7414_v39  ;;  %v7496_v38 = vld [vmem:[%s10786_s1 + $0x3a0] ss:$20 sps:$4 sm:$0xff]   ;;  %v7501_v39 = vld [vmem:[%s10786_s1 + $0x3c4] ss:$20 sps:$4 sm:$0xff]  }
  0x28   :  { %4284 = vmatprep.subr.bf16.mxu0 %v7415_v40  ;;  %4628 = vmatprep.subr.bf16.mxu1 %v7417_v41  ;;  %v7504_v40 = vld [vmem:[%s10786_s1 + $0x3cc] ss:$20 sps:$4 sm:$0xff]  }
  0x29   :  { %v7499_v41 = vld [vmem:[%s10786_s1 + $0x3c0] ss:$20 sps:$4 sm:$0xff]  }
  0x2b   :  { %4285 = vmatpush1.bf16.msra.mxu0 %v7419_v42  ;;  %4629 = vmatpush1.bf16.msra.mxu1 %v7420_v43  ;;  %v7502_v42 = vld [vmem:[%s10786_s1 + $0x3c8] ss:$20 sps:$4 sm:$0xff]   ;;  %v7507_v43 = vld [vmem:[%s10786_s1 + $0x3ec] ss:$20 sps:$4 sm:$0xff]  }
  0x2c   :  { %4286 = vmatprep.subr.bf16.mxu0 %v7421_v44  ;;  %4630 = vmatprep.subr.bf16.mxu1 %v7423_v45  ;;  %v7510_v44 = vld [vmem:[%s10786_s1 + $0x3f4] ss:$20 sps:$4 sm:$0xff]  }
  0x2d   :  { %v7505_v45 = vld [vmem:[%s10786_s1 + $0x3e8] ss:$20 sps:$4 sm:$0xff]  }
  0x2f   :  { %4287 = vmatpush1.bf16.msra.mxu0 %v7425_v48  ;;  %4631 = vmatpush1.bf16.msra.mxu1 %v7426_v49  ;;  %v7516_v48 = vld [vmem:[%s10786_s1 + $0x41c] ss:$20 sps:$4 sm:$0xff]  }
  0x30   :  { %4288 = vmatprep.subr.bf16.mxu0 %v7427_v51  ;;  %4632 = vmatprep.subr.bf16.mxu1 %v7429_v52  ;;  %v7511_v49 = vld [vmem:[%s10786_s1 + $0x410] ss:$20 sps:$4 sm:$0xff]   ;;  %v7514_v51 = vld [vmem:[%s10786_s1 + $0x418] ss:$20 sps:$4 sm:$0xff]  }
  0x31   :  { %v7519_v52 = vld [vmem:[%s10786_s1 + $0x43c] ss:$20 sps:$4 sm:$0xff]  }
  0x33   :  { %4289 = vmatpush1.bf16.msra.mxu0 %v7431_v53  ;;  %4633 = vmatpush1.bf16.msra.mxu1 %v7432_v54  ;;  %v7522_v53 = vld [vmem:[%s10786_s1 + $0x444] ss:$20 sps:$4 sm:$0xff]  }
  0x34   :  { %4290 = vmatprep.subr.bf16.mxu0 %v7433_v55  ;;  %4634 = vmatprep.subr.bf16.mxu1 %v7435_v56  ;;  %v7517_v54 = vld [vmem:[%s10786_s1 + $0x438] ss:$20 sps:$4 sm:$0xff]   ;;  %v7520_v55 = vld [vmem:[%s10786_s1 + $0x440] ss:$20 sps:$4 sm:$0xff]  }
  0x35   :  { %v7525_v56 = vld [vmem:[%s10786_s1 + $0x464] ss:$20 sps:$4 sm:$0xff]  }
  0x37   :  { %4291 = vmatpush1.bf16.msra.mxu0 %v7437_v57  ;;  %4635 = vmatpush1.bf16.msra.mxu1 %v7438_v58  ;;  %v7528_v57 = vld [vmem:[%s10786_s1 + $0x46c] ss:$20 sps:$4 sm:$0xff]  }
  0x38   :  { %4292 = vmatprep.subr.bf16.mxu0 %v7439_v59  ;;  %4636 = vmatprep.subr.bf16.mxu1 %v7441_v60  ;;  %v7523_v58 = vld [vmem:[%s10786_s1 + $0x460] ss:$20 sps:$4 sm:$0xff]   ;;  %v7526_v59 = vld [vmem:[%s10786_s1 + $0x468] ss:$20 sps:$4 sm:$0xff]  }
  0x39   :  { %v7531_v60 = vld [vmem:[%s10786_s1 + $0x48c] ss:$20 sps:$4 sm:$0xff]  }
  0x3b   :  { %4293 = vmatpush1.bf16.msra.mxu0 %v7443_v61  ;;  %4637 = vmatpush1.bf16.msra.mxu1 %v7444_v62  ;;  %v7534_v61 = vld [vmem:[%s10786_s1 + $0x494] ss:$20 sps:$4 sm:$0xff]  }
  0x3c   :  { %4294 = vmatprep.subr.bf16.mxu0 %v7445_v63  ;;  %4638 = vmatprep.subr.bf16.mxu1 %v7447_v0  ;;  %v7529_v62 = vld [vmem:[%s10786_s1 + $0x488] ss:$20 sps:$4 sm:$0xff]   ;;  %v7532_v63 = vld [vmem:[%s10786_s1 + $0x490] ss:$20 sps:$4 sm:$0xff]  }
  0x3d   :  { %v7537_v0 = vld [vmem:[%s10786_s1 + $0x4b4] ss:$20 sps:$4 sm:$0xff]  }
  0x3f   :  { %4295 = vmatpush1.bf16.msra.mxu0 %v7449_v1  ;;  %4639 = vmatpush1.bf16.msra.mxu1 %v7450_v2  ;;  %v7540_v1 = vld [vmem:[%s10786_s1 + $0x4bc] ss:$20 sps:$4 sm:$0xff]  }
  0x40   :  { %4307 = vmatprep.subr.bf16.mxu0 %v7453_v3  ;;  %4651 = vmatprep.subr.bf16.mxu1 %v7456_v4  ;;  %v7535_v2 = vld [vmem:[%s10786_s1 + $0x4b0] ss:$20 sps:$4 sm:$0xff]   ;;  %v7538_v3 = vld [vmem:[%s10786_s1 + $0x4b8] ss:$20 sps:$4 sm:$0xff]  }
  0x41   :  { %v7543_v4 = vld [vmem:[%s10786_s1 + $0x4dc] ss:$20 sps:$4 sm:$0xff]  }
  0x42   :  { %4297 = vmatmul.mubr.bf16.vlgmr.msra.gmra.mrb[0].mxu0 %v8607_v5  ;;  %4641 = vmatmul.mubr.bf16.vlgmr.msra.gmra.mrb[0].mxu1 %v8607_v5 }
  0x43   :  { %4308 = vmatpush1.bf16.msra.mxu0 %v7451_v6  ;;  %4652 = vmatpush1.bf16.msra.mxu1 %v7454_v7  ;;  %v7546_v6 = vld [vmem:[%s10786_s1 + $0x4e4] ss:$20 sps:$4 sm:$0xff]  }
  0x44   :  { %4309 = vmatprep.subr.bf16.mxu0 %v7459_v8  ;;  %4653 = vmatprep.subr.bf16.mxu1 %v7462_v9  ;;  %v7541_v7 = vld [vmem:[%s10786_s1 + $0x4d8] ss:$20 sps:$4 sm:$0xff]   ;;  %v7544_v8 = vld [vmem:[%s10786_s1 + $0x4e0] ss:$20 sps:$4 sm:$0xff]  }
  0x45   :  { %4339 = vmatprep.mubr.bf16.mxu0 %v8701_v34  ;;  %4683 = vmatprep.mubr.bf16.mxu1 %v8701_v34  ;;  %v7549_v9 = vld [vmem:[%s10786_s1 + $0x504] ss:$20 sps:$4 sm:$0xff]  }
  0x47   :  { %4310 = vmatpush1.bf16.msra.mxu0 %v7457_v10  ;;  %4654 = vmatpush1.bf16.msra.mxu1 %v7460_v11  ;;  %v7552_v10 = vld [vmem:[%s10786_s1 + $0x50c] ss:$20 sps:$4 sm:$0xff]   ;;  %v8821_v11 = vcombine.low %v8686_v30, %v8691_v31 }
  0x48   :  { %4311 = vmatprep.subr.bf16.mxu0 %v7465_v12  ;;  %4655 = vmatprep.subr.bf16.mxu1 %v7468_v13  ;;  %v7547_v12 = vld [vmem:[%s10786_s1 + $0x500] ss:$20 sps:$4 sm:$0xff]   ;;  %v7550_v13 = vld [vmem:[%s10786_s1 + $0x508] ss:$20 sps:$4 sm:$0xff]  }
  0x49   :  { %v7576_v30 = vld [vmem:[%s10786_s1 + $0x5ac] ss:$20 sps:$4 sm:$0xff]  }
  0x4a   :  { %v7571_v31 = vld [vmem:[%s10786_s1 + $0x5a0] ss:$20 sps:$4 sm:$0xff]  }
  0x4b   :  { %4312 = vmatpush1.bf16.msra.mxu0 %v7463_v14  ;;  %4656 = vmatpush1.bf16.msra.mxu1 %v7466_v15  ;;  %v7555_v14 = vld [vmem:[%s10786_s1 + $0x52c] ss:$20 sps:$4 sm:$0xff]   ;;  %v7558_v15 = vld [vmem:[%s10786_s1 + $0x534] ss:$20 sps:$4 sm:$0xff]  }
  0x4c   :  { %4313 = vmatprep.subr.bf16.mxu0 %v7471_v16  ;;  %4657 = vmatprep.subr.bf16.mxu1 %v7474_v17  ;;  %v8838_v16 = vld [vmem:[%s10787_s0 + $0x10] sm:$0xff] }
  0x4d   :  { %v8843_v17 = vld [vmem:[%s10787_s0 + $0x50] sm:$0xff] }
  0x4f   :  { %4314 = vmatpush1.bf16.msra.mxu0 %v7469_v18  ;;  %4658 = vmatpush1.bf16.msra.mxu1 %v7472_v19  ;;  %v8847_v18 = vcombine.high %v8838_v16, %v8843_v17  ;;  %v7553_v19 = vld [vmem:[%s10786_s1 + $0x528] ss:$20 sps:$4 sm:$0xff]  }
  0x50   :  { %4315 = vmatprep.subr.bf16.mxu0 %v7477_v20  ;;  %4659 = vmatprep.subr.bf16.mxu1 %v7480_v21  ;;  %v7556_v20 = vld [vmem:[%s10786_s1 + $0x530] ss:$20 sps:$4 sm:$0xff]   ;;  %v7561_v21 = vld [vmem:[%s10786_s1 + $0x554] ss:$20 sps:$4 sm:$0xff]  }
  0x53   :  { %4316 = vmatpush1.bf16.msra.mxu0 %v7475_v22  ;;  %4660 = vmatpush1.bf16.msra.mxu1 %v7478_v23  ;;  %v7564_v22 = vld [vmem:[%s10786_s1 + $0x55c] ss:$20 sps:$4 sm:$0xff]  }
  0x54   :  { %4317 = vmatprep.subr.bf16.mxu0 %v7483_v24  ;;  %4661 = vmatprep.subr.bf16.mxu1 %v7486_v25  ;;  %v7559_v23 = vld [vmem:[%s10786_s1 + $0x550] ss:$20 sps:$4 sm:$0xff]   ;;  %v7562_v24 = vld [vmem:[%s10786_s1 + $0x558] ss:$20 sps:$4 sm:$0xff]  }
  0x55   :  { %v7567_v25 = vld [vmem:[%s10786_s1 + $0x57c] ss:$20 sps:$4 sm:$0xff]  }
  0x57   :  { %4318 = vmatpush1.bf16.msra.mxu0 %v7481_v26  ;;  %4662 = vmatpush1.bf16.msra.mxu1 %v7484_v27  ;;  %v7570_v26 = vld [vmem:[%s10786_s1 + $0x584] ss:$20 sps:$4 sm:$0xff]  }
  0x58   :  { %4319 = vmatprep.subr.bf16.mxu0 %v7489_v28  ;;  %4663 = vmatprep.subr.bf16.mxu1 %v7492_v29  ;;  %v7565_v27 = vld [vmem:[%s10786_s1 + $0x578] ss:$20 sps:$4 sm:$0xff]   ;;  %v7568_v28 = vld [vmem:[%s10786_s1 + $0x580] ss:$20 sps:$4 sm:$0xff]  }
  0x59   :  { %v7573_v29 = vld [vmem:[%s10786_s1 + $0x5a4] ss:$20 sps:$4 sm:$0xff]  }
  0x5b   :  { %4320 = vmatpush1.bf16.msra.mxu0 %v7487_v32  ;;  %4664 = vmatpush1.bf16.msra.mxu1 %v7490_v33  ;;  %v7574_v32 = vld [vmem:[%s10786_s1 + $0x5a8] ss:$20 sps:$4 sm:$0xff]   ;;  %v7579_v33 = vld [vmem:[%s10786_s1 + $0x5cc] ss:$20 sps:$4 sm:$0xff]  }
  0x5c   :  { %4321 = vmatprep.subr.bf16.mxu0 %v7495_v35  ;;  %4665 = vmatprep.subr.bf16.mxu1 %v7498_v36  ;;  %v7582_v35 = vld [vmem:[%s10786_s1 + $0x5d4] ss:$20 sps:$4 sm:$0xff]  }
  0x5d   :  { %v7577_v36 = vld [vmem:[%s10786_s1 + $0x5c8] ss:$20 sps:$4 sm:$0xff]  }
  0x5f   :  { %4322 = vmatpush1.bf16.msra.mxu0 %v7493_v37  ;;  %4666 = vmatpush1.bf16.msra.mxu1 %v7496_v38  ;;  %v7580_v37 = vld [vmem:[%s10786_s1 + $0x5d0] ss:$20 sps:$4 sm:$0xff]   ;;  %v7585_v38 = vld [vmem:[%s10786_s1 + $0x5f4] ss:$20 sps:$4 sm:$0xff]  }
  0x60   :  { %4323 = vmatprep.subr.bf16.mxu0 %v7501_v39  ;;  %4667 = vmatprep.subr.bf16.mxu1 %v7504_v40  ;;  %v7588_v39 = vld [vmem:[%s10786_s1 + $0x5fc] ss:$20 sps:$4 sm:$0xff]  }
  0x61   :  { %v7583_v40 = vld [vmem:[%s10786_s1 + $0x5f0] ss:$20 sps:$4 sm:$0xff]  }
  0x63   :  { %4324 = vmatpush1.bf16.msra.mxu0 %v7499_v41  ;;  %4668 = vmatpush1.bf16.msra.mxu1 %v7502_v42  ;;  %v7586_v41 = vld [vmem:[%s10786_s1 + $0x5f8] ss:$20 sps:$4 sm:$0xff]   ;;  %v7591_v42 = vld [vmem:[%s10786_s1 + $0x61c] ss:$20 sps:$4 sm:$0xff]  }
  0x64   :  { %4325 = vmatprep.subr.bf16.mxu0 %v7507_v43  ;;  %4669 = vmatprep.subr.bf16.mxu1 %v7510_v44  ;;  %v7594_v43 = vld [vmem:[%s10786_s1 + $0x624] ss:$20 sps:$4 sm:$0xff]  }
  0x65   :  { %v7589_v44 = vld [vmem:[%s10786_s1 + $0x618] ss:$20 sps:$4 sm:$0xff]  }
  0x67   :  { %4326 = vmatpush1.bf16.msra.mxu0 %v7505_v45  ;;  %4670 = vmatpush1.bf16.msra.mxu1 %v7508_v46  ;;  %v7592_v45 = vld [vmem:[%s10786_s1 + $0x620] ss:$20 sps:$4 sm:$0xff]   ;;  %v7597_v46 = vld [vmem:[%s10786_s1 + $0x644] ss:$20 sps:$4 sm:$0xff]  }
  0x68   :  { %4327 = vmatprep.subr.bf16.mxu0 %v7513_v47  ;;  %4671 = vmatprep.subr.bf16.mxu1 %v7516_v48  ;;  %v7600_v47 = vld [vmem:[%s10786_s1 + $0x64c] ss:$20 sps:$4 sm:$0xff]  }
  0x69   :  { %v7595_v48 = vld [vmem:[%s10786_s1 + $0x640] ss:$20 sps:$4 sm:$0xff]  }
  0x6b   :  { %4328 = vmatpush1.bf16.msra.mxu0 %v7511_v49  ;;  %4672 = vmatpush1.bf16.msra.mxu1 %v7514_v51  ;;  %v7598_v49 = vld [vmem:[%s10786_s1 + $0x648] ss:$20 sps:$4 sm:$0xff]   ;;  %v7603_v51 = vld [vmem:[%s10786_s1 + $0x66c] ss:$20 sps:$4 sm:$0xff]  }
  0x6c   :  { %4329 = vmatprep.subr.bf16.mxu0 %v7519_v52  ;;  %4673 = vmatprep.subr.bf16.mxu1 %v7522_v53  ;;  %v7606_v52 = vld [vmem:[%s10786_s1 + $0x674] ss:$20 sps:$4 sm:$0xff]  }
  0x6d   :  { %v7601_v53 = vld [vmem:[%s10786_s1 + $0x668] ss:$20 sps:$4 sm:$0xff]  }
  0x6f   :  { %4330 = vmatpush1.bf16.msra.mxu0 %v7517_v54  ;;  %4674 = vmatpush1.bf16.msra.mxu1 %v7520_v55  ;;  %v7604_v54 = vld [vmem:[%s10786_s1 + $0x670] ss:$20 sps:$4 sm:$0xff]   ;;  %v7609_v55 = vld [vmem:[%s10786_s1 + $0x694] ss:$20 sps:$4 sm:$0xff]  }
  0x70   :  { %4331 = vmatprep.subr.bf16.mxu0 %v7525_v56  ;;  %4675 = vmatprep.subr.bf16.mxu1 %v7528_v57  ;;  %v7612_v56 = vld [vmem:[%s10786_s1 + $0x69c] ss:$20 sps:$4 sm:$0xff]  }
  0x71   :  { %v7607_v57 = vld [vmem:[%s10786_s1 + $0x690] ss:$20 sps:$4 sm:$0xff]  }
  0x73   :  { %4332 = vmatpush1.bf16.msra.mxu0 %v7523_v58  ;;  %4676 = vmatpush1.bf16.msra.mxu1 %v7526_v59  ;;  %v7610_v58 = vld [vmem:[%s10786_s1 + $0x698] ss:$20 sps:$4 sm:$0xff]   ;;  %v7615_v59 = vld [vmem:[%s10786_s1 + $0x6bc] ss:$20 sps:$4 sm:$0xff]  }
  0x74   :  { %4333 = vmatprep.subr.bf16.mxu0 %v7531_v60  ;;  %4677 = vmatprep.subr.bf16.mxu1 %v7534_v61  ;;  %v7618_v60 = vld [vmem:[%s10786_s1 + $0x6c4] ss:$20 sps:$4 sm:$0xff]  }
  0x75   :  { %v7613_v61 = vld [vmem:[%s10786_s1 + $0x6b8] ss:$20 sps:$4 sm:$0xff]  }
  0x77   :  { %4334 = vmatpush1.bf16.msra.mxu0 %v7529_v62  ;;  %4678 = vmatpush1.bf16.msra.mxu1 %v7532_v63  ;;  %v7616_v62 = vld [vmem:[%s10786_s1 + $0x6c0] ss:$20 sps:$4 sm:$0xff]   ;;  %v7621_v63 = vld [vmem:[%s10786_s1 + $0x6e4] ss:$20 sps:$4 sm:$0xff]  }
  0x78   :  { %4335 = vmatprep.subr.bf16.mxu0 %v7537_v0  ;;  %4679 = vmatprep.subr.bf16.mxu1 %v7540_v1  ;;  %v7624_v0 = vld [vmem:[%s10786_s1 + $0x6ec] ss:$20 sps:$4 sm:$0xff]  }
  0x79   :  { %v7619_v1 = vld [vmem:[%s10786_s1 + $0x6e0] ss:$20 sps:$4 sm:$0xff]  }
  0x7b   :  { %4336 = vmatpush1.bf16.msra.mxu0 %v7535_v2  ;;  %4680 = vmatpush1.bf16.msra.mxu1 %v7538_v3  ;;  %v7622_v2 = vld [vmem:[%s10786_s1 + $0x6e8] ss:$20 sps:$4 sm:$0xff]   ;;  %v7627_v3 = vld [vmem:[%s10786_s1 + $0x70c] ss:$20 sps:$4 sm:$0xff]  }
  0x7c   :  { %4337 = vmatprep.subr.bf16.mxu0 %v7543_v4  ;;  %4681 = vmatprep.subr.bf16.mxu1 %v7546_v6  ;;  %v7630_v4 = vld [vmem:[%s10786_s1 + $0x714] ss:$20 sps:$4 sm:$0xff]  }
  0x7d   :  { %v7625_v6 = vld [vmem:[%s10786_s1 + $0x708] ss:$20 sps:$4 sm:$0xff]  }
  0x7f   :  { %4338 = vmatpush1.bf16.msra.mxu0 %v7541_v7  ;;  %4682 = vmatpush1.bf16.msra.mxu1 %v7544_v8  ;;  %v7628_v7 = vld [vmem:[%s10786_s1 + $0x710] ss:$20 sps:$4 sm:$0xff]   ;;  %v7633_v8 = vld [vmem:[%s10786_s1 + $0x734] ss:$20 sps:$4 sm:$0xff]  }
  0x80   :  { %4350 = vmatprep.subr.bf16.mxu0 %v7549_v9  ;;  %4694 = vmatprep.subr.bf16.mxu1 %v7552_v10  ;;  %v7636_v9 = vld [vmem:[%s10786_s1 + $0x73c] ss:$20 sps:$4 sm:$0xff]  }
  0x81   :  { %v7631_v10 = vld [vmem:[%s10786_s1 + $0x730] ss:$20 sps:$4 sm:$0xff]  }
  0x82   :  { %4340 = vmatmul.mubr.bf16.vlgmr.msra.gmra.mrb[0].mxu0 %v8821_v11  ;;  %4684 = vmatmul.mubr.bf16.vlgmr.msra.gmra.mrb[0].mxu1 %v8821_v11 }
  0x83   :  { %4351 = vmatpush1.bf16.msra.mxu0 %v7547_v12  ;;  %4695 = vmatpush1.bf16.msra.mxu1 %v7550_v13  ;;  %v7634_v12 = vld [vmem:[%s10786_s1 + $0x738] ss:$20 sps:$4 sm:$0xff]   ;;  %v7639_v13 = vld [vmem:[%s10786_s1 + $0x75c] ss:$20 sps:$4 sm:$0xff]  }
  0x84   :  { %4352 = vmatprep.subr.bf16.mxu0 %v7555_v14  ;;  %4696 = vmatprep.subr.bf16.mxu1 %v7558_v15  ;;  %v7642_v14 = vld [vmem:[%s10786_s1 + $0x764] ss:$20 sps:$4 sm:$0xff]  }
  0x85   :  { %4382 = vmatprep.mubr.bf16.mxu0 %v8847_v18  ;;  %4726 = vmatprep.mubr.bf16.mxu1 %v8847_v18  ;;  %v7637_v15 = vld [vmem:[%s10786_s1 + $0x758] ss:$20 sps:$4 sm:$0xff]  }
  0x87   :  { %4353 = vmatpush1.bf16.msra.mxu0 %v7553_v19  ;;  %4697 = vmatpush1.bf16.msra.mxu1 %v7556_v20  ;;  %v7640_v19 = vld [vmem:[%s10786_s1 + $0x760] ss:$20 sps:$4 sm:$0xff]   ;;  %v7645_v20 = vld [vmem:[%s10786_s1 + $0x784] ss:$20 sps:$4 sm:$0xff]  }
  0x88   :  { %4354 = vmatprep.subr.bf16.mxu0 %v7561_v21  ;;  %4698 = vmatprep.subr.bf16.mxu1 %v7564_v22  ;;  %v7648_v21 = vld [vmem:[%s10786_s1 + $0x78c] ss:$20 sps:$4 sm:$0xff]  }
  0x89   :  { %v7643_v22 = vld [vmem:[%s10786_s1 + $0x780] ss:$20 sps:$4 sm:$0xff]  }
  0x8b   :  { %4355 = vmatpush1.bf16.msra.mxu0 %v7559_v23  ;;  %4699 = vmatpush1.bf16.msra.mxu1 %v7562_v24  ;;  %v7646_v23 = vld [vmem:[%s10786_s1 + $0x788] ss:$20 sps:$4 sm:$0xff]   ;;  %v9041_v24 = vcombine.low %v8838_v16, %v8843_v17 }
  0x8c   :  { %4356 = vmatprep.subr.bf16.mxu0 %v7567_v25  ;;  %4700 = vmatprep.subr.bf16.mxu1 %v7570_v26  ;;  %v9046_v25 = vld [vmem:[%s10787_s0 + $0x18] sm:$0xff]  ;;  %v7654_v16 = vld [vmem:[%s10786_s1 + $0x7b4] ss:$20 sps:$4 sm:$0xff]  }
  0x8d   :  { %v9051_v26 = vld [vmem:[%s10787_s0 + $0x58] sm:$0xff] }
  0x8e   :  { %v9061_v17 = vcombine.high %v9046_v25, %v9051_v26 }
  0x8f   :  { %4357 = vmatpush1.bf16.msra.mxu0 %v7565_v27  ;;  %4701 = vmatpush1.bf16.msra.mxu1 %v7568_v28  ;;  %v7651_v27 = vld [vmem:[%s10786_s1 + $0x7ac] ss:$20 sps:$4 sm:$0xff]   ;;  %v7649_v28 = vld [vmem:[%s10786_s1 + $0x7a8] ss:$20 sps:$4 sm:$0xff]  }
  0x90   :  { %4358 = vmatprep.subr.bf16.mxu0 %v7573_v29  ;;  %4702 = vmatprep.subr.bf16.mxu1 %v7576_v30  ;;  %v7652_v29 = vld [vmem:[%s10786_s1 + $0x7b0] ss:$20 sps:$4 sm:$0xff]   ;;  %v7657_v30 = vld [vmem:[%s10786_s1 + $0x7d4] ss:$20 sps:$4 sm:$0xff]  }
  0x93   :  { %4359 = vmatpush1.bf16.msra.mxu0 %v7571_v31  ;;  %4703 = vmatpush1.bf16.msra.mxu1 %v7574_v32  ;;  %v7660_v31 = vld [vmem:[%s10786_s1 + $0x7dc] ss:$20 sps:$4 sm:$0xff]  }
  0x94   :  { %4360 = vmatprep.subr.bf16.mxu0 %v7579_v33  ;;  %4704 = vmatprep.subr.bf16.mxu1 %v7582_v35  ;;  %v7655_v32 = vld [vmem:[%s10786_s1 + $0x7d0] ss:$20 sps:$4 sm:$0xff]   ;;  %v7658_v33 = vld [vmem:[%s10786_s1 + $0x7d8] ss:$20 sps:$4 sm:$0xff]  }
  0x95   :  { %v7663_v35 = vld [vmem:[%s10786_s1 + $0x7fc] ss:$20 sps:$4 sm:$0xff]  }
  0x97   :  { %4361 = vmatpush1.bf16.msra.mxu0 %v7577_v36  ;;  %4705 = vmatpush1.bf16.msra.mxu1 %v7580_v37  ;;  %v7666_v36 = vld [vmem:[%s10786_s1 + $0x804] ss:$20 sps:$4 sm:$0xff]  }
  0x98   :  { %4362 = vmatprep.subr.bf16.mxu0 %v7585_v38  ;;  %4706 = vmatprep.subr.bf16.mxu1 %v7588_v39  ;;  %v7661_v37 = vld [vmem:[%s10786_s1 + $0x7f8] ss:$20 sps:$4 sm:$0xff]   ;;  %v7664_v38 = vld [vmem:[%s10786_s1 + $0x800] ss:$20 sps:$4 sm:$0xff]  }
  0x99   :  { %v7669_v39 = vld [vmem:[%s10786_s1 + $0x824] ss:$20 sps:$4 sm:$0xff]  }
  0x9b   :  { %4363 = vmatpush1.bf16.msra.mxu0 %v7583_v40  ;;  %4707 = vmatpush1.bf16.msra.mxu1 %v7586_v41  ;;  %v7672_v40 = vld [vmem:[%s10786_s1 + $0x82c] ss:$20 sps:$4 sm:$0xff]  }
  0x9c   :  { %4364 = vmatprep.subr.bf16.mxu0 %v7591_v42  ;;  %4708 = vmatprep.subr.bf16.mxu1 %v7594_v43  ;;  %v7667_v41 = vld [vmem:[%s10786_s1 + $0x820] ss:$20 sps:$4 sm:$0xff]   ;;  %v7670_v42 = vld [vmem:[%s10786_s1 + $0x828] ss:$20 sps:$4 sm:$0xff]  }
  0x9d   :  { %v7675_v43 = vld [vmem:[%s10786_s1 + $0x84c] ss:$20 sps:$4 sm:$0xff]  }
  0x9f   :  { %4365 = vmatpush1.bf16.msra.mxu0 %v7589_v44  ;;  %4709 = vmatpush1.bf16.msra.mxu1 %v7592_v45  ;;  %v7678_v44 = vld [vmem:[%s10786_s1 + $0x854] ss:$20 sps:$4 sm:$0xff]  }
  0xa0   :  { %4366 = vmatprep.subr.bf16.mxu0 %v7597_v46  ;;  %4710 = vmatprep.subr.bf16.mxu1 %v7600_v47  ;;  %v7673_v45 = vld [vmem:[%s10786_s1 + $0x848] ss:$20 sps:$4 sm:$0xff]   ;;  %v7676_v46 = vld [vmem:[%s10786_s1 + $0x850] ss:$20 sps:$4 sm:$0xff]  }
  0xa1   :  { %v7681_v47 = vld [vmem:[%s10786_s1 + $0x874] ss:$20 sps:$4 sm:$0xff]  }
  0xa3   :  { %4367 = vmatpush1.bf16.msra.mxu0 %v7595_v48  ;;  %4711 = vmatpush1.bf16.msra.mxu1 %v7598_v49  ;;  %v7684_v48 = vld [vmem:[%s10786_s1 + $0x87c] ss:$20 sps:$4 sm:$0xff]  }
  0xa4   :  { %4368 = vmatprep.subr.bf16.mxu0 %v7603_v51  ;;  %4712 = vmatprep.subr.bf16.mxu1 %v7606_v52  ;;  %v7679_v49 = vld [vmem:[%s10786_s1 + $0x870] ss:$20 sps:$4 sm:$0xff]   ;;  %v7682_v51 = vld [vmem:[%s10786_s1 + $0x878] ss:$20 sps:$4 sm:$0xff]  }
  0xa5   :  { %v7687_v52 = vld [vmem:[%s10786_s1 + $0x89c] ss:$20 sps:$4 sm:$0xff]  }
  0xa7   :  { %4369 = vmatpush1.bf16.msra.mxu0 %v7601_v53  ;;  %4713 = vmatpush1.bf16.msra.mxu1 %v7604_v54  ;;  %v7690_v53 = vld [vmem:[%s10786_s1 + $0x8a4] ss:$20 sps:$4 sm:$0xff]  }
  0xa8   :  { %4370 = vmatprep.subr.bf16.mxu0 %v7609_v55  ;;  %4714 = vmatprep.subr.bf16.mxu1 %v7612_v56  ;;  %v7685_v54 = vld [vmem:[%s10786_s1 + $0x898] ss:$20 sps:$4 sm:$0xff]   ;;  %v7688_v55 = vld [vmem:[%s10786_s1 + $0x8a0] ss:$20 sps:$4 sm:$0xff]  }
  0xa9   :  { %v7693_v56 = vld [vmem:[%s10786_s1 + $0x8c4] ss:$20 sps:$4 sm:$0xff]  }
  0xab   :  { %4371 = vmatpush1.bf16.msra.mxu0 %v7607_v57  ;;  %4715 = vmatpush1.bf16.msra.mxu1 %v7610_v58  ;;  %v7696_v57 = vld [vmem:[%s10786_s1 + $0x8cc] ss:$20 sps:$4 sm:$0xff]  }
  0xac   :  { %4372 = vmatprep.subr.bf16.mxu0 %v7615_v59  ;;  %4716 = vmatprep.subr.bf16.mxu1 %v7618_v60  ;;  %v7691_v58 = vld [vmem:[%s10786_s1 + $0x8c0] ss:$20 sps:$4 sm:$0xff]   ;;  %v7694_v59 = vld [vmem:[%s10786_s1 + $0x8c8] ss:$20 sps:$4 sm:$0xff]  }
  0xad   :  { %v7699_v60 = vld [vmem:[%s10786_s1 + $0x8ec] ss:$20 sps:$4 sm:$0xff]  }
  0xaf   :  { %4373 = vmatpush1.bf16.msra.mxu0 %v7613_v61  ;;  %4717 = vmatpush1.bf16.msra.mxu1 %v7616_v62  ;;  %v7702_v61 = vld [vmem:[%s10786_s1 + $0x8f4] ss:$20 sps:$4 sm:$0xff]  }
  0xb0   :  { %4374 = vmatprep.subr.bf16.mxu0 %v7621_v63  ;;  %4718 = vmatprep.subr.bf16.mxu1 %v7624_v0  ;;  %v7697_v62 = vld [vmem:[%s10786_s1 + $0x8e8] ss:$20 sps:$4 sm:$0xff]   ;;  %v7700_v63 = vld [vmem:[%s10786_s1 + $0x8f0] ss:$20 sps:$4 sm:$0xff]  }
  0xb1   :  { %v7705_v0 = vld [vmem:[%s10786_s1 + $0x914] ss:$20 sps:$4 sm:$0xff]  }
  0xb3   :  { %4375 = vmatpush1.bf16.msra.mxu0 %v7619_v1  ;;  %4719 = vmatpush1.bf16.msra.mxu1 %v7622_v2  ;;  %v7708_v1 = vld [vmem:[%s10786_s1 + $0x91c] ss:$20 sps:$4 sm:$0xff]  }
  0xb4   :  { %4376 = vmatprep.subr.bf16.mxu0 %v7627_v3  ;;  %4720 = vmatprep.subr.bf16.mxu1 %v7630_v4  ;;  %v7703_v2 = vld [vmem:[%s10786_s1 + $0x910] ss:$20 sps:$4 sm:$0xff]   ;;  %v7706_v3 = vld [vmem:[%s10786_s1 + $0x918] ss:$20 sps:$4 sm:$0xff]  }
  0xb5   :  { %v7711_v4 = vld [vmem:[%s10786_s1 + $0x93c] ss:$20 sps:$4 sm:$0xff]  }
  0xb7   :  { %4377 = vmatpush1.bf16.msra.mxu0 %v7625_v6  ;;  %4721 = vmatpush1.bf16.msra.mxu1 %v7628_v7  ;;  %v7714_v6 = vld [vmem:[%s10786_s1 + $0x944] ss:$20 sps:$4 sm:$0xff]  }
  0xb8   :  { %4378 = vmatprep.subr.bf16.mxu0 %v7633_v8  ;;  %4722 = vmatprep.subr.bf16.mxu1 %v7636_v9  ;;  %v7709_v7 = vld [vmem:[%s10786_s1 + $0x938] ss:$20 sps:$4 sm:$0xff]   ;;  %v7712_v8 = vld [vmem:[%s10786_s1 + $0x940] ss:$20 sps:$4 sm:$0xff]  }
  0xb9   :  { %v7717_v9 = vld [vmem:[%s10786_s1 + $0x964] ss:$20 sps:$4 sm:$0xff]  }
  0xbb   :  { %4379 = vmatpush1.bf16.msra.mxu0 %v7631_v10  ;;  %4723 = vmatpush1.bf16.msra.mxu1 %v7634_v12  ;;  %v7720_v10 = vld [vmem:[%s10786_s1 + $0x96c] ss:$20 sps:$4 sm:$0xff]  }
  0xbc   :  { %4380 = vmatprep.subr.bf16.mxu0 %v7639_v13  ;;  %4724 = vmatprep.subr.bf16.mxu1 %v7642_v14  ;;  %v7715_v12 = vld [vmem:[%s10786_s1 + $0x960] ss:$20 sps:$4 sm:$0xff]   ;;  %v7718_v13 = vld [vmem:[%s10786_s1 + $0x968] ss:$20 sps:$4 sm:$0xff]  }
  0xbd   :  { %v7723_v14 = vld [vmem:[%s10786_s1 + $0x98c] ss:$20 sps:$4 sm:$0xff]  }
  0xbf   :  { %4381 = vmatpush1.bf16.msra.mxu0 %v7637_v15  ;;  %4725 = vmatpush1.bf16.msra.mxu1 %v7640_v19  ;;  %v7726_v15 = vld [vmem:[%s10786_s1 + $0x994] ss:$20 sps:$4 sm:$0xff]  }
  0xc0   :  { %4393 = vmatprep.subr.bf16.mxu0 %v7645_v20  ;;  %4737 = vmatprep.subr.bf16.mxu1 %v7648_v21  ;;  %v7721_v19 = vld [vmem:[%s10786_s1 + $0x988] ss:$20 sps:$4 sm:$0xff]   ;;  %v7724_v20 = vld [vmem:[%s10786_s1 + $0x990] ss:$20 sps:$4 sm:$0xff]  }
  0xc1   :  { %v7729_v21 = vld [vmem:[%s10786_s1 + $0x9b4] ss:$20 sps:$4 sm:$0xff]  }
  0xc2   :  { %4383 = vmatmul.mubr.bf16.vlgmr.msra.gmra.mrb[0].mxu0 %v9041_v24  ;;  %4727 = vmatmul.mubr.bf16.vlgmr.msra.gmra.mrb[0].mxu1 %v9041_v24 }
  0xc3   :  { %4394 = vmatpush1.bf16.msra.mxu0 %v7643_v22  ;;  %4738 = vmatpush1.bf16.msra.mxu1 %v7646_v23  ;;  %v7732_v22 = vld [vmem:[%s10786_s1 + $0x9bc] ss:$20 sps:$4 sm:$0xff]  }
  0xc4   :  { %4395 = vmatprep.subr.bf16.mxu0 %v7651_v27  ;;  %4739 = vmatprep.subr.bf16.mxu1 %v7654_v16  ;;  %v7727_v23 = vld [vmem:[%s10786_s1 + $0x9b0] ss:$20 sps:$4 sm:$0xff]   ;;  %v7730_v27 = vld [vmem:[%s10786_s1 + $0x9b8] ss:$20 sps:$4 sm:$0xff]  }
  0xc5   :  { %4425 = vmatprep.mubr.bf16.mxu0 %v9061_v17  ;;  %4769 = vmatprep.mubr.bf16.mxu1 %v9061_v17  ;;  %v7735_v16 = vld [vmem:[%s10786_s1 + $0x9dc] ss:$20 sps:$4 sm:$0xff]  }
  0xc7   :  { %4396 = vmatpush1.bf16.msra.mxu0 %v7649_v28  ;;  %4740 = vmatpush1.bf16.msra.mxu1 %v7652_v29  ;;  %v7738_v28 = vld [vmem:[%s10786_s1 + $0x9e4] ss:$20 sps:$4 sm:$0xff]  }
  0xc8   :  { %4397 = vmatprep.subr.bf16.mxu0 %v7657_v30  ;;  %4741 = vmatprep.subr.bf16.mxu1 %v7660_v31  ;;  %v7733_v29 = vld [vmem:[%s10786_s1 + $0x9d8] ss:$20 sps:$4 sm:$0xff]   ;;  %v7736_v30 = vld [vmem:[%s10786_s1 + $0x9e0] ss:$20 sps:$4 sm:$0xff]  }
  0xc9   :  { %v7741_v31 = vld [vmem:[%s10786_s1 + $0xa04] ss:$20 sps:$4 sm:$0xff]  }
  0xcb   :  { %4398 = vmatpush1.bf16.msra.mxu0 %v7655_v32  ;;  %4742 = vmatpush1.bf16.msra.mxu1 %v7658_v33  ;;  %v7744_v32 = vld [vmem:[%s10786_s1 + $0xa0c] ss:$20 sps:$4 sm:$0xff]  }
  0xcc   :  { %4399 = vmatprep.subr.bf16.mxu0 %v7663_v35  ;;  %4743 = vmatprep.subr.bf16.mxu1 %v7666_v36  ;;  %v9250_v33 = vld [vmem:[%s10787_s0 + $0x20] sm:$0xff]  ;;  %v9254_v35 = vcombine.low %v9046_v25, %v9051_v26  ;;  %v7750_v26 = vld [vmem:[%s10786_s1 + $0xa34] ss:$20 sps:$4 sm:$0xff]  }
  0xcd   :  { %v9259_v36 = vld [vmem:[%s10787_s0 + $0x60] sm:$0xff] }
  0xce   :  { %v7747_v25 = vld [vmem:[%s10786_s1 + $0xa2c] ss:$20 sps:$4 sm:$0xff]  }
  0xcf   :  { %4400 = vmatpush1.bf16.msra.mxu0 %v7661_v37  ;;  %4744 = vmatpush1.bf16.msra.mxu1 %v7664_v38  ;;  %v7739_v37 = vld [vmem:[%s10786_s1 + $0xa00] ss:$20 sps:$4 sm:$0xff]   ;;  %v7742_v38 = vld [vmem:[%s10786_s1 + $0xa08] ss:$20 sps:$4 sm:$0xff]  }
  0xd0   :  { %4401 = vmatprep.subr.bf16.mxu0 %v7669_v39  ;;  %4745 = vmatprep.subr.bf16.mxu1 %v7672_v40  ;;  %v9275_v39 = vcombine.high %v9250_v33, %v9259_v36  ;;  %v7745_v40 = vld [vmem:[%s10786_s1 + $0xa28] ss:$20 sps:$4 sm:$0xff]  }
  0xd3   :  { %4402 = vmatpush1.bf16.msra.mxu0 %v7667_v41  ;;  %4746 = vmatpush1.bf16.msra.mxu1 %v7670_v42  ;;  %v7748_v41 = vld [vmem:[%s10786_s1 + $0xa30] ss:$20 sps:$4 sm:$0xff]   ;;  %v7753_v42 = vld [vmem:[%s10786_s1 + $0xa54] ss:$20 sps:$4 sm:$0xff]  }
  0xd4   :  { %4403 = vmatprep.subr.bf16.mxu0 %v7675_v43  ;;  %4747 = vmatprep.subr.bf16.mxu1 %v7678_v44  ;;  %v7756_v43 = vld [vmem:[%s10786_s1 + $0xa5c] ss:$20 sps:$4 sm:$0xff]  }
  0xd5   :  { %v7751_v44 = vld [vmem:[%s10786_s1 + $0xa50] ss:$20 sps:$4 sm:$0xff]  }
  0xd7   :  { %4404 = vmatpush1.bf16.msra.mxu0 %v7673_v45  ;;  %4748 = vmatpush1.bf16.msra.mxu1 %v7676_v46  ;;  %v7754_v45 = vld [vmem:[%s10786_s1 + $0xa58] ss:$20 sps:$4 sm:$0xff]   ;;  %v7759_v46 = vld [vmem:[%s10786_s1 + $0xa7c] ss:$20 sps:$4 sm:$0xff]  }
  0xd8   :  { %4405 = vmatprep.subr.bf16.mxu0 %v7681_v47  ;;  %4749 = vmatprep.subr.bf16.mxu1 %v7684_v48  ;;  %v7762_v47 = vld [vmem:[%s10786_s1 + $0xa84] ss:$20 sps:$4 sm:$0xff]  }
  0xd9   :  { %v7757_v48 = vld [vmem:[%s10786_s1 + $0xa78] ss:$20 sps:$4 sm:$0xff]  }
  0xdb   :  { %4406 = vmatpush1.bf16.msra.mxu0 %v7679_v49  ;;  %4750 = vmatpush1.bf16.msra.mxu1 %v7682_v51  ;;  %v7760_v49 = vld [vmem:[%s10786_s1 + $0xa80] ss:$20 sps:$4 sm:$0xff]   ;;  %v7765_v51 = vld [vmem:[%s10786_s1 + $0xaa4] ss:$20 sps:$4 sm:$0xff]  }
  0xdc   :  { %4407 = vmatprep.subr.bf16.mxu0 %v7687_v52  ;;  %4751 = vmatprep.subr.bf16.mxu1 %v7690_v53  ;;  %v7768_v52 = vld [vmem:[%s10786_s1 + $0xaac] ss:$20 sps:$4 sm:$0xff]  }
  0xdd   :  { %v7763_v53 = vld [vmem:[%s10786_s1 + $0xaa0] ss:$20 sps:$4 sm:$0xff]  }
  0xdf   :  { %4408 = vmatpush1.bf16.msra.mxu0 %v7685_v54  ;;  %4752 = vmatpush1.bf16.msra.mxu1 %v7688_v55  ;;  %v7766_v54 = vld [vmem:[%s10786_s1 + $0xaa8] ss:$20 sps:$4 sm:$0xff]   ;;  %v7771_v55 = vld [vmem:[%s10786_s1 + $0xacc] ss:$20 sps:$4 sm:$0xff]  }
  0xe0   :  { %4409 = vmatprep.subr.bf16.mxu0 %v7693_v56  ;;  %4753 = vmatprep.subr.bf16.mxu1 %v7696_v57  ;;  %v7774_v56 = vld [vmem:[%s10786_s1 + $0xad4] ss:$20 sps:$4 sm:$0xff]  }
  0xe1   :  { %v7769_v57 = vld [vmem:[%s10786_s1 + $0xac8] ss:$20 sps:$4 sm:$0xff]  }
  0xe3   :  { %4410 = vmatpush1.bf16.msra.mxu0 %v7691_v58  ;;  %4754 = vmatpush1.bf16.msra.mxu1 %v7694_v59  ;;  %v7772_v58 = vld [vmem:[%s10786_s1 + $0xad0] ss:$20 sps:$4 sm:$0xff]   ;;  %v7777_v59 = vld [vmem:[%s10786_s1 + $0xaf4] ss:$20 sps:$4 sm:$0xff]  }
  0xe4   :  { %4411 = vmatprep.subr.bf16.mxu0 %v7699_v60  ;;  %4755 = vmatprep.subr.bf16.mxu1 %v7702_v61  ;;  %v7780_v60 = vld [vmem:[%s10786_s1 + $0xafc] ss:$20 sps:$4 sm:$0xff]  }
  0xe5   :  { %v7775_v61 = vld [vmem:[%s10786_s1 + $0xaf0] ss:$20 sps:$4 sm:$0xff]  }
  0xe7   :  { %4412 = vmatpush1.bf16.msra.mxu0 %v7697_v62  ;;  %4756 = vmatpush1.bf16.msra.mxu1 %v7700_v63  ;;  %v7778_v62 = vld [vmem:[%s10786_s1 + $0xaf8] ss:$20 sps:$4 sm:$0xff]   ;;  %v7783_v63 = vld [vmem:[%s10786_s1 + $0xb1c] ss:$20 sps:$4 sm:$0xff]  }
  0xe8   :  { %4413 = vmatprep.subr.bf16.mxu0 %v7705_v0  ;;  %4757 = vmatprep.subr.bf16.mxu1 %v7708_v1  ;;  %v7786_v0 = vld [vmem:[%s10786_s1 + $0xb24] ss:$20 sps:$4 sm:$0xff]  }
  0xe9   :  { %v7781_v1 = vld [vmem:[%s10786_s1 + $0xb18] ss:$20 sps:$4 sm:$0xff]  }
  0xeb   :  { %4414 = vmatpush1.bf16.msra.mxu0 %v7703_v2  ;;  %4758 = vmatpush1.bf16.msra.mxu1 %v7706_v3  ;;  %v7784_v2 = vld [vmem:[%s10786_s1 + $0xb20] ss:$20 sps:$4 sm:$0xff]   ;;  %v7789_v3 = vld [vmem:[%s10786_s1 + $0xb44] ss:$20 sps:$4 sm:$0xff]  }
  0xec   :  { %4415 = vmatprep.subr.bf16.mxu0 %v7711_v4  ;;  %4759 = vmatprep.subr.bf16.mxu1 %v7714_v6  ;;  %v7792_v4 = vld [vmem:[%s10786_s1 + $0xb4c] ss:$20 sps:$4 sm:$0xff]  }
  0xed   :  { %v7787_v6 = vld [vmem:[%s10786_s1 + $0xb40] ss:$20 sps:$4 sm:$0xff]  }
  0xef   :  { %4416 = vmatpush1.bf16.msra.mxu0 %v7709_v7  ;;  %4760 = vmatpush1.bf16.msra.mxu1 %v7712_v8  ;;  %v7790_v7 = vld [vmem:[%s10786_s1 + $0xb48] ss:$20 sps:$4 sm:$0xff]   ;;  %v7795_v8 = vld [vmem:[%s10786_s1 + $0xb6c] ss:$20 sps:$4 sm:$0xff]  }
  0xf0   :  { %4417 = vmatprep.subr.bf16.mxu0 %v7717_v9  ;;  %4761 = vmatprep.subr.bf16.mxu1 %v7720_v10  ;;  %v7798_v9 = vld [vmem:[%s10786_s1 + $0xb74] ss:$20 sps:$4 sm:$0xff]  }
  0xf1   :  { %v7793_v10 = vld [vmem:[%s10786_s1 + $0xb68] ss:$20 sps:$4 sm:$0xff]  }
  0xf3   :  { %4418 = vmatpush1.bf16.msra.mxu0 %v7715_v12  ;;  %4762 = vmatpush1.bf16.msra.mxu1 %v7718_v13  ;;  %v7796_v12 = vld [vmem:[%s10786_s1 + $0xb70] ss:$20 sps:$4 sm:$0xff]   ;;  %v7801_v13 = vld [vmem:[%s10786_s1 + $0xb94] ss:$20 sps:$4 sm:$0xff]  }
  0xf4   :  { %4419 = vmatprep.subr.bf16.mxu0 %v7723_v14  ;;  %4763 = vmatprep.subr.bf16.mxu1 %v7726_v15  ;;  %v7804_v14 = vld [vmem:[%s10786_s1 + $0xb9c] ss:$20 sps:$4 sm:$0xff]  }
  0xf5   :  { %v7799_v15 = vld [vmem:[%s10786_s1 + $0xb90] ss:$20 sps:$4 sm:$0xff]  }
  0xf7   :  { %4420 = vmatpush1.bf16.msra.mxu0 %v7721_v19  ;;  %4764 = vmatpush1.bf16.msra.mxu1 %v7724_v20  ;;  %v7802_v19 = vld [vmem:[%s10786_s1 + $0xb98] ss:$20 sps:$4 sm:$0xff]   ;;  %v7807_v20 = vld [vmem:[%s10786_s1 + $0xbbc] ss:$20 sps:$4 sm:$0xff]  }
  0xf8   :  { %4421 = vmatprep.subr.bf16.mxu0 %v7729_v21  ;;  %4765 = vmatprep.subr.bf16.mxu1 %v7732_v22  ;;  %v7810_v21 = vld [vmem:[%s10786_s1 + $0xbc4] ss:$20 sps:$4 sm:$0xff]  }
  0xf9   :  { %v7805_v22 = vld [vmem:[%s10786_s1 + $0xbb8] ss:$20 sps:$4 sm:$0xff]  }
  0xfb   :  { %4422 = vmatpush1.bf16.msra.mxu0 %v7727_v23  ;;  %4766 = vmatpush1.bf16.msra.mxu1 %v7730_v27  ;;  %v7808_v23 = vld [vmem:[%s10786_s1 + $0xbc0] ss:$20 sps:$4 sm:$0xff]   ;;  %v7813_v27 = vld [vmem:[%s10786_s1 + $0xbe4] ss:$20 sps:$4 sm:$0xff]  }
  0xfc   :  { %4423 = vmatprep.subr.bf16.mxu0 %v7735_v16  ;;  %4767 = vmatprep.subr.bf16.mxu1 %v7738_v28  ;;  %v7816_v16 = vld [vmem:[%s10786_s1 + $0xbec] ss:$20 sps:$4 sm:$0xff]  }
  0xfd   :  { %v7811_v28 = vld [vmem:[%s10786_s1 + $0xbe0] ss:$20 sps:$4 sm:$0xff]  }
  0xff   :  { %4424 = vmatpush1.bf16.msra.mxu0 %v7733_v29  ;;  %4768 = vmatpush1.bf16.msra.mxu1 %v7736_v30  ;;  %v7814_v29 = vld [vmem:[%s10786_s1 + $0xbe8] ss:$20 sps:$4 sm:$0xff]   ;;  %v7819_v30 = vld [vmem:[%s10786_s1 + $0xc0c] ss:$20 sps:$4 sm:$0xff]  }
 0x100   :  { %4436 = vmatprep.subr.bf16.mxu0 %v7741_v31  ;;  %4780 = vmatprep.subr.bf16.mxu1 %v7744_v32  ;;  %v7822_v31 = vld [vmem:[%s10786_s1 + $0xc14] ss:$20 sps:$4 sm:$0xff]  }
 0x101   :  { %v7817_v32 = vld [vmem:[%s10786_s1 + $0xc08] ss:$20 sps:$4 sm:$0xff]  }
 0x102   :  { %4426 = vmatmul.mubr.bf16.vlgmr.msra.gmra.mrb[0].mxu0 %v9254_v35  ;;  %4770 = vmatmul.mubr.bf16.vlgmr.msra.gmra.mrb[0].mxu1 %v9254_v35 }
 0x103   :  { %4437 = vmatpush1.bf16.msra.mxu0 %v7739_v37  ;;  %4781 = vmatpush1.bf16.msra.mxu1 %v7742_v38  ;;  %v7820_v37 = vld [vmem:[%s10786_s1 + $0xc10] ss:$20 sps:$4 sm:$0xff]   ;;  %v7825_v38 = vld [vmem:[%s10786_s1 + $0xc34] ss:$20 sps:$4 sm:$0xff]  }
 0x104   :  { %4438 = vmatprep.subr.bf16.mxu0 %v7747_v25  ;;  %4782 = vmatprep.subr.bf16.mxu1 %v7750_v26  ;;  %v7828_v25 = vld [vmem:[%s10786_s1 + $0xc3c] ss:$20 sps:$4 sm:$0xff]  }
 0x105   :  { %4468 = vmatprep.mubr.bf16.mxu0 %v9275_v39  ;;  %4812 = vmatprep.mubr.bf16.mxu1 %v9275_v39  ;;  %v7823_v26 = vld [vmem:[%s10786_s1 + $0xc30] ss:$20 sps:$4 sm:$0xff]  }
 0x107   :  { %4439 = vmatpush1.bf16.msra.mxu0 %v7745_v40  ;;  %4783 = vmatpush1.bf16.msra.mxu1 %v7748_v41  ;;  %v7826_v40 = vld [vmem:[%s10786_s1 + $0xc38] ss:$20 sps:$4 sm:$0xff]   ;;  %v7831_v41 = vld [vmem:[%s10786_s1 + $0xc5c] ss:$20 sps:$4 sm:$0xff]  }
 0x108   :  { %4440 = vmatprep.subr.bf16.mxu0 %v7753_v42  ;;  %4784 = vmatprep.subr.bf16.mxu1 %v7756_v43  ;;  %v7834_v42 = vld [vmem:[%s10786_s1 + $0xc64] ss:$20 sps:$4 sm:$0xff]  }
 0x109   :  { %v7829_v43 = vld [vmem:[%s10786_s1 + $0xc58] ss:$20 sps:$4 sm:$0xff]  }
 0x10b   :  { %4441 = vmatpush1.bf16.msra.mxu0 %v7751_v44  ;;  %4785 = vmatpush1.bf16.msra.mxu1 %v7754_v45  ;;  %v7832_v44 = vld [vmem:[%s10786_s1 + $0xc60] ss:$20 sps:$4 sm:$0xff]   ;;  %v7837_v45 = vld [vmem:[%s10786_s1 + $0xc84] ss:$20 sps:$4 sm:$0xff]  }
 0x10c   :  { %4442 = vmatprep.subr.bf16.mxu0 %v7759_v46  ;;  %4786 = vmatprep.subr.bf16.mxu1 %v7762_v47  ;;  %v7840_v46 = vld [vmem:[%s10786_s1 + $0xc8c] ss:$20 sps:$4 sm:$0xff]  }
 0x10d   :  { %v9464_v47 = vld [vmem:[%s10787_s0 + $0x28] sm:$0xff] }
 0x10f   :  { %4443 = vmatpush1.bf16.msra.mxu0 %v7757_v48  ;;  %4787 = vmatpush1.bf16.msra.mxu1 %v7760_v49  ;;  %v9469_v48 = vld [vmem:[%s10787_s0 + $0x68] sm:$0xff]  ;;  %v9473_v49 = vcombine.low %v9250_v33, %v9259_v36 }
 0x110   :  { %4444 = vmatprep.subr.bf16.mxu0 %v7765_v51  ;;  %4788 = vmatprep.subr.bf16.mxu1 %v7768_v52  ;;  %v7835_v51 = vld [vmem:[%s10786_s1 + $0xc80] ss:$20 sps:$4 sm:$0xff]   ;;  %v7838_v52 = vld [vmem:[%s10786_s1 + $0xc88] ss:$20 sps:$4 sm:$0xff]   ;;  %v9489_v36 = vcombine.high %v9464_v47, %v9469_v48 }
 0x111   :  { %v7846_v33 = vld [vmem:[%s10786_s1 + $0xcb4] ss:$20 sps:$4 sm:$0xff]  }
 0x113   :  { %4445 = vmatpush1.bf16.msra.mxu0 %v7763_v53  ;;  %4789 = vmatpush1.bf16.msra.mxu1 %v7766_v54  ;;  %v7843_v53 = vld [vmem:[%s10786_s1 + $0xcac] ss:$20 sps:$4 sm:$0xff]   ;;  %v7841_v54 = vld [vmem:[%s10786_s1 + $0xca8] ss:$20 sps:$4 sm:$0xff]  }
 0x114   :  { %4446 = vmatprep.subr.bf16.mxu0 %v7771_v55  ;;  %4790 = vmatprep.subr.bf16.mxu1 %v7774_v56  ;;  %v7844_v55 = vld [vmem:[%s10786_s1 + $0xcb0] ss:$20 sps:$4 sm:$0xff]   ;;  %v7849_v56 = vld [vmem:[%s10786_s1 + $0xcd4] ss:$20 sps:$4 sm:$0xff]  }
 0x117   :  { %4447 = vmatpush1.bf16.msra.mxu0 %v7769_v57  ;;  %4791 = vmatpush1.bf16.msra.mxu1 %v7772_v58  ;;  %v7852_v57 = vld [vmem:[%s10786_s1 + $0xcdc] ss:$20 sps:$4 sm:$0xff]  }
 0x118   :  { %4448 = vmatprep.subr.bf16.mxu0 %v7777_v59  ;;  %4792 = vmatprep.subr.bf16.mxu1 %v7780_v60  ;;  %v7847_v58 = vld [vmem:[%s10786_s1 + $0xcd0] ss:$20 sps:$4 sm:$0xff]   ;;  %v7850_v59 = vld [vmem:[%s10786_s1 + $0xcd8] ss:$20 sps:$4 sm:$0xff]  }
 0x119   :  { %v7855_v60 = vld [vmem:[%s10786_s1 + $0xcfc] ss:$20 sps:$4 sm:$0xff]  }
 0x11b   :  { %4449 = vmatpush1.bf16.msra.mxu0 %v7775_v61  ;;  %4793 = vmatpush1.bf16.msra.mxu1 %v7778_v62  ;;  %v7858_v61 = vld [vmem:[%s10786_s1 + $0xd04] ss:$20 sps:$4 sm:$0xff]  }
 0x11c   :  { %4450 = vmatprep.subr.bf16.mxu0 %v7783_v63  ;;  %4794 = vmatprep.subr.bf16.mxu1 %v7786_v0  ;;  %v7853_v62 = vld [vmem:[%s10786_s1 + $0xcf8] ss:$20 sps:$4 sm:$0xff]   ;;  %v7856_v63 = vld [vmem:[%s10786_s1 + $0xd00] ss:$20 sps:$4 sm:$0xff]  }
 0x11d   :  { %v7861_v0 = vld [vmem:[%s10786_s1 + $0xd24] ss:$20 sps:$4 sm:$0xff]  }
 0x11f   :  { %4451 = vmatpush1.bf16.msra.mxu0 %v7781_v1  ;;  %4795 = vmatpush1.bf16.msra.mxu1 %v7784_v2  ;;  %v7864_v1 = vld [vmem:[%s10786_s1 + $0xd2c] ss:$20 sps:$4 sm:$0xff]  }
 0x120   :  { %4452 = vmatprep.subr.bf16.mxu0 %v7789_v3  ;;  %4796 = vmatprep.subr.bf16.mxu1 %v7792_v4  ;;  %v7859_v2 = vld [vmem:[%s10786_s1 + $0xd20] ss:$20 sps:$4 sm:$0xff]   ;;  %v7862_v3 = vld [vmem:[%s10786_s1 + $0xd28] ss:$20 sps:$4 sm:$0xff]  }
 0x121   :  { %v7867_v4 = vld [vmem:[%s10786_s1 + $0xd4c] ss:$20 sps:$4 sm:$0xff]  }
 0x123   :  { %4453 = vmatpush1.bf16.msra.mxu0 %v7787_v6  ;;  %4797 = vmatpush1.bf16.msra.mxu1 %v7790_v7  ;;  %v7870_v6 = vld [vmem:[%s10786_s1 + $0xd54] ss:$20 sps:$4 sm:$0xff]  }
 0x124   :  { %4454 = vmatprep.subr.bf16.mxu0 %v7795_v8  ;;  %4798 = vmatprep.subr.bf16.mxu1 %v7798_v9  ;;  %v7865_v7 = vld [vmem:[%s10786_s1 + $0xd48] ss:$20 sps:$4 sm:$0xff]   ;;  %v7868_v8 = vld [vmem:[%s10786_s1 + $0xd50] ss:$20 sps:$4 sm:$0xff]  }
 0x125   :  { %v7873_v9 = vld [vmem:[%s10786_s1 + $0xd74] ss:$20 sps:$4 sm:$0xff]  }
 0x127   :  { %4455 = vmatpush1.bf16.msra.mxu0 %v7793_v10  ;;  %4799 = vmatpush1.bf16.msra.mxu1 %v7796_v12  ;;  %v7876_v10 = vld [vmem:[%s10786_s1 + $0xd7c] ss:$20 sps:$4 sm:$0xff]  }
 0x128   :  { %4456 = vmatprep.subr.bf16.mxu0 %v7801_v13  ;;  %4800 = vmatprep.subr.bf16.mxu1 %v7804_v14  ;;  %v7871_v12 = vld [vmem:[%s10786_s1 + $0xd70] ss:$20 sps:$4 sm:$0xff]   ;;  %v7874_v13 = vld [vmem:[%s10786_s1 + $0xd78] ss:$20 sps:$4 sm:$0xff]  }
 0x129   :  { %v7879_v14 = vld [vmem:[%s10786_s1 + $0xd9c] ss:$20 sps:$4 sm:$0xff]  }
 0x12b   :  { %4457 = vmatpush1.bf16.msra.mxu0 %v7799_v15  ;;  %4801 = vmatpush1.bf16.msra.mxu1 %v7802_v19  ;;  %v7882_v15 = vld [vmem:[%s10786_s1 + $0xda4] ss:$20 sps:$4 sm:$0xff]  }
 0x12c   :  { %4458 = vmatprep.subr.bf16.mxu0 %v7807_v20  ;;  %4802 = vmatprep.subr.bf16.mxu1 %v7810_v21  ;;  %v7877_v19 = vld [vmem:[%s10786_s1 + $0xd98] ss:$20 sps:$4 sm:$0xff]   ;;  %v7880_v20 = vld [vmem:[%s10786_s1 + $0xda0] ss:$20 sps:$4 sm:$0xff]  }
 0x12d   :  { %v7885_v21 = vld [vmem:[%s10786_s1 + $0xdc4] ss:$20 sps:$4 sm:$0xff]  }
 0x12f   :  { %4459 = vmatpush1.bf16.msra.mxu0 %v7805_v22  ;;  %4803 = vmatpush1.bf16.msra.mxu1 %v7808_v23  ;;  %v7888_v22 = vld [vmem:[%s10786_s1 + $0xdcc] ss:$20 sps:$4 sm:$0xff]  }
 0x130   :  { %4460 = vmatprep.subr.bf16.mxu0 %v7813_v27  ;;  %4804 = vmatprep.subr.bf16.mxu1 %v7816_v16  ;;  %v7883_v23 = vld [vmem:[%s10786_s1 + $0xdc0] ss:$20 sps:$4 sm:$0xff]   ;;  %v7886_v27 = vld [vmem:[%s10786_s1 + $0xdc8] ss:$20 sps:$4 sm:$0xff]  }
 0x131   :  { %v7891_v16 = vld [vmem:[%s10786_s1 + $0xdec] ss:$20 sps:$4 sm:$0xff]  }
 0x133   :  { %4461 = vmatpush1.bf16.msra.mxu0 %v7811_v28  ;;  %4805 = vmatpush1.bf16.msra.mxu1 %v7814_v29  ;;  %v7894_v28 = vld [vmem:[%s10786_s1 + $0xdf4] ss:$20 sps:$4 sm:$0xff]  }
 0x134   :  { %4462 = vmatprep.subr.bf16.mxu0 %v7819_v30  ;;  %4806 = vmatprep.subr.bf16.mxu1 %v7822_v31  ;;  %v7889_v29 = vld [vmem:[%s10786_s1 + $0xde8] ss:$20 sps:$4 sm:$0xff]   ;;  %v7892_v30 = vld [vmem:[%s10786_s1 + $0xdf0] ss:$20 sps:$4 sm:$0xff]  }
 0x135   :  { %v7897_v31 = vld [vmem:[%s10786_s1 + $0xe14] ss:$20 sps:$4 sm:$0xff]  }
 0x137   :  { %4463 = vmatpush1.bf16.msra.mxu0 %v7817_v32  ;;  %4807 = vmatpush1.bf16.msra.mxu1 %v7820_v37  ;;  %v7900_v32 = vld [vmem:[%s10786_s1 + $0xe1c] ss:$20 sps:$4 sm:$0xff]  }
 0x138   :  { %4464 = vmatprep.subr.bf16.mxu0 %v7825_v38  ;;  %4808 = vmatprep.subr.bf16.mxu1 %v7828_v25  ;;  %v7895_v37 = vld [vmem:[%s10786_s1 + $0xe10] ss:$20 sps:$4 sm:$0xff]   ;;  %v7898_v38 = vld [vmem:[%s10786_s1 + $0xe18] ss:$20 sps:$4 sm:$0xff]  }
 0x139   :  { %v7903_v25 = vld [vmem:[%s10786_s1 + $0xe3c] ss:$20 sps:$4 sm:$0xff]  }
 0x13b   :  { %4465 = vmatpush1.bf16.msra.mxu0 %v7823_v26  ;;  %4809 = vmatpush1.bf16.msra.mxu1 %v7826_v40  ;;  %v7906_v26 = vld [vmem:[%s10786_s1 + $0xe44] ss:$20 sps:$4 sm:$0xff]  }
 0x13c   :  { %4466 = vmatprep.subr.bf16.mxu0 %v7831_v41  ;;  %4810 = vmatprep.subr.bf16.mxu1 %v7834_v42  ;;  %v7901_v40 = vld [vmem:[%s10786_s1 + $0xe38] ss:$20 sps:$4 sm:$0xff]   ;;  %v7904_v41 = vld [vmem:[%s10786_s1 + $0xe40] ss:$20 sps:$4 sm:$0xff]  }
 0x13d   :  { %v7909_v42 = vld [vmem:[%s10786_s1 + $0xe64] ss:$20 sps:$4 sm:$0xff]  }
 0x13f   :  { %4467 = vmatpush1.bf16.msra.mxu0 %v7829_v43  ;;  %4811 = vmatpush1.bf16.msra.mxu1 %v7832_v44  ;;  %v7912_v43 = vld [vmem:[%s10786_s1 + $0xe6c] ss:$20 sps:$4 sm:$0xff]  }
 0x140   :  { %4479 = vmatprep.subr.bf16.mxu0 %v7837_v45  ;;  %4823 = vmatprep.subr.bf16.mxu1 %v7840_v46  ;;  %v7907_v44 = vld [vmem:[%s10786_s1 + $0xe60] ss:$20 sps:$4 sm:$0xff]   ;;  %v7910_v45 = vld [vmem:[%s10786_s1 + $0xe68] ss:$20 sps:$4 sm:$0xff]  }
 0x141   :  { %v7915_v46 = vld [vmem:[%s10786_s1 + $0xe8c] ss:$20 sps:$4 sm:$0xff]  }
 0x142   :  { %4469 = vmatmul.mubr.bf16.vlgmr.msra.gmra.mrb[0].mxu0 %v9473_v49  ;;  %4813 = vmatmul.mubr.bf16.vlgmr.msra.gmra.mrb[0].mxu1 %v9473_v49 }
 0x143   :  { %4480 = vmatpush1.bf16.msra.mxu0 %v7835_v51  ;;  %4824 = vmatpush1.bf16.msra.mxu1 %v7838_v52  ;;  %v7918_v51 = vld [vmem:[%s10786_s1 + $0xe94] ss:$20 sps:$4 sm:$0xff]  }
 0x144   :  { %4481 = vmatprep.subr.bf16.mxu0 %v7843_v53  ;;  %4825 = vmatprep.subr.bf16.mxu1 %v7846_v33  ;;  %v7913_v52 = vld [vmem:[%s10786_s1 + $0xe88] ss:$20 sps:$4 sm:$0xff]   ;;  %v7916_v53 = vld [vmem:[%s10786_s1 + $0xe90] ss:$20 sps:$4 sm:$0xff]  }
 0x145   :  { %4511 = vmatprep.mubr.bf16.mxu0 %v9489_v36  ;;  %4855 = vmatprep.mubr.bf16.mxu1 %v9489_v36  ;;  %v7921_v33 = vld [vmem:[%s10786_s1 + $0xeb4] ss:$20 sps:$4 sm:$0xff]  }
 0x147   :  { %4482 = vmatpush1.bf16.msra.mxu0 %v7841_v54  ;;  %4826 = vmatpush1.bf16.msra.mxu1 %v7844_v55  ;;  %v7924_v54 = vld [vmem:[%s10786_s1 + $0xebc] ss:$20 sps:$4 sm:$0xff]  }
 0x148   :  { %4483 = vmatprep.subr.bf16.mxu0 %v7849_v56  ;;  %4827 = vmatprep.subr.bf16.mxu1 %v7852_v57  ;;  %v7919_v55 = vld [vmem:[%s10786_s1 + $0xeb0] ss:$20 sps:$4 sm:$0xff]   ;;  %v7922_v56 = vld [vmem:[%s10786_s1 + $0xeb8] ss:$20 sps:$4 sm:$0xff]  }
 0x149   :  { %v7927_v57 = vld [vmem:[%s10786_s1 + $0xedc] ss:$20 sps:$4 sm:$0xff]  }
 0x14b   :  { %4484 = vmatpush1.bf16.msra.mxu0 %v7847_v58  ;;  %4828 = vmatpush1.bf16.msra.mxu1 %v7850_v59  ;;  %v7930_v58 = vld [vmem:[%s10786_s1 + $0xee4] ss:$20 sps:$4 sm:$0xff]  }
 0x14c   :  { %4485 = vmatprep.subr.bf16.mxu0 %v7855_v60  ;;  %4829 = vmatprep.subr.bf16.mxu1 %v7858_v61  ;;  %v7925_v59 = vld [vmem:[%s10786_s1 + $0xed8] ss:$20 sps:$4 sm:$0xff]   ;;  %v7928_v60 = vld [vmem:[%s10786_s1 + $0xee0] ss:$20 sps:$4 sm:$0xff]  }
 0x14d   :  { %v7933_v61 = vld [vmem:[%s10786_s1 + $0xf04] ss:$20 sps:$4 sm:$0xff]  }
 0x14f   :  { %4486 = vmatpush1.bf16.msra.mxu0 %v7853_v62  ;;  %4830 = vmatpush1.bf16.msra.mxu1 %v7856_v63  ;;  %v7936_v62 = vld [vmem:[%s10786_s1 + $0xf0c] ss:$20 sps:$4 sm:$0xff]  }
 0x150   :  { %4487 = vmatprep.subr.bf16.mxu0 %v7861_v0  ;;  %4831 = vmatprep.subr.bf16.mxu1 %v7864_v1  ;;  %v7931_v63 = vld [vmem:[%s10786_s1 + $0xf00] ss:$20 sps:$4 sm:$0xff]   ;;  %v7934_v0 = vld [vmem:[%s10786_s1 + $0xf08] ss:$20 sps:$4 sm:$0xff]   ;;  %v9683_v1 = vcombine.low %v9464_v47, %v9469_v48 }
 0x151   :  { %v7942_v47 = vld [vmem:[%s10786_s1 + $0xf34] ss:$20 sps:$4 sm:$0xff]  }
 0x152   :  { %v7937_v48 = vld [vmem:[%s10786_s1 + $0xf28] ss:$20 sps:$4 sm:$0xff]  }
 0x153   :  { %4488 = vmatpush1.bf16.msra.mxu0 %v7859_v2  ;;  %4832 = vmatpush1.bf16.msra.mxu1 %v7862_v3  ;;  %v9688_v2 = vld [vmem:[%s10787_s0 + $0x30] sm:$0xff] }
 0x154   :  { %4489 = vmatprep.subr.bf16.mxu0 %v7867_v4  ;;  %4833 = vmatprep.subr.bf16.mxu1 %v7870_v6  ;;  %v9693_v3 = vld [vmem:[%s10787_s0 + $0x70] sm:$0xff]  ;;  %v7939_v4 = vld [vmem:[%s10786_s1 + $0xf2c] ss:$20 sps:$4 sm:$0xff]  }
 0x155   :  { %v9706_v6 = vcombine.high %v9688_v2, %v9693_v3 }
 0x157   :  { %4490 = vmatpush1.bf16.msra.mxu0 %v7865_v7  ;;  %4834 = vmatpush1.bf16.msra.mxu1 %v7868_v8  ;;  %v7940_v7 = vld [vmem:[%s10786_s1 + $0xf30] ss:$20 sps:$4 sm:$0xff]   ;;  %v7945_v8 = vld [vmem:[%s10786_s1 + $0xf54] ss:$20 sps:$4 sm:$0xff]  }
 0x158   :  { %4491 = vmatprep.subr.bf16.mxu0 %v7873_v9  ;;  %4835 = vmatprep.subr.bf16.mxu1 %v7876_v10  ;;  %v7948_v9 = vld [vmem:[%s10786_s1 + $0xf5c] ss:$20 sps:$4 sm:$0xff]  }
 0x159   :  { %v7943_v10 = vld [vmem:[%s10786_s1 + $0xf50] ss:$20 sps:$4 sm:$0xff]  }
 0x15b   :  { %4492 = vmatpush1.bf16.msra.mxu0 %v7871_v12  ;;  %4836 = vmatpush1.bf16.msra.mxu1 %v7874_v13  ;;  %v7946_v12 = vld [vmem:[%s10786_s1 + $0xf58] ss:$20 sps:$4 sm:$0xff]   ;;  %v7951_v13 = vld [vmem:[%s10786_s1 + $0xf7c] ss:$20 sps:$4 sm:$0xff]  }
 0x15c   :  { %4493 = vmatprep.subr.bf16.mxu0 %v7879_v14  ;;  %4837 = vmatprep.subr.bf16.mxu1 %v7882_v15  ;;  %v7954_v14 = vld [vmem:[%s10786_s1 + $0xf84] ss:$20 sps:$4 sm:$0xff]  }
 0x15d   :  { %v7949_v15 = vld [vmem:[%s10786_s1 + $0xf78] ss:$20 sps:$4 sm:$0xff]  }
 0x15f   :  { %4494 = vmatpush1.bf16.msra.mxu0 %v7877_v19  ;;  %4838 = vmatpush1.bf16.msra.mxu1 %v7880_v20  ;;  %v7952_v19 = vld [vmem:[%s10786_s1 + $0xf80] ss:$20 sps:$4 sm:$0xff]   ;;  %v7957_v20 = vld [vmem:[%s10786_s1 + $0xfa4] ss:$20 sps:$4 sm:$0xff]  }
 0x160   :  { %4495 = vmatprep.subr.bf16.mxu0 %v7885_v21  ;;  %4839 = vmatprep.subr.bf16.mxu1 %v7888_v22  ;;  %v7960_v21 = vld [vmem:[%s10786_s1 + $0xfac] ss:$20 sps:$4 sm:$0xff]  }
 0x161   :  { %v7955_v22 = vld [vmem:[%s10786_s1 + $0xfa0] ss:$20 sps:$4 sm:$0xff]  }
 0x163   :  { %4496 = vmatpush1.bf16.msra.mxu0 %v7883_v23  ;;  %4840 = vmatpush1.bf16.msra.mxu1 %v7886_v27  ;;  %v7958_v23 = vld [vmem:[%s10786_s1 + $0xfa8] ss:$20 sps:$4 sm:$0xff]   ;;  %v7963_v27 = vld [vmem:[%s10786_s1 + $0xfcc] ss:$20 sps:$4 sm:$0xff]  }
 0x164   :  { %4497 = vmatprep.subr.bf16.mxu0 %v7891_v16  ;;  %4841 = vmatprep.subr.bf16.mxu1 %v7894_v28  ;;  %v7966_v16 = vld [vmem:[%s10786_s1 + $0xfd4] ss:$20 sps:$4 sm:$0xff]  }
 0x165   :  { %v7961_v28 = vld [vmem:[%s10786_s1 + $0xfc8] ss:$20 sps:$4 sm:$0xff]  }
 0x167   :  { %4498 = vmatpush1.bf16.msra.mxu0 %v7889_v29  ;;  %4842 = vmatpush1.bf16.msra.mxu1 %v7892_v30  ;;  %v7964_v29 = vld [vmem:[%s10786_s1 + $0xfd0] ss:$20 sps:$4 sm:$0xff]   ;;  %v7969_v30 = vld [vmem:[%s10786_s1 + $0xff4] ss:$20 sps:$4 sm:$0xff]  }
 0x168   :  { %4499 = vmatprep.subr.bf16.mxu0 %v7897_v31  ;;  %4843 = vmatprep.subr.bf16.mxu1 %v7900_v32  ;;  %v7972_v31 = vld [vmem:[%s10786_s1 + $0xffc] ss:$20 sps:$4 sm:$0xff]  }
 0x169   :  { %v7967_v32 = vld [vmem:[%s10786_s1 + $0xff0] ss:$20 sps:$4 sm:$0xff]  }
 0x16b   :  { %4500 = vmatpush1.bf16.msra.mxu0 %v7895_v37  ;;  %4844 = vmatpush1.bf16.msra.mxu1 %v7898_v38  ;;  %v7970_v37 = vld [vmem:[%s10786_s1 + $0xff8] ss:$20 sps:$4 sm:$0xff]   ;;  %v7975_v38 = vld [vmem:[%s10786_s1 + $0x101c] ss:$20 sps:$4 sm:$0xff]  }
 0x16c   :  { %4501 = vmatprep.subr.bf16.mxu0 %v7903_v25  ;;  %4845 = vmatprep.subr.bf16.mxu1 %v7906_v26  ;;  %v7978_v25 = vld [vmem:[%s10786_s1 + $0x1024] ss:$20 sps:$4 sm:$0xff]  }
 0x16d   :  { %v7973_v26 = vld [vmem:[%s10786_s1 + $0x1018] ss:$20 sps:$4 sm:$0xff]  }
 0x16f   :  { %4502 = vmatpush1.bf16.msra.mxu0 %v7901_v40  ;;  %4846 = vmatpush1.bf16.msra.mxu1 %v7904_v41  ;;  %v7976_v40 = vld [vmem:[%s10786_s1 + $0x1020] ss:$20 sps:$4 sm:$0xff]   ;;  %v7981_v41 = vld [vmem:[%s10786_s1 + $0x1044] ss:$20 sps:$4 sm:$0xff]  }
 0x170   :  { %4503 = vmatprep.subr.bf16.mxu0 %v7909_v42  ;;  %4847 = vmatprep.subr.bf16.mxu1 %v7912_v43  ;;  %v7984_v42 = vld [vmem:[%s10786_s1 + $0x104c] ss:$20 sps:$4 sm:$0xff]  }
 0x171   :  { %v7979_v43 = vld [vmem:[%s10786_s1 + $0x1040] ss:$20 sps:$4 sm:$0xff]  }
 0x173   :  { %4504 = vmatpush1.bf16.msra.mxu0 %v7907_v44  ;;  %4848 = vmatpush1.bf16.msra.mxu1 %v7910_v45  ;;  %v7982_v44 = vld [vmem:[%s10786_s1 + $0x1048] ss:$20 sps:$4 sm:$0xff]   ;;  %v7987_v45 = vld [vmem:[%s10786_s1 + $0x106c] ss:$20 sps:$4 sm:$0xff]  }
 0x174   :  { %4505 = vmatprep.subr.bf16.mxu0 %v7915_v46  ;;  %4849 = vmatprep.subr.bf16.mxu1 %v7918_v51  ;;  %v7990_v46 = vld [vmem:[%s10786_s1 + $0x1074] ss:$20 sps:$4 sm:$0xff]  }
 0x175   :  { %v7985_v51 = vld [vmem:[%s10786_s1 + $0x1068] ss:$20 sps:$4 sm:$0xff]  }
 0x177   :  { %4506 = vmatpush1.bf16.msra.mxu0 %v7913_v52  ;;  %4850 = vmatpush1.bf16.msra.mxu1 %v7916_v53  ;;  %v7988_v52 = vld [vmem:[%s10786_s1 + $0x1070] ss:$20 sps:$4 sm:$0xff]   ;;  %v7993_v53 = vld [vmem:[%s10786_s1 + $0x1094] ss:$20 sps:$4 sm:$0xff]  }
 0x178   :  { %4507 = vmatprep.subr.bf16.mxu0 %v7921_v33  ;;  %4851 = vmatprep.subr.bf16.mxu1 %v7924_v54  ;;  %v7996_v33 = vld [vmem:[%s10786_s1 + $0x109c] ss:$20 sps:$4 sm:$0xff]  }
 0x179   :  { %v7991_v54 = vld [vmem:[%s10786_s1 + $0x1090] ss:$20 sps:$4 sm:$0xff]  }
 0x17b   :  { %4508 = vmatpush1.bf16.msra.mxu0 %v7919_v55  ;;  %4852 = vmatpush1.bf16.msra.mxu1 %v7922_v56  ;;  %v7994_v55 = vld [vmem:[%s10786_s1 + $0x1098] ss:$20 sps:$4 sm:$0xff]   ;;  %v7999_v56 = vld [vmem:[%s10786_s1 + $0x10bc] ss:$20 sps:$4 sm:$0xff]  }
 0x17c   :  { %4509 = vmatprep.subr.bf16.mxu0 %v7927_v57  ;;  %4853 = vmatprep.subr.bf16.mxu1 %v7930_v58  ;;  %v8002_v57 = vld [vmem:[%s10786_s1 + $0x10c4] ss:$20 sps:$4 sm:$0xff]  }
 0x17d   :  { %v7997_v58 = vld [vmem:[%s10786_s1 + $0x10b8] ss:$20 sps:$4 sm:$0xff]  }
 0x17f   :  { %4510 = vmatpush1.bf16.msra.mxu0 %v7925_v59  ;;  %4854 = vmatpush1.bf16.msra.mxu1 %v7928_v60  ;;  %v8000_v59 = vld [vmem:[%s10786_s1 + $0x10c0] ss:$20 sps:$4 sm:$0xff]   ;;  %v8005_v60 = vld [vmem:[%s10786_s1 + $0x10e4] ss:$20 sps:$4 sm:$0xff]  }
 0x180   :  { %4522 = vmatprep.subr.bf16.mxu0 %v7933_v61  ;;  %4866 = vmatprep.subr.bf16.mxu1 %v7936_v62  ;;  %v8008_v61 = vld [vmem:[%s10786_s1 + $0x10ec] ss:$20 sps:$4 sm:$0xff]  }
 0x181   :  { %v8003_v62 = vld [vmem:[%s10786_s1 + $0x10e0] ss:$20 sps:$4 sm:$0xff]  }
 0x182   :  { %4512 = vmatmul.mubr.bf16.vlgmr.msra.gmra.mrb[0].mxu0 %v9683_v1  ;;  %4856 = vmatmul.mubr.bf16.vlgmr.msra.gmra.mrb[0].mxu1 %v9683_v1 }
 0x183   :  { %4523 = vmatpush1.bf16.msra.mxu0 %v7931_v63  ;;  %4867 = vmatpush1.bf16.msra.mxu1 %v7934_v0  ;;  %v8006_v63 = vld [vmem:[%s10786_s1 + $0x10e8] ss:$20 sps:$4 sm:$0xff]   ;;  %v8011_v0 = vld [vmem:[%s10786_s1 + $0x110c] ss:$20 sps:$4 sm:$0xff]  }
 0x184   :  { %4524 = vmatprep.subr.bf16.mxu0 %v7939_v4  ;;  %4868 = vmatprep.subr.bf16.mxu1 %v7942_v47  ;;  %v8014_v4 = vld [vmem:[%s10786_s1 + $0x1114] ss:$20 sps:$4 sm:$0xff]  }
 0x185   :  { %4554 = vmatprep.mubr.bf16.mxu0 %v9706_v6  ;;  %4898 = vmatprep.mubr.bf16.mxu1 %v9706_v6  ;;  %v8009_v47 = vld [vmem:[%s10786_s1 + $0x1108] ss:$20 sps:$4 sm:$0xff]  }
 0x187   :  { %4525 = vmatpush1.bf16.msra.mxu0 %v7937_v48  ;;  %4869 = vmatpush1.bf16.msra.mxu1 %v7940_v7  ;;  %v8012_v48 = vld [vmem:[%s10786_s1 + $0x1110] ss:$20 sps:$4 sm:$0xff]   ;;  %v8017_v7 = vld [vmem:[%s10786_s1 + $0x1134] ss:$20 sps:$4 sm:$0xff]  }
 0x188   :  { %4526 = vmatprep.subr.bf16.mxu0 %v7945_v8  ;;  %4870 = vmatprep.subr.bf16.mxu1 %v7948_v9  ;;  %v8020_v8 = vld [vmem:[%s10786_s1 + $0x113c] ss:$20 sps:$4 sm:$0xff]  }
 0x189   :  { %v8015_v9 = vld [vmem:[%s10786_s1 + $0x1130] ss:$20 sps:$4 sm:$0xff]  }
 0x18b   :  { %4527 = vmatpush1.bf16.msra.mxu0 %v7943_v10  ;;  %4871 = vmatpush1.bf16.msra.mxu1 %v7946_v12  ;;  %v8018_v10 = vld [vmem:[%s10786_s1 + $0x1138] ss:$20 sps:$4 sm:$0xff]   ;;  %v8023_v12 = vld [vmem:[%s10786_s1 + $0x115c] ss:$20 sps:$4 sm:$0xff]  }
 0x18c   :  { %4528 = vmatprep.subr.bf16.mxu0 %v7951_v13  ;;  %4872 = vmatprep.subr.bf16.mxu1 %v7954_v14  ;;  %v8026_v13 = vld [vmem:[%s10786_s1 + $0x1164] ss:$20 sps:$4 sm:$0xff]  }
 0x18d   :  { %v8021_v14 = vld [vmem:[%s10786_s1 + $0x1158] ss:$20 sps:$4 sm:$0xff]  }
 0x18f   :  { %4529 = vmatpush1.bf16.msra.mxu0 %v7949_v15  ;;  %4873 = vmatpush1.bf16.msra.mxu1 %v7952_v19  ;;  %v8024_v15 = vld [vmem:[%s10786_s1 + $0x1160] ss:$20 sps:$4 sm:$0xff]   ;;  %v8029_v19 = vld [vmem:[%s10786_s1 + $0x1184] ss:$20 sps:$4 sm:$0xff]  }
 0x190   :  { %4530 = vmatprep.subr.bf16.mxu0 %v7957_v20  ;;  %4874 = vmatprep.subr.bf16.mxu1 %v7960_v21  ;;  %v8032_v20 = vld [vmem:[%s10786_s1 + $0x118c] ss:$20 sps:$4 sm:$0xff]   ;;  %v9892_v21 = vld [vmem:[%s10787_s0 + $0x38] sm:$0xff] }
 0x193   :  { %4531 = vmatpush1.bf16.msra.mxu0 %v7955_v22  ;;  %4875 = vmatpush1.bf16.msra.mxu1 %v7958_v23  ;;  %v8027_v22 = vld [vmem:[%s10786_s1 + $0x1180] ss:$20 sps:$4 sm:$0xff]   ;;  %v8030_v23 = vld [vmem:[%s10786_s1 + $0x1188] ss:$20 sps:$4 sm:$0xff]  }
 0x194   :  { %4532 = vmatprep.subr.bf16.mxu0 %v7963_v27  ;;  %4876 = vmatprep.subr.bf16.mxu1 %v7966_v16  ;;  %v9903_v27 = vld [vmem:[%s10787_s0 + $0x78] sm:$0xff]  ;;  %v9907_v16 = vcombine.low %v9688_v2, %v9693_v3  ;;  %v8036_v3 = vld [vmem:[%s10786_s1 + $0x11b0] ss:$20 sps:$4 sm:$0xff]  }
 0x195   :  { %v9920_v2 = vcombine.high %v9892_v21, %v9903_v27 }
 0x197   :  { %4533 = vmatpush1.bf16.msra.mxu0 %v7961_v28  ;;  %4877 = vmatpush1.bf16.msra.mxu1 %v7964_v29  ;;  %v8035_v28 = vld [vmem:[%s10786_s1 + $0x11ac] ss:$20 sps:$4 sm:$0xff]   ;;  %v8038_v29 = vld [vmem:[%s10786_s1 + $0x11b4] ss:$20 sps:$4 sm:$0xff]  }
 0x198   :  { %4534 = vmatprep.subr.bf16.mxu0 %v7969_v30  ;;  %4878 = vmatprep.subr.bf16.mxu1 %v7972_v31  ;;  %v8033_v30 = vld [vmem:[%s10786_s1 + $0x11a8] ss:$20 sps:$4 sm:$0xff]  }
 0x199   :  { %v8041_v31 = vld [vmem:[%s10786_s1 + $0x11d4] ss:$20 sps:$4 sm:$0xff]  }
 0x19b   :  { %4535 = vmatpush1.bf16.msra.mxu0 %v7967_v32  ;;  %4879 = vmatpush1.bf16.msra.mxu1 %v7970_v37  ;;  %v8044_v32 = vld [vmem:[%s10786_s1 + $0x11dc] ss:$20 sps:$4 sm:$0xff]  }
 0x19c   :  { %4536 = vmatprep.subr.bf16.mxu0 %v7975_v38  ;;  %4880 = vmatprep.subr.bf16.mxu1 %v7978_v25  ;;  %v8039_v37 = vld [vmem:[%s10786_s1 + $0x11d0] ss:$20 sps:$4 sm:$0xff]   ;;  %v8042_v38 = vld [vmem:[%s10786_s1 + $0x11d8] ss:$20 sps:$4 sm:$0xff]  }
 0x19d   :  { %v8047_v25 = vld [vmem:[%s10786_s1 + $0x11fc] ss:$20 sps:$4 sm:$0xff]  }
 0x19f   :  { %4537 = vmatpush1.bf16.msra.mxu0 %v7973_v26  ;;  %4881 = vmatpush1.bf16.msra.mxu1 %v7976_v40  ;;  %v8050_v26 = vld [vmem:[%s10786_s1 + $0x1204] ss:$20 sps:$4 sm:$0xff]  }
 0x1a0   :  { %4538 = vmatprep.subr.bf16.mxu0 %v7981_v41  ;;  %4882 = vmatprep.subr.bf16.mxu1 %v7984_v42  ;;  %v8045_v40 = vld [vmem:[%s10786_s1 + $0x11f8] ss:$20 sps:$4 sm:$0xff]   ;;  %v8048_v41 = vld [vmem:[%s10786_s1 + $0x1200] ss:$20 sps:$4 sm:$0xff]  }
 0x1a1   :  { %v8053_v42 = vld [vmem:[%s10786_s1 + $0x1224] ss:$20 sps:$4 sm:$0xff]  }
 0x1a3   :  { %4539 = vmatpush1.bf16.msra.mxu0 %v7979_v43  ;;  %4883 = vmatpush1.bf16.msra.mxu1 %v7982_v44  ;;  %v8056_v43 = vld [vmem:[%s10786_s1 + $0x122c] ss:$20 sps:$4 sm:$0xff]  }
 0x1a4   :  { %4540 = vmatprep.subr.bf16.mxu0 %v7987_v45  ;;  %4884 = vmatprep.subr.bf16.mxu1 %v7990_v46  ;;  %v8051_v44 = vld [vmem:[%s10786_s1 + $0x1220] ss:$20 sps:$4 sm:$0xff]   ;;  %v8054_v45 = vld [vmem:[%s10786_s1 + $0x1228] ss:$20 sps:$4 sm:$0xff]  }
 0x1a5   :  { %v8059_v46 = vld [vmem:[%s10786_s1 + $0x124c] ss:$20 sps:$4 sm:$0xff]  }
 0x1a7   :  { %4541 = vmatpush1.bf16.msra.mxu0 %v7985_v51  ;;  %4885 = vmatpush1.bf16.msra.mxu1 %v7988_v52  ;;  %v8062_v51 = vld [vmem:[%s10786_s1 + $0x1254] ss:$20 sps:$4 sm:$0xff]  }
 0x1a8   :  { %4542 = vmatprep.subr.bf16.mxu0 %v7993_v53  ;;  %4886 = vmatprep.subr.bf16.mxu1 %v7996_v33  ;;  %v8057_v52 = vld [vmem:[%s10786_s1 + $0x1248] ss:$20 sps:$4 sm:$0xff]   ;;  %v8060_v53 = vld [vmem:[%s10786_s1 + $0x1250] ss:$20 sps:$4 sm:$0xff]  }
 0x1a9   :  { %v8065_v33 = vld [vmem:[%s10786_s1 + $0x1274] ss:$20 sps:$4 sm:$0xff]  }
 0x1ab   :  { %4543 = vmatpush1.bf16.msra.mxu0 %v7991_v54  ;;  %4887 = vmatpush1.bf16.msra.mxu1 %v7994_v55  ;;  %v8068_v54 = vld [vmem:[%s10786_s1 + $0x127c] ss:$20 sps:$4 sm:$0xff]  }
 0x1ac   :  { %4544 = vmatprep.subr.bf16.mxu0 %v7999_v56  ;;  %4888 = vmatprep.subr.bf16.mxu1 %v8002_v57  ;;  %v8063_v55 = vld [vmem:[%s10786_s1 + $0x1270] ss:$20 sps:$4 sm:$0xff]   ;;  %v8066_v56 = vld [vmem:[%s10786_s1 + $0x1278] ss:$20 sps:$4 sm:$0xff]  }
 0x1ad   :  { %v8071_v57 = vld [vmem:[%s10786_s1 + $0x129c] ss:$20 sps:$4 sm:$0xff]  }
 0x1af   :  { %4545 = vmatpush1.bf16.msra.mxu0 %v7997_v58  ;;  %4889 = vmatpush1.bf16.msra.mxu1 %v8000_v59  ;;  %v8074_v58 = vld [vmem:[%s10786_s1 + $0x12a4] ss:$20 sps:$4 sm:$0xff]  }
 0x1b0   :  { %4546 = vmatprep.subr.bf16.mxu0 %v8005_v60  ;;  %4890 = vmatprep.subr.bf16.mxu1 %v8008_v61  ;;  %v8069_v59 = vld [vmem:[%s10786_s1 + $0x1298] ss:$20 sps:$4 sm:$0xff]   ;;  %v8072_v60 = vld [vmem:[%s10786_s1 + $0x12a0] ss:$20 sps:$4 sm:$0xff]  }
 0x1b1   :  { %v8077_v61 = vld [vmem:[%s10786_s1 + $0x12c4] ss:$20 sps:$4 sm:$0xff]  }
 0x1b3   :  { %4547 = vmatpush1.bf16.msra.mxu0 %v8003_v62  ;;  %4891 = vmatpush1.bf16.msra.mxu1 %v8006_v63  ;;  %v8080_v62 = vld [vmem:[%s10786_s1 + $0x12cc] ss:$20 sps:$4 sm:$0xff]  }
 0x1b4   :  { %4548 = vmatprep.subr.bf16.mxu0 %v8011_v0  ;;  %4892 = vmatprep.subr.bf16.mxu1 %v8014_v4  ;;  %v8075_v63 = vld [vmem:[%s10786_s1 + $0x12c0] ss:$20 sps:$4 sm:$0xff]   ;;  %v8078_v0 = vld [vmem:[%s10786_s1 + $0x12c8] ss:$20 sps:$4 sm:$0xff]  }
 0x1b5   :  { %v8083_v4 = vld [vmem:[%s10786_s1 + $0x12ec] ss:$20 sps:$4 sm:$0xff]  }
 0x1b7   :  { %4549 = vmatpush1.bf16.msra.mxu0 %v8009_v47  ;;  %4893 = vmatpush1.bf16.msra.mxu1 %v8012_v48  ;;  %v8086_v47 = vld [vmem:[%s10786_s1 + $0x12f4] ss:$20 sps:$4 sm:$0xff]  }
 0x1b8   :  { %4550 = vmatprep.subr.bf16.mxu0 %v8017_v7  ;;  %4894 = vmatprep.subr.bf16.mxu1 %v8020_v8  ;;  %v8081_v48 = vld [vmem:[%s10786_s1 + $0x12e8] ss:$20 sps:$4 sm:$0xff]   ;;  %v8084_v7 = vld [vmem:[%s10786_s1 + $0x12f0] ss:$20 sps:$4 sm:$0xff]  }
 0x1b9   :  { %v8089_v8 = vld [vmem:[%s10786_s1 + $0x1314] ss:$20 sps:$4 sm:$0xff]  }
 0x1bb   :  { %4551 = vmatpush1.bf16.msra.mxu0 %v8015_v9  ;;  %4895 = vmatpush1.bf16.msra.mxu1 %v8018_v10  ;;  %v8092_v9 = vld [vmem:[%s10786_s1 + $0x131c] ss:$20 sps:$4 sm:$0xff]  }
 0x1bc   :  { %4552 = vmatprep.subr.bf16.mxu0 %v8023_v12  ;;  %4896 = vmatprep.subr.bf16.mxu1 %v8026_v13  ;;  %v8087_v10 = vld [vmem:[%s10786_s1 + $0x1310] ss:$20 sps:$4 sm:$0xff]   ;;  %v8090_v12 = vld [vmem:[%s10786_s1 + $0x1318] ss:$20 sps:$4 sm:$0xff]  }
 0x1bd   :  { %v8095_v13 = vld [vmem:[%s10786_s1 + $0x133c] ss:$20 sps:$4 sm:$0xff]  }
 0x1bf   :  { %4553 = vmatpush1.bf16.msra.mxu0 %v8021_v14  ;;  %4897 = vmatpush1.bf16.msra.mxu1 %v8024_v15  ;;  %v8098_v14 = vld [vmem:[%s10786_s1 + $0x1344] ss:$20 sps:$4 sm:$0xff]  }
 0x1c0   :  { %4565 = vmatprep.subr.bf16.mxu0 %v8029_v19  ;;  %4909 = vmatprep.subr.bf16.mxu1 %v8032_v20  ;;  %v8093_v15 = vld [vmem:[%s10786_s1 + $0x1338] ss:$20 sps:$4 sm:$0xff]   ;;  %v8096_v19 = vld [vmem:[%s10786_s1 + $0x1340] ss:$20 sps:$4 sm:$0xff]  }
 0x1c1   :  { %v8101_v20 = vld [vmem:[%s10786_s1 + $0x1364] ss:$20 sps:$4 sm:$0xff]  }
 0x1c2   :  { %4555 = vmatmul.mubr.bf16.vlgmr.msra.gmra.mrb[0].mxu0 %v9907_v16  ;;  %4899 = vmatmul.mubr.bf16.vlgmr.msra.gmra.mrb[0].mxu1 %v9907_v16 }
 0x1c3   :  { %4566 = vmatpush1.bf16.msra.mxu0 %v8027_v22  ;;  %4910 = vmatpush1.bf16.msra.mxu1 %v8030_v23  ;;  %v8104_v22 = vld [vmem:[%s10786_s1 + $0x136c] ss:$20 sps:$4 sm:$0xff]  }
 0x1c4   :  { %4567 = vmatprep.subr.bf16.mxu0 %v8035_v28  ;;  %4911 = vmatprep.subr.bf16.mxu1 %v8038_v29  ;;  %v8099_v23 = vld [vmem:[%s10786_s1 + $0x1360] ss:$20 sps:$4 sm:$0xff]   ;;  %v8102_v28 = vld [vmem:[%s10786_s1 + $0x1368] ss:$20 sps:$4 sm:$0xff]  }
 0x1c5   :  { %4597 = vmatprep.mubr.bf16.mxu0 %v9920_v2  ;;  %4941 = vmatprep.mubr.bf16.mxu1 %v9920_v2  ;;  %v8107_v29 = vld [vmem:[%s10786_s1 + $0x138c] ss:$20 sps:$4 sm:$0xff]  }
 0x1c7   :  { %4568 = vmatpush1.bf16.msra.mxu0 %v8033_v30  ;;  %4912 = vmatpush1.bf16.msra.mxu1 %v8036_v3  ;;  %v8110_v30 = vld [vmem:[%s10786_s1 + $0x1394] ss:$20 sps:$4 sm:$0xff]  }
 0x1c8   :  { %4569 = vmatprep.subr.bf16.mxu0 %v8041_v31  ;;  %4913 = vmatprep.subr.bf16.mxu1 %v8044_v32  ;;  %v8105_v3 = vld [vmem:[%s10786_s1 + $0x1388] ss:$20 sps:$4 sm:$0xff]   ;;  %v8108_v31 = vld [vmem:[%s10786_s1 + $0x1390] ss:$20 sps:$4 sm:$0xff]  }
 0x1c9   :  { %v8113_v32 = vld [vmem:[%s10786_s1 + $0x13b4] ss:$20 sps:$4 sm:$0xff]  }
 0x1cb   :  { %4570 = vmatpush1.bf16.msra.mxu0 %v8039_v37  ;;  %4914 = vmatpush1.bf16.msra.mxu1 %v8042_v38  ;;  %v8116_v37 = vld [vmem:[%s10786_s1 + $0x13bc] ss:$20 sps:$4 sm:$0xff]  }
 0x1cc   :  { %4571 = vmatprep.subr.bf16.mxu0 %v8047_v25  ;;  %4915 = vmatprep.subr.bf16.mxu1 %v8050_v26  ;;  %v8111_v38 = vld [vmem:[%s10786_s1 + $0x13b0] ss:$20 sps:$4 sm:$0xff]   ;;  %v8114_v25 = vld [vmem:[%s10786_s1 + $0x13b8] ss:$20 sps:$4 sm:$0xff]  }
 0x1cd   :  { %v8119_v26 = vld [vmem:[%s10786_s1 + $0x13dc] ss:$20 sps:$4 sm:$0xff]  }
 0x1cf   :  { %4572 = vmatpush1.bf16.msra.mxu0 %v8045_v40  ;;  %4916 = vmatpush1.bf16.msra.mxu1 %v8048_v41  ;;  %v8122_v40 = vld [vmem:[%s10786_s1 + $0x13e4] ss:$20 sps:$4 sm:$0xff]  }
 0x1d0   :  { %4573 = vmatprep.subr.bf16.mxu0 %v8053_v42  ;;  %4917 = vmatprep.subr.bf16.mxu1 %v8056_v43  ;;  %v8117_v41 = vld [vmem:[%s10786_s1 + $0x13d8] ss:$20 sps:$4 sm:$0xff]   ;;  %v8120_v42 = vld [vmem:[%s10786_s1 + $0x13e0] ss:$20 sps:$4 sm:$0xff]   ;;  %v8123_v43 = vld [vmem:[%s10786_s1 + $0x150] ss:$20 sps:$4 sm:$0xff]  }
 0x1d3   :  { %4574 = vmatpush1.bf16.msra.mxu0 %v8051_v44  ;;  %4918 = vmatpush1.bf16.msra.mxu1 %v8054_v45  ;;  %v8124_v44 = vld [vmem:[%s10786_s1 + $0x3d0] ss:$20 sps:$4 sm:$0xff]   ;;  %v10105_v45 = vcombine.low %v9892_v21, %v9903_v27  ;;  %v8128_v21 = vld [vmem:[%s10786_s1 + $0x3f8] ss:$20 sps:$4 sm:$0xff]  }
 0x1d4   :  { %4575 = vmatprep.subr.bf16.mxu0 %v8059_v46  ;;  %4919 = vmatprep.subr.bf16.mxu1 %v8062_v51  ;;  %v8125_v46 = vld [vmem:[%s10786_s1 + $0x10] ss:$20 sps:$4 sm:$0xff]   ;;  %v8129_v27 = vld [vmem:[%s10786_s1 + $0x38] ss:$20 sps:$4 sm:$0xff]  }
 0x1d5   :  { %v8126_v51 = vld [vmem:[%s10786_s1 + $0x290] ss:$20 sps:$4 sm:$0xff]  }
 0x1d7   :  { %4576 = vmatpush1.bf16.msra.mxu0 %v8057_v52  ;;  %4920 = vmatpush1.bf16.msra.mxu1 %v8060_v53  ;;  %v8127_v52 = vld [vmem:[%s10786_s1 + $0x178] ss:$20 sps:$4 sm:$0xff]  }
 0x1d8   :  { %4577 = vmatprep.subr.bf16.mxu0 %v8065_v33  ;;  %4921 = vmatprep.subr.bf16.mxu1 %v8068_v54  ;;  %v8130_v53 = vld [vmem:[%s10786_s1 + $0x2b8] ss:$20 sps:$4 sm:$0xff]   ;;  %v8131_v33 = vld [vmem:[%s10786_s1 + $0x1a0] ss:$20 sps:$4 sm:$0xff]  }
 0x1d9   :  { %v8132_v54 = vld [vmem:[%s10786_s1 + $0x420] ss:$20 sps:$4 sm:$0xff]  }
 0x1db   :  { %4578 = vmatpush1.bf16.msra.mxu0 %v8063_v55  ;;  %4922 = vmatpush1.bf16.msra.mxu1 %v8066_v56  ;;  %v8133_v55 = vld [vmem:[%s10786_s1 + $0x60] ss:$20 sps:$4 sm:$0xff]  }
 0x1dc   :  { %4579 = vmatprep.subr.bf16.mxu0 %v8071_v57  ;;  %4923 = vmatprep.subr.bf16.mxu1 %v8074_v58  ;;  %v8134_v56 = vld [vmem:[%s10786_s1 + $0x2e0] ss:$20 sps:$4 sm:$0xff]   ;;  %v8135_v57 = vld [vmem:[%s10786_s1 + $0x1c8] ss:$20 sps:$4 sm:$0xff]  }
 0x1dd   :  { %v8136_v58 = vld [vmem:[%s10786_s1 + $0x448] ss:$20 sps:$4 sm:$0xff]  }
 0x1df   :  { %4580 = vmatpush1.bf16.msra.mxu0 %v8069_v59  ;;  %4924 = vmatpush1.bf16.msra.mxu1 %v8072_v60  ;;  %v8139_v59 = vld [vmem:[%s10786_s1 + $0x1f0] ss:$20 sps:$4 sm:$0xff]  }
 0x1e0   :  { %4581 = vmatprep.subr.bf16.mxu0 %v8077_v61  ;;  %4925 = vmatprep.subr.bf16.mxu1 %v8080_v62  ;;  %v8140_v60 = vld [vmem:[%s10786_s1 + $0x470] ss:$20 sps:$4 sm:$0xff]  }
 0x1e1   :  { %v8141_v61 = vld [vmem:[%s10786_s1 + $0xb0] ss:$20 sps:$4 sm:$0xff]  }
 0x1e2   :  { %v8142_v62 = vld [vmem:[%s10786_s1 + $0x330] ss:$20 sps:$4 sm:$0xff]  }
 0x1e3   :  { %4582 = vmatpush1.bf16.msra.mxu0 %v8075_v63  ;;  %4926 = vmatpush1.bf16.msra.mxu1 %v8078_v0  ;;  %v8143_v63 = vld [vmem:[%s10786_s1 + $0x218] ss:$20 sps:$4 sm:$0xff]  }
 0x1e4   :  { %4583 = vmatprep.subr.bf16.mxu0 %v8083_v4  ;;  %4927 = vmatprep.subr.bf16.mxu1 %v8086_v47  ;;  %v8144_v0 = vld [vmem:[%s10786_s1 + $0x498] ss:$20 sps:$4 sm:$0xff]  }
 0x1e5   :  { %v8145_v4 = vld [vmem:[%s10786_s1 + $0xd8] ss:$20 sps:$4 sm:$0xff]  }
 0x1e6   :  { %v8146_v47 = vld [vmem:[%s10786_s1 + $0x358] ss:$20 sps:$4 sm:$0xff]  }
 0x1e7   :  { %4584 = vmatpush1.bf16.msra.mxu0 %v8081_v48  ;;  %4928 = vmatpush1.bf16.msra.mxu1 %v8084_v7  ;;  %v8147_v48 = vld [vmem:[%s10786_s1 + $0x240] ss:$20 sps:$4 sm:$0xff]  }
 0x1e8   :  { %4585 = vmatprep.subr.bf16.mxu0 %v8089_v8  ;;  %4929 = vmatprep.subr.bf16.mxu1 %v8092_v9  ;;  %v8148_v7 = vld [vmem:[%s10786_s1 + $0x4c0] ss:$20 sps:$4 sm:$0xff]  }
 0x1e9   :  { %v8149_v8 = vld [vmem:[%s10786_s1 + $0x100] ss:$20 sps:$4 sm:$0xff]  }
 0x1ea   :  { %v8150_v9 = vld [vmem:[%s10786_s1 + $0x380] ss:$20 sps:$4 sm:$0xff]  }
 0x1eb   :  { %4586 = vmatpush1.bf16.msra.mxu0 %v8087_v10  ;;  %4930 = vmatpush1.bf16.msra.mxu1 %v8090_v12  ;;  %v8151_v10 = vld [vmem:[%s10786_s1 + $0x268] ss:$20 sps:$4 sm:$0xff]  }
 0x1ec   :  { %4587 = vmatprep.subr.bf16.mxu0 %v8095_v13  ;;  %4931 = vmatprep.subr.bf16.mxu1 %v8098_v14  ;;  %v8152_v12 = vld [vmem:[%s10786_s1 + $0x4e8] ss:$20 sps:$4 sm:$0xff]  }
 0x1ed   :  { %v8153_v13 = vld [vmem:[%s10786_s1 + $0x128] ss:$20 sps:$4 sm:$0xff]  }
 0x1ee   :  { %v8154_v14 = vld [vmem:[%s10786_s1 + $0x3a8] ss:$20 sps:$4 sm:$0xff]  }
 0x1ef   :  { %4588 = vmatpush1.bf16.msra.mxu0 %v8093_v15  ;;  %4932 = vmatpush1.bf16.msra.mxu1 %v8096_v19  ;;  %v8155_v15 = vld [vmem:[%s10786_s1 + $0x650] ss:$20 sps:$4 sm:$0xff]  }
 0x1f0   :  { %4589 = vmatprep.subr.bf16.mxu0 %v8101_v20  ;;  %4933 = vmatprep.subr.bf16.mxu1 %v8104_v22  ;;  %v8156_v19 = vld [vmem:[%s10786_s1 + $0x8d0] ss:$20 sps:$4 sm:$0xff]  }
 0x1f1   :  { %v8157_v20 = vld [vmem:[%s10786_s1 + $0x510] ss:$20 sps:$4 sm:$0xff]  }
 0x1f2   :  { %v8158_v22 = vld [vmem:[%s10786_s1 + $0x790] ss:$20 sps:$4 sm:$0xff]  }
 0x1f3   :  { %4590 = vmatpush1.bf16.msra.mxu0 %v8099_v23  ;;  %4934 = vmatpush1.bf16.msra.mxu1 %v8102_v28  ;;  %v8159_v23 = vld [vmem:[%s10786_s1 + $0x678] ss:$20 sps:$4 sm:$0xff]  }
 0x1f4   :  { %4591 = vmatprep.subr.bf16.mxu0 %v8107_v29  ;;  %4935 = vmatprep.subr.bf16.mxu1 %v8110_v30  ;;  %v8160_v28 = vld [vmem:[%s10786_s1 + $0x8f8] ss:$20 sps:$4 sm:$0xff]  }
 0x1f5   :  { %v8161_v29 = vld [vmem:[%s10786_s1 + $0x538] ss:$20 sps:$4 sm:$0xff]  }
 0x1f6   :  { %v8162_v30 = vld [vmem:[%s10786_s1 + $0x7b8] ss:$20 sps:$4 sm:$0xff]  }
 0x1f7   :  { %4592 = vmatpush1.bf16.msra.mxu0 %v8105_v3  ;;  %4936 = vmatpush1.bf16.msra.mxu1 %v8108_v31  ;;  %v8163_v3 = vld [vmem:[%s10786_s1 + $0x6a0] ss:$20 sps:$4 sm:$0xff]  }
 0x1f8   :  { %4593 = vmatprep.subr.bf16.mxu0 %v8113_v32  ;;  %4937 = vmatprep.subr.bf16.mxu1 %v8116_v37  ;;  %v8164_v31 = vld [vmem:[%s10786_s1 + $0x920] ss:$20 sps:$4 sm:$0xff]   ;;  %v8167_v32 = vld [vmem:[%s10786_s1 + $0x6c8] ss:$20 sps:$4 sm:$0xff]  }
 0x1f9   :  { %v8170_v37 = vld [vmem:[%s10786_s1 + $0x808] ss:$20 sps:$4 sm:$0xff]  }
 0x1fb   :  { %4594 = vmatpush1.bf16.msra.mxu0 %v8111_v38  ;;  %4938 = vmatpush1.bf16.msra.mxu1 %v8114_v25  ;;  %v8171_v38 = vld [vmem:[%s10786_s1 + $0x6f0] ss:$20 sps:$4 sm:$0xff]  }
 0x1fc   :  { %4595 = vmatprep.subr.bf16.mxu0 %v8119_v26  ;;  %4939 = vmatprep.subr.bf16.mxu1 %v8122_v40  ;;  %v8172_v25 = vld [vmem:[%s10786_s1 + $0x970] ss:$20 sps:$4 sm:$0xff]  }
 0x1fd   :  { %v8173_v26 = vld [vmem:[%s10786_s1 + $0x5b0] ss:$20 sps:$4 sm:$0xff]  }
 0x1fe   :  { %v8174_v40 = vld [vmem:[%s10786_s1 + $0x830] ss:$20 sps:$4 sm:$0xff]  }
 0x1ff   :  { %4596 = vmatpush1.bf16.msra.mxu0 %v8117_v41  ;;  %4940 = vmatpush1.bf16.msra.mxu1 %v8120_v42  ;;  %v8175_v41 = vld [vmem:[%s10786_s1 + $0x718] ss:$20 sps:$4 sm:$0xff]  }
 0x200   :  { %6936 = vmatprep.subr.bf16.mxu0 %v8123_v43  ;;  %6958 = vmatprep.subr.bf16.mxu1 %v8124_v44  ;;  %v8176_v42 = vld [vmem:[%s10786_s1 + $0x998] ss:$20 sps:$4 sm:$0xff]  }
 0x201   :  { %v8177_v43 = vld [vmem:[%s10786_s1 + $0x5d8] ss:$20 sps:$4 sm:$0xff]  }
 0x202   :  { %4598 = vmatmul.mubr.bf16.vlgmr.msra.gmra.mrb[0].mxu0 %v10105_v45  ;;  %4942 = vmatmul.mubr.bf16.vlgmr.msra.gmra.mrb[0].mxu1 %v10105_v45  ;;  %v8178_v44 = vld [vmem:[%s10786_s1 + $0x858] ss:$20 sps:$4 sm:$0xff]  }
 0x203   :  { %6937 = vmatpush3.bf16.msra.mxu0 %v8125_v46  ;;  %6959 = vmatpush3.bf16.msra.mxu1 %v8126_v51  ;;  %v8179_v46 = vld [vmem:[%s10786_s1 + $0x740] ss:$20 sps:$4 sm:$0xff]  }
 0x204   :  { %6938 = vmatprep.subr.bf16.mxu0 %v8127_v52  ;;  %6960 = vmatprep.subr.bf16.mxu1 %v8128_v21  ;;  %v8180_v51 = vld [vmem:[%s10786_s1 + $0x9c0] ss:$20 sps:$4 sm:$0xff]  }
 0x205   :  { %4984 = vmatprep.mubr.bf16.mxu0 %v8549_v50  ;;  %5025 = vmatprep.mubr.bf16.mxu1 %v8701_v34  ;;  %v8137_v50 = vld [vmem:[%s10786_s1 + $0x88] ss:$20 sps:$4 sm:$0xff]   ;;  %v8181_v52 = vld [vmem:[%s10786_s1 + $0x600] ss:$20 sps:$4 sm:$0xff]  }
 0x206   :  { %v8138_v34 = vld [vmem:[%s10786_s1 + $0x308] ss:$20 sps:$4 sm:$0xff]   ;;  %v8182_v21 = vld [vmem:[%s10786_s1 + $0x880] ss:$20 sps:$4 sm:$0xff]  }
 0x207   :  { %6939 = vmatpush3.bf16.msra.mxu0 %v8129_v27  ;;  %6961 = vmatpush3.bf16.msra.mxu1 %v8130_v53  ;;  %v8183_v27 = vld [vmem:[%s10786_s1 + $0x768] ss:$20 sps:$4 sm:$0xff]  }
 0x208   :  { %6940 = vmatprep.subr.bf16.mxu0 %v8131_v33  ;;  %6962 = vmatprep.subr.bf16.mxu1 %v8132_v54  ;;  %v8184_v53 = vld [vmem:[%s10786_s1 + $0x9e8] ss:$20 sps:$4 sm:$0xff]  }
 0x209   :  { %v8185_v33 = vld [vmem:[%s10786_s1 + $0x628] ss:$20 sps:$4 sm:$0xff]  }
 0x20a   :  { %v8186_v54 = vld [vmem:[%s10786_s1 + $0x8a8] ss:$20 sps:$4 sm:$0xff]  }
 0x20b   :  { %6941 = vmatpush3.bf16.msra.mxu0 %v8133_v55  ;;  %6963 = vmatpush3.bf16.msra.mxu1 %v8134_v56  ;;  %v8187_v55 = vld [vmem:[%s10786_s1 + $0xb50] ss:$20 sps:$4 sm:$0xff]  }
 0x20c   :  { %6942 = vmatprep.subr.bf16.mxu0 %v8135_v57  ;;  %6964 = vmatprep.subr.bf16.mxu1 %v8136_v58  ;;  %v8188_v56 = vld [vmem:[%s10786_s1 + $0xdd0] ss:$20 sps:$4 sm:$0xff]  }
 0x20d   :  { %v8189_v57 = vld [vmem:[%s10786_s1 + $0xa10] ss:$20 sps:$4 sm:$0xff]  }
 0x20e   :  { %v8190_v58 = vld [vmem:[%s10786_s1 + $0xc90] ss:$20 sps:$4 sm:$0xff]  }
 0x20f   :  { %6943 = vmatpush3.bf16.msra.mxu0 %v8137_v50  ;;  %6965 = vmatpush3.bf16.msra.mxu1 %v8138_v34  ;;  %v8191_v50 = vld [vmem:[%s10786_s1 + $0xb78] ss:$20 sps:$4 sm:$0xff]  }
 0x210   :  { %6944 = vmatprep.subr.bf16.mxu0 %v8139_v59  ;;  %6966 = vmatprep.subr.bf16.mxu1 %v8140_v60  ;;  %v8192_v34 = vld [vmem:[%s10786_s1 + $0xdf8] ss:$20 sps:$4 sm:$0xff]  }
 0x211   :  { %v8193_v59 = vld [vmem:[%s10786_s1 + $0xa38] ss:$20 sps:$4 sm:$0xff]  }
 0x212   :  { %v8194_v60 = vld [vmem:[%s10786_s1 + $0xcb8] ss:$20 sps:$4 sm:$0xff]  }
 0x213   :  { %6945 = vmatpush3.bf16.msra.mxu0 %v8141_v61  ;;  %6967 = vmatpush3.bf16.msra.mxu1 %v8142_v62  ;;  %v8195_v61 = vld [vmem:[%s10786_s1 + $0xba0] ss:$20 sps:$4 sm:$0xff]  }
 0x214   :  { %6946 = vmatprep.subr.bf16.mxu0 %v8143_v63  ;;  %6968 = vmatprep.subr.bf16.mxu1 %v8144_v0  ;;  %v8198_v62 = vld [vmem:[%s10786_s1 + $0xce0] ss:$20 sps:$4 sm:$0xff]   ;;  %v8199_v63 = vld [vmem:[%s10786_s1 + $0xbc8] ss:$20 sps:$4 sm:$0xff]  }
 0x215   :  { %v8202_v0 = vld [vmem:[%s10786_s1 + $0xd08] ss:$20 sps:$4 sm:$0xff]  }
 0x217   :  { %6947 = vmatpush3.bf16.msra.mxu0 %v8145_v4  ;;  %6969 = vmatpush3.bf16.msra.mxu1 %v8146_v47  ;;  %v8203_v4 = vld [vmem:[%s10786_s1 + $0xbf0] ss:$20 sps:$4 sm:$0xff]  }
 0x218   :  { %6948 = vmatprep.subr.bf16.mxu0 %v8147_v48  ;;  %6970 = vmatprep.subr.bf16.mxu1 %v8148_v7  ;;  %v8204_v47 = vld [vmem:[%s10786_s1 + $0xe70] ss:$20 sps:$4 sm:$0xff]  }
 0x219   :  { %v8205_v48 = vld [vmem:[%s10786_s1 + $0xab0] ss:$20 sps:$4 sm:$0xff]  }
 0x21a   :  { %v8206_v7 = vld [vmem:[%s10786_s1 + $0xd30] ss:$20 sps:$4 sm:$0xff]  }
 0x21b   :  { %6949 = vmatpush3.bf16.msra.mxu0 %v8149_v8  ;;  %6971 = vmatpush3.bf16.msra.mxu1 %v8150_v9  ;;  %v8207_v8 = vld [vmem:[%s10786_s1 + $0xc18] ss:$20 sps:$4 sm:$0xff]  }
 0x21c   :  { %6950 = vmatprep.subr.bf16.mxu0 %v8151_v10  ;;  %6972 = vmatprep.subr.bf16.mxu1 %v8152_v12  ;;  %v8208_v9 = vld [vmem:[%s10786_s1 + $0xe98] ss:$20 sps:$4 sm:$0xff]  }
 0x21d   :  { %v8209_v10 = vld [vmem:[%s10786_s1 + $0xad8] ss:$20 sps:$4 sm:$0xff]  }
 0x21e   :  { %v8210_v12 = vld [vmem:[%s10786_s1 + $0xd58] ss:$20 sps:$4 sm:$0xff]  }
 0x21f   :  { %6951 = vmatpush3.bf16.msra.mxu0 %v8153_v13  ;;  %6973 = vmatpush3.bf16.msra.mxu1 %v8154_v14  ;;  %v8211_v13 = vld [vmem:[%s10786_s1 + $0xc40] ss:$20 sps:$4 sm:$0xff]  }
 0x220   :  { %6980 = vmatprep.subr.bf16.mxu0 %v8155_v15  ;;  %7002 = vmatprep.subr.bf16.mxu1 %v8156_v19  ;;  %v8212_v14 = vld [vmem:[%s10786_s1 + $0xec0] ss:$20 sps:$4 sm:$0xff]  }
 0x221   :  { %v8213_v15 = vld [vmem:[%s10786_s1 + $0xb00] ss:$20 sps:$4 sm:$0xff]  }
 0x222   :  { %4985 = vmatmul.mubr.bf16.vlgmr.msra.gmra.mrb[4].mxu0 %v8607_v5  ;;  %5026 = vmatmul.mubr.bf16.vlgmr.msra.gmra.mrb[4].mxu1 %v8821_v11  ;;  %v8165_v5 = vld [vmem:[%s10786_s1 + $0x560] ss:$20 sps:$4 sm:$0xff]  }
 0x223   :  { %6981 = vmatpush3.bf16.msra.mxu0 %v8157_v20  ;;  %7003 = vmatpush3.bf16.msra.mxu1 %v8158_v22  ;;  %v8166_v11 = vld [vmem:[%s10786_s1 + $0x7e0] ss:$20 sps:$4 sm:$0xff]   ;;  %v8215_v20 = vld [vmem:[%s10786_s1 + $0xc68] ss:$20 sps:$4 sm:$0xff]  }
 0x224   :  { %6982 = vmatprep.subr.bf16.mxu0 %v8159_v23  ;;  %7004 = vmatprep.subr.bf16.mxu1 %v8160_v28  ;;  %v8214_v19 = vld [vmem:[%s10786_s1 + $0xd80] ss:$20 sps:$4 sm:$0xff]   ;;  %v8216_v22 = vld [vmem:[%s10786_s1 + $0xee8] ss:$20 sps:$4 sm:$0xff]  }
 0x225   :  { %5066 = vmatprep.mubr.bf16.mxu0 %v8847_v18  ;;  %5107 = vmatprep.mubr.bf16.mxu1 %v9061_v17  ;;  %v8168_v18 = vld [vmem:[%s10786_s1 + $0x948] ss:$20 sps:$4 sm:$0xff]  }
 0x226   :  { %v8169_v17 = vld [vmem:[%s10786_s1 + $0x588] ss:$20 sps:$4 sm:$0xff]  }
 0x227   :  { %6983 = vmatpush3.bf16.msra.mxu0 %v8161_v29  ;;  %7005 = vmatpush3.bf16.msra.mxu1 %v8162_v30  ;;  %v8217_v23 = vld [vmem:[%s10786_s1 + $0xb28] ss:$20 sps:$4 sm:$0xff]   ;;  %v8219_v29 = vld [vmem:[%s10786_s1 + $0x1050] ss:$20 sps:$4 sm:$0xff]  }
 0x228   :  { %6984 = vmatprep.subr.bf16.mxu0 %v8163_v3  ;;  %7006 = vmatprep.subr.bf16.mxu1 %v8164_v31  ;;  %v8218_v28 = vld [vmem:[%s10786_s1 + $0xda8] ss:$20 sps:$4 sm:$0xff]   ;;  %v8220_v30 = vld [vmem:[%s10786_s1 + $0x12d0] ss:$20 sps:$4 sm:$0xff]  }
 0x229   :  { %v8221_v3 = vld [vmem:[%s10786_s1 + $0xf10] ss:$20 sps:$4 sm:$0xff]  }
 0x22a   :  { %v8222_v31 = vld [vmem:[%s10786_s1 + $0x1190] ss:$20 sps:$4 sm:$0xff]  }
 0x22b   :  { %6985 = vmatpush3.bf16.msra.mxu0 %v8165_v5  ;;  %7007 = vmatpush3.bf16.msra.mxu1 %v8166_v11  ;;  %v8223_v5 = vld [vmem:[%s10786_s1 + $0x1078] ss:$20 sps:$4 sm:$0xff]  }
 0x22c   :  { %6986 = vmatprep.subr.bf16.mxu0 %v8167_v32  ;;  %7008 = vmatprep.subr.bf16.mxu1 %v8168_v18  ;;  %v8224_v11 = vld [vmem:[%s10786_s1 + $0x12f8] ss:$20 sps:$4 sm:$0xff]  }
 0x22d   :  { %v8225_v32 = vld [vmem:[%s10786_s1 + $0xf38] ss:$20 sps:$4 sm:$0xff]  }
 0x22e   :  { %v8226_v18 = vld [vmem:[%s10786_s1 + $0x11b8] ss:$20 sps:$4 sm:$0xff]  }
 0x22f   :  { %6987 = vmatpush3.bf16.msra.mxu0 %v8169_v17  ;;  %7009 = vmatpush3.bf16.msra.mxu1 %v8170_v37  ;;  %v8227_v17 = vld [vmem:[%s10786_s1 + $0x10a0] ss:$20 sps:$4 sm:$0xff]  }
 0x230   :  { %6988 = vmatprep.subr.bf16.mxu0 %v8171_v38  ;;  %7010 = vmatprep.subr.bf16.mxu1 %v8172_v25  ;;  %v8230_v37 = vld [vmem:[%s10786_s1 + $0x11e0] ss:$20 sps:$4 sm:$0xff]   ;;  %v8231_v38 = vld [vmem:[%s10786_s1 + $0x10c8] ss:$20 sps:$4 sm:$0xff]  }
 0x231   :  { %v8234_v25 = vld [vmem:[%s10786_s1 + $0x1208] ss:$20 sps:$4 sm:$0xff]  }
 0x233   :  { %6989 = vmatpush3.bf16.msra.mxu0 %v8173_v26  ;;  %7011 = vmatpush3.bf16.msra.mxu1 %v8174_v40  ;;  %v8235_v26 = vld [vmem:[%s10786_s1 + $0x10f0] ss:$20 sps:$4 sm:$0xff]  }
 0x234   :  { %6990 = vmatprep.subr.bf16.mxu0 %v8175_v41  ;;  %7012 = vmatprep.subr.bf16.mxu1 %v8176_v42  ;;  %v8236_v40 = vld [vmem:[%s10786_s1 + $0x1370] ss:$20 sps:$4 sm:$0xff]  }
 0x235   :  { %v8237_v41 = vld [vmem:[%s10786_s1 + $0xfb0] ss:$20 sps:$4 sm:$0xff]  }
 0x236   :  { %v8238_v42 = vld [vmem:[%s10786_s1 + $0x1230] ss:$20 sps:$4 sm:$0xff]  }
 0x237   :  { %6991 = vmatpush3.bf16.msra.mxu0 %v8177_v43  ;;  %7013 = vmatpush3.bf16.msra.mxu1 %v8178_v44  ;;  %v8239_v43 = vld [vmem:[%s10786_s1 + $0x1118] ss:$20 sps:$4 sm:$0xff]  }
 0x238   :  { %6992 = vmatprep.subr.bf16.mxu0 %v8179_v46  ;;  %7014 = vmatprep.subr.bf16.mxu1 %v8180_v51  ;;  %v8240_v44 = vld [vmem:[%s10786_s1 + $0x1398] ss:$20 sps:$4 sm:$0xff]  }
 0x239   :  { %v8241_v46 = vld [vmem:[%s10786_s1 + $0xfd8] ss:$20 sps:$4 sm:$0xff]  }
 0x23a   :  { %v8242_v51 = vld [vmem:[%s10786_s1 + $0x1258] ss:$20 sps:$4 sm:$0xff]  }
 0x23b   :  { %6993 = vmatpush3.bf16.msra.mxu0 %v8181_v52  ;;  %7015 = vmatpush3.bf16.msra.mxu1 %v8182_v21  ;;  %v8243_v52 = vld [vmem:[%s10786_s1 + $0x1140] ss:$20 sps:$4 sm:$0xff]  }
 0x23c   :  { %6994 = vmatprep.subr.bf16.mxu0 %v8183_v27  ;;  %7016 = vmatprep.subr.bf16.mxu1 %v8184_v53  ;;  %v8244_v21 = vld [vmem:[%s10786_s1 + $0x13c0] ss:$20 sps:$4 sm:$0xff]  }
 0x23d   :  { %v8245_v27 = vld [vmem:[%s10786_s1 + $0x1000] ss:$20 sps:$4 sm:$0xff]  }
 0x23e   :  { %v8246_v53 = vld [vmem:[%s10786_s1 + $0x1280] ss:$20 sps:$4 sm:$0xff]  }
 0x23f   :  { %6995 = vmatpush3.bf16.msra.mxu0 %v8185_v33  ;;  %7017 = vmatpush3.bf16.msra.mxu1 %v8186_v54  ;;  %v8247_v33 = vld [vmem:[%s10786_s1 + $0x1168] ss:$20 sps:$4 sm:$0xff]  }
 0x240   :  { %7024 = vmatprep.subr.bf16.mxu0 %v8187_v55  ;;  %7046 = vmatprep.subr.bf16.mxu1 %v8188_v56  ;;  %v8248_v54 = vld [vmem:[%s10786_s1 + $0x13e8] ss:$20 sps:$4 sm:$0xff]  }
 0x241   :  { %v8249_v55 = vld [vmem:[%s10786_s1 + $0x1028] ss:$20 sps:$4 sm:$0xff]  }
 0x242   :  { %5067 = vmatmul.mubr.bf16.vlgmr.msra.gmra.mrb[8].mxu0 %v9041_v24  ;;  %5108 = vmatmul.mubr.bf16.vlgmr.msra.gmra.mrb[8].mxu1 %v9254_v35  ;;  %v8196_v24 = vld [vmem:[%s10786_s1 + $0xe20] ss:$20 sps:$4 sm:$0xff]   ;;  %v8250_v56 = vld [vmem:[%s10786_s1 + $0x12a8] ss:$20 sps:$4 sm:$0xff]  }
 0x243   :  { %7025 = vmatpush3.bf16.msra.mxu0 %v8189_v57  ;;  %7047 = vmatpush3.bf16.msra.mxu1 %v8190_v58  ;;  %v8197_v35 = vld [vmem:[%s10786_s1 + $0xa60] ss:$20 sps:$4 sm:$0xff]  }
 0x244   :  { %7026 = vmatprep.subr.bf16.mxu0 %v8191_v50  ;;  %7048 = vmatprep.subr.bf16.mxu1 %v8192_v34  ;;  %v8251_v57 = vld [vmem:[%s10788_s3 + $0x40] sm:$0xff]  }
 0x245   :  { %5148 = vmatprep.mubr.bf16.mxu0 %v9275_v39  ;;  %5189 = vmatprep.mubr.bf16.mxu1 %v9489_v36  ;;  %v8200_v39 = vld [vmem:[%s10786_s1 + $0xe48] ss:$20 sps:$4 sm:$0xff]   ;;  %v8252_v58 = vld [vmem:[%s10788_s3 + $0xc0] sm:$0xff]  }
 0x246   :  { %v8201_v36 = vld [vmem:[%s10786_s1 + $0xa88] ss:$20 sps:$4 sm:$0xff]   ;;  %v8253_v50 = vld [vmem:[%s10788_s3] sm:$0xff]  }
 0x247   :  { %7027 = vmatpush3.bf16.msra.mxu0 %v8193_v59  ;;  %7049 = vmatpush3.bf16.msra.mxu1 %v8194_v60  ;;  %v8254_v34 = vld [vmem:[%s10788_s3 + $0x80] sm:$0xff]   ;;  %v8255_v59 = vld [vmem:[%s10788_s3 + $0x48] sm:$0xff]  }
 0x248   :  { %7028 = vmatprep.subr.bf16.mxu0 %v8195_v61  ;;  %7050 = vmatprep.subr.bf16.mxu1 %v8196_v24  ;;  %v8256_v60 = vld [vmem:[%s10788_s3 + $0xc8] sm:$0xff]  }
 0x249   :  { %v8257_v61 = vld [vmem:[%s10788_s3 + $0x8] sm:$0xff]  }
 0x24a   :  { %v8258_v24 = vld [vmem:[%s10788_s3 + $0x88] sm:$0xff]  }
 0x24b   :  { %7029 = vmatpush3.bf16.msra.mxu0 %v8197_v35  ;;  %7051 = vmatpush3.bf16.msra.mxu1 %v8198_v62  ;;  %v8259_v35 = vld [vmem:[%s10788_s3 + $0x50] sm:$0xff]  }
 0x24c   :  { %7030 = vmatprep.subr.bf16.mxu0 %v8199_v63  ;;  %7052 = vmatprep.subr.bf16.mxu1 %v8200_v39  ;;  %v8262_v62 = vld [vmem:[%s10788_s3 + $0x90] sm:$0xff]   ;;  %v8263_v63 = vld [vmem:[%s10788_s3 + $0x58] sm:$0xff]  }
 0x24d   :  { %v8264_v39 = vld [vmem:[%s10788_s3 + $0xd8] sm:$0xff]  }
 0x24f   :  { %7031 = vmatpush3.bf16.msra.mxu0 %v8201_v36  ;;  %7053 = vmatpush3.bf16.msra.mxu1 %v8202_v0  ;;  %v8265_v36 = vld [vmem:[%s10788_s3 + $0x18] sm:$0xff]  }
 0x250   :  { %7032 = vmatprep.subr.bf16.mxu0 %v8203_v4  ;;  %7054 = vmatprep.subr.bf16.mxu1 %v8204_v47  ;;  %v8266_v0 = vld [vmem:[%s10788_s3 + $0x98] sm:$0xff]   ;;  %v8267_v4 = vld [vmem:[%s10788_s3 + $0x60] sm:$0xff]  }
 0x251   :  { %v8268_v47 = vld [vmem:[%s10788_s3 + $0xe0] sm:$0xff]  }
 0x253   :  { %7033 = vmatpush3.bf16.msra.mxu0 %v8205_v48  ;;  %7055 = vmatpush3.bf16.msra.mxu1 %v8206_v7  ;;  %v8269_v48 = vld [vmem:[%s10788_s3 + $0x20] sm:$0xff]  }
 0x254   :  { %7034 = vmatprep.subr.bf16.mxu0 %v8207_v8  ;;  %7056 = vmatprep.subr.bf16.mxu1 %v8208_v9  ;;  %v8270_v7 = vld [vmem:[%s10788_s3 + $0xa0] sm:$0xff]   ;;  %v8271_v8 = vld [vmem:[%s10788_s3 + $0x68] sm:$0xff]  }
 0x255   :  { %v8272_v9 = vld [vmem:[%s10788_s3 + $0xe8] sm:$0xff]  }
 0x257   :  { %7035 = vmatpush3.bf16.msra.mxu0 %v8209_v10  ;;  %7057 = vmatpush3.bf16.msra.mxu1 %v8210_v12  ;;  %v8273_v10 = vld [vmem:[%s10788_s3 + $0x28] sm:$0xff]  }
 0x258   :  { %7036 = vmatprep.subr.bf16.mxu0 %v8211_v13  ;;  %7058 = vmatprep.subr.bf16.mxu1 %v8212_v14  ;;  %v8274_v12 = vld [vmem:[%s10788_s3 + $0xa8] sm:$0xff]   ;;  %v8275_v13 = vld [vmem:[%s10788_s3 + $0x70] sm:$0xff]  }
 0x259   :  { %v8276_v14 = vld [vmem:[%s10788_s3 + $0xf0] sm:$0xff]  }
 0x25b   :  { %7037 = vmatpush3.bf16.msra.mxu0 %v8213_v15  ;;  %7059 = vmatpush3.bf16.msra.mxu1 %v8214_v19  ;;  %v8277_v15 = vld [vmem:[%s10788_s3 + $0x30] sm:$0xff]  }
 0x25c   :  { %7038 = vmatprep.subr.bf16.mxu0 %v8215_v20  ;;  %7060 = vmatprep.subr.bf16.mxu1 %v8216_v22  ;;  %v8278_v19 = vld [vmem:[%s10788_s3 + $0xb0] sm:$0xff]   ;;  %v8279_v20 = vld [vmem:[%s10788_s3 + $0x78] sm:$0xff]  }
 0x25d   :  { %v8280_v22 = vld [vmem:[%s10788_s3 + $0xf8] sm:$0xff]  }
 0x25f   :  { %7039 = vmatpush3.bf16.msra.mxu0 %v8217_v23  ;;  %7061 = vmatpush3.bf16.msra.mxu1 %v8218_v28  ;;  %v8281_v23 = vld [vmem:[%s10788_s3 + $0x38] sm:$0xff]  }
 0x260   :  { %7068 = vmatprep.subr.bf16.mxu0 %v8219_v29  ;;  %7090 = vmatprep.subr.bf16.mxu1 %v8220_v30  ;;  %v8282_v28 = vld [vmem:[%s10788_s3 + $0xb8] sm:$0xff]   ;;  %v8327_v29 = vmov 0.0   ;;  %v831_v30 = vlaneseq }
 0x262   :  { %5149 = vmatmul.mubr.bf16.vlgmr.msra.gmra.mrb[12].mxu0 %v9473_v49  ;;  %5190 = vmatmul.mubr.bf16.vlgmr.msra.gmra.mrb[12].mxu1 %v9683_v1  ;;  %v8228_v49 = vld [vmem:[%s10786_s1 + $0x1320] ss:$20 sps:$4 sm:$0xff]  }
 0x263   :  { %7069 = vmatpush3.bf16.msra.mxu0 %v8221_v3  ;;  %7091 = vmatpush3.bf16.msra.mxu1 %v8222_v31  ;;  %v8229_v1 = vld [vmem:[%s10786_s1 + $0xf60] ss:$20 sps:$4 sm:$0xff]   ;;  %v10602_v3 = vshrl.u32 %v831_v30, 7 }
 0x264   :  { %7070 = vmatprep.subr.bf16.mxu0 %v8223_v5  ;;  %7092 = vmatprep.subr.bf16.mxu1 %v8224_v11  ;;  %v829_v11 = vld [vmem:[%s10789_s2] sm:$0x1f] }
 0x265   :  { %5230 = vmatprep.mubr.bf16.mxu0 %v9706_v6  ;;  %5271 = vmatprep.mubr.bf16.mxu1 %v9920_v2  ;;  %v8232_v6 = vld [vmem:[%s10786_s1 + $0x1348] ss:$20 sps:$4 sm:$0xff]   ;;  %v833_v31 = vsub.s32 0, %v10602_v3  ;;  %v841_v5 = vsub.s32 2, %v10602_v3 }
 0x266   :  { %v8233_v2 = vld [vmem:[%s10786_s1 + $0xf88] ss:$20 sps:$4 sm:$0xff]  }
 0x267   :  { %7071 = vmatpush3.bf16.msra.mxu0 %v8225_v32  ;;  %7093 = vmatpush3.bf16.msra.mxu1 %v8226_v18  ;;  %v837_v32 = vsub.s32 1, %v10602_v3  ;;  %v845_v18 = vsub.s32 3, %v10602_v3 }
 0x268   :  { %7072 = vmatprep.subr.bf16.mxu0 %v8227_v17  ;;  %7094 = vmatprep.subr.bf16.mxu1 %v8228_v49  ;;  %v834_v17 = vrot.slane %v829_v11, %v833_v31  ;;  %v842_v49 = vrot.slane %v829_v11, %v841_v5 }
 0x26b   :  { %7073 = vmatpush3.bf16.msra.mxu0 %v8229_v1  ;;  %7095 = vmatpush3.bf16.msra.mxu1 %v8230_v37  ;;  %v838_v1 = vrot.slane %v829_v11, %v837_v32  ;;  %v846_v37 = vrot.slane %v829_v11, %v845_v18 }
 0x26c   :  { %7074 = vmatprep.subr.bf16.mxu0 %v8231_v38  ;;  %7096 = vmatprep.subr.bf16.mxu1 %v8232_v6 }
 0x26f   :  { %7075 = vmatpush3.bf16.msra.mxu0 %v8233_v2  ;;  %7097 = vmatpush3.bf16.msra.mxu1 %v8234_v25 }
 0x270   :  { %7076 = vmatprep.subr.bf16.mxu0 %v8235_v26  ;;  %7098 = vmatprep.subr.bf16.mxu1 %v8236_v40 }
 0x273   :  { %7077 = vmatpush3.bf16.msra.mxu0 %v8237_v41  ;;  %7099 = vmatpush3.bf16.msra.mxu1 %v8238_v42 }
 0x274   :  { %7078 = vmatprep.subr.bf16.mxu0 %v8239_v43  ;;  %7100 = vmatprep.subr.bf16.mxu1 %v8240_v44 }
 0x277   :  { %7079 = vmatpush3.bf16.msra.mxu0 %v8241_v46  ;;  %7101 = vmatpush3.bf16.msra.mxu1 %v8242_v51 }
 0x278   :  { %7080 = vmatprep.subr.bf16.mxu0 %v8243_v52  ;;  %7102 = vmatprep.subr.bf16.mxu1 %v8244_v21 }
 0x27b   :  { %7081 = vmatpush3.bf16.msra.mxu0 %v8245_v27  ;;  %7103 = vmatpush3.bf16.msra.mxu1 %v8246_v53 }
 0x27c   :  { %7082 = vmatprep.subr.bf16.mxu0 %v8247_v33  ;;  %7104 = vmatprep.subr.bf16.mxu1 %v8248_v54 }
 0x27f   :  { %7083 = vmatpush3.bf16.msra.mxu0 %v8249_v55  ;;  %7105 = vmatpush3.bf16.msra.mxu1 %v8250_v56 }
 0x280   :  { %7112 = vmatprep.subr.bf16.mxu0 %v8251_v57  ;;  %7134 = vmatprep.subr.bf16.mxu1 %v8252_v58 }
 0x282   :  { %5231 = vmatmul.mubr.bf16.vlgmr.msra.gmra.mrb[16].mxu0 %v9907_v16  ;;  %5272 = vmatmul.mubr.bf16.vlgmr.msra.gmra.mrb[16].mxu1 %v10105_v45  ;;  %v8260_v16 = vld [vmem:[%s10788_s3 + $0xd0] sm:$0xff]  }
 0x283   :  { %7113 = vmatpush3.bf16.msra.mxu0 %v8253_v50  ;;  %7135 = vmatpush3.bf16.msra.mxu1 %v8254_v34  ;;  %v8261_v45 = vld [vmem:[%s10788_s3 + $0x10] sm:$0xff]  }
 0x284   :  { %7114 = vmatprep.subr.bf16.mxu0 %v8255_v59  ;;  %7136 = vmatprep.subr.bf16.mxu1 %v8256_v60 }
 0x287   :  { %7115 = vmatpush3.bf16.msra.mxu0 %v8257_v61  ;;  %7137 = vmatpush3.bf16.msra.mxu1 %v8258_v24 }
 0x288   :  { %7116 = vmatprep.subr.bf16.mxu0 %v8259_v35  ;;  %7138 = vmatprep.subr.bf16.mxu1 %v8260_v16  ;;  %v8283_v35 = vld [vmem:[%s10788_s3 + $0x100] sm:$0xff]   ;;  %v8284_v16 = vld [vmem:[%s10788_s3 + $0x108] sm:$0xff]  }
 0x28b   :  { %7117 = vmatpush3.bf16.msra.mxu0 %v8261_v45  ;;  %7139 = vmatpush3.bf16.msra.mxu1 %v8262_v62  ;;  %v8285_v45 = vld [vmem:[%s10788_s3 + $0x110] sm:$0xff]   ;;  %v8286_v62 = vld [vmem:[%s10788_s3 + $0x118] sm:$0xff]  }
 0x28c   :  { %7118 = vmatprep.subr.bf16.mxu0 %v8263_v63  ;;  %7140 = vmatprep.subr.bf16.mxu1 %v8264_v39  ;;  %v8287_v63 = vld [vmem:[%s10788_s3 + $0x120] sm:$0xff]   ;;  %v849_v39 = vsub.s32 4, %v10602_v3 }
 0x28f   :  { %7119 = vmatpush3.bf16.msra.mxu0 %v8265_v36  ;;  %7141 = vmatpush3.bf16.msra.mxu1 %v8266_v0  ;;  %v8288_v36 = vld [vmem:[%s10788_s3 + $0x128] sm:$0xff]  }
 0x290   :  { %7120 = vmatprep.subr.bf16.mxu0 %v8267_v4  ;;  %7142 = vmatprep.subr.bf16.mxu1 %v8268_v47  ;;  %v850_v47 = vrot.slane %v829_v11, %v849_v39 }
 0x293   :  { %7121 = vmatpush3.bf16.msra.mxu0 %v8269_v48  ;;  %7143 = vmatpush3.bf16.msra.mxu1 %v8270_v7  ;;  %v8289_v48 = vld [vmem:[%s10788_s3 + $0x130] sm:$0xff]  }
 0x294   :  { %7122 = vmatprep.subr.bf16.mxu0 %v8271_v8  ;;  %7144 = vmatprep.subr.bf16.mxu1 %v8272_v9 }
 0x297   :  { %7123 = vmatpush3.bf16.msra.mxu0 %v8273_v10  ;;  %7145 = vmatpush3.bf16.msra.mxu1 %v8274_v12 }
 0x298   :  { %7124 = vmatprep.subr.bf16.mxu0 %v8275_v13  ;;  %7146 = vmatprep.subr.bf16.mxu1 %v8276_v14 }
 0x29b   :  { %7125 = vmatpush3.bf16.msra.mxu0 %v8277_v15  ;;  %7147 = vmatpush3.bf16.msra.mxu1 %v8278_v19 }
 0x29c   :  { %7126 = vmatprep.subr.bf16.mxu0 %v8279_v20  ;;  %7148 = vmatprep.subr.bf16.mxu1 %v8280_v22 }
 0x29f   :  { %7127 = vmatpush3.bf16.msra.mxu0 %v8281_v23  ;;  %7149 = vmatpush3.bf16.msra.mxu1 %v8282_v28  ;;  %v8290_v23 = vld [vmem:[%s10788_s3 + $0x138] sm:$0xff]  }
 0x2a0   :  { %7197 = vmatprep.subr.bf16.mxu0 %v8327_v29  ;;  %7217 = vmatprep.subr.bf16.mxu1 %v8327_v29 }
 0x2d5   :  { %v4599_v38 = vpop.f32.mrb[0].mxu0  ;;  %v4943_v6 = vpop.f32.mrb[0].mxu1 }
 0x2d6   :  { %v7289_v2 = vadd.f32 %v4599_v38, %v834_v17  ;;  %v7293_v25 = vadd.f32 %v4943_v6, %v842_v49  ;;  %v4601_v26 = vpop.f32.mrb[1].mxu0  ;;  %v4945_v40 = vpop.f32.mrb[1].mxu1 }
 0x2d7   :  { %v7290_v41 = vadd.f32 %v4601_v26, %v838_v1  ;;  %v7294_v42 = vadd.f32 %v4945_v40, %v846_v37  ;;  %v4603_v43 = vpop.f32.mrb[2].mxu0  ;;  %v4947_v44 = vpop.f32.mrb[2].mxu1 }
 0x2d8   :  { %v7291_v46 = vadd.f32 %v4603_v43, %v834_v17  ;;  %v7295_v51 = vadd.f32 %v4947_v44, %v842_v49  ;;  %v4605_v52 = vpop.f32.mrb[3].mxu0  ;;  %v4949_v21 = vpop.f32.mrb[3].mxu1  ;;  %v5280_v33 = vmax.f32 %v7289_v2, 0.0  ;;  %v5282_v54 = vmax.f32 %v7293_v25, 0.0 }
 0x2d9   :  { %v7292_v27 = vadd.f32 %v4605_v52, %v838_v1  ;;  %v7296_v53 = vadd.f32 %v4949_v21, %v846_v37  ;;  %v5281_v57 = vmax.f32 %v7290_v41, 0.0  ;;  %v5283_v58 = vmax.f32 %v7294_v42, 0.0 }
 0x2da   :  { %v5285_v55 = vmax.f32 %v7291_v46, 0.0  ;;  %v5287_v56 = vmax.f32 %v7295_v51, 0.0 }
 0x2db   :  { %v5286_v50 = vmax.f32 %v7292_v27, 0.0  ;;  %v5288_v34 = vmax.f32 %v7296_v53, 0.0 }
 0x2dc   :  { %v5290_v59 = vpack.c.bf16 %v5285_v55, %v5280_v33  ;;  %v5292_v60 = vpack.c.bf16 %v5287_v56, %v5282_v54 }
 0x2dd   :  { %v5291_v61 = vpack.c.bf16 %v5286_v50, %v5281_v57  ;;  %v5293_v24 = vpack.c.bf16 %v5288_v34, %v5283_v58  ;;  %v8291_v58 = vld [vmem:[%s10790_s5] sm:$0xff]  }
 0x2df   :  { %5654 = vmatprep.mubr.bf16.mxu0 %v5291_v61  ;;  %5695 = vmatprep.mubr.bf16.mxu1 %v5293_v24 }
 0x2e0   :  { %5655 = vmatmul.mubr.bf16.vlgmr.msra.gmra.mrb[20].mxu0 %v5290_v59  ;;  %5696 = vmatmul.mubr.bf16.vlgmr.msra.gmra.mrb[20].mxu1 %v5292_v60  ;;  %v8292_v59 = vld [vmem:[%s10790_s5 + $0x8] sm:$0xff]  }
 0x2e1   :  { %7198 = vmatpush3.bf16.msra.mxu0 %v8283_v35  ;;  %7213 = vmatprep.mubr.msk.bf16.mxu0 %vm8328_vm0, %v8327_v29 }
 0x2e2   :  { %7199 = vmatprep.subr.bf16.mxu0 %v8327_v29  ;;  %7225 = vmatprep.mubr.msk.bf16.mxu1 %vm8328_vm0, %v8327_v29 }
 0x2e3   :  { %7218 = vmatpush3.bf16.msra.mxu1 %v8291_v58  ;;  %v8305_v58 = vld [vmem:[%s10793_s9 + $0x10] sm:$0xff]  }
 0x2e4   :  { %7219 = vmatprep.subr.bf16.mxu1 %v8327_v29 }
 0x2e5   :  { %7200 = vmatpush3.bf16.msra.mxu0 %v8284_v16 }
 0x2e6   :  { %7201 = vmatprep.subr.bf16.mxu0 %v8327_v29 }
 0x2e7   :  { %7220 = vmatpush3.bf16.msra.mxu1 %v8292_v59  ;;  %v8308_v59 = vld [vmem:[%s10793_s9 + $0x28] sm:$0xff]  }
 0x2e8   :  { %7221 = vmatprep.subr.bf16.mxu1 %v8327_v29 }
 0x2e9   :  { %7202 = vmatpush3.bf16.msra.mxu0 %v8285_v45 }
 0x2ea   :  { %7203 = vmatprep.subr.bf16.mxu0 %v8327_v29 }
 0x2ed   :  { %7204 = vmatpush3.bf16.msra.mxu0 %v8286_v62 }
 0x2ee   :  { %7205 = vmatprep.subr.bf16.mxu0 %v8327_v29 }
 0x2f1   :  { %7206 = vmatpush3.bf16.msra.mxu0 %v8287_v63 }
 0x2f2   :  { %7207 = vmatprep.subr.bf16.mxu0 %v8327_v29 }
 0x2f5   :  { %v6952_v0 = vpop.f32.mrb[4].mxu0  ;;  %v6974_v4 = vpop.f32.mrb[4].mxu1  ;;  %7208 = vmatpush3.bf16.msra.mxu0 %v8288_v36 }
 0x2f6   :  { %v6953_v7 = vpop.f32.mrb[5].mxu0  ;;  %v6975_v8 = vpop.f32.mrb[5].mxu1  ;;  %7209 = vmatprep.subr.bf16.mxu0 %v8327_v29 }
 0x2f7   :  { %v6954_v9 = vadd.f32 %v6953_v7, %v6952_v0  ;;  %v6976_v10 = vadd.f32 %v6975_v8, %v6974_v4  ;;  %v6955_v12 = vpop.f32.mrb[6].mxu0  ;;  %v6977_v13 = vpop.f32.mrb[6].mxu1 }
 0x2f8   :  { %v6956_v14 = vpop.f32.mrb[7].mxu0  ;;  %v6978_v15 = vpop.f32.mrb[7].mxu1 }
 0x2f9   :  { %v4987_v19 = vadd.f32 %v6954_v9, %v850_v47  ;;  %v6957_v20 = vadd.f32 %v6956_v14, %v6955_v12  ;;  %v6979_v22 = vadd.f32 %v6978_v15, %v6977_v13  ;;  %7210 = vmatpush3.bf16.msra.mxu0 %v8289_v48 }
 0x2fa   :  { %7211 = vmatprep.subr.bf16.mxu0 %v8327_v29 }
 0x2fb   :  { %v5028_v28 = vadd.f32 %v6976_v10, %v4987_v19  ;;  %v4990_v3 = vadd.f32 %v6957_v20, %v850_v47  ;;  %v6862_v19 = vld [vmem:[%s10791_s4] ss:$0 sm:$0xff] }
 0x2fd   :  { %v5031_v31 = vadd.f32 %v6979_v22, %v4990_v3  ;;  %7212 = vmatpush3.bf16.msra.mxu0 %v8290_v23 }
 0x2fe   :  { %7249 = vmatprep.subr.bf16.mxu0 %v8327_v29 }
 0x315   :  { %v6996_v5 = vpop.f32.mrb[8].mxu0  ;;  %v7018_v11 = vpop.f32.mrb[8].mxu1 }
 0x316   :  { %v6997_v32 = vpop.f32.mrb[9].mxu0  ;;  %v7019_v18 = vpop.f32.mrb[9].mxu1 }
 0x317   :  { %v6998_v17 = vadd.f32 %v6997_v32, %v6996_v5  ;;  %v7020_v49 = vadd.f32 %v7019_v18, %v7018_v11  ;;  %v6999_v1 = vpop.f32.mrb[10].mxu0  ;;  %v7021_v37 = vpop.f32.mrb[10].mxu1  ;;  %v8293_v32 = vld [vmem:[%s10790_s5 + $0x10] sm:$0xff]  }
 0x318   :  { %v7000_v38 = vpop.f32.mrb[11].mxu0  ;;  %v7022_v6 = vpop.f32.mrb[11].mxu1  ;;  %7222 = vmatpush3.bf16.msra.mxu1 %v8293_v32 }
 0x319   :  { %v5069_v2 = vadd.f32 %v6998_v17, %v5028_v28  ;;  %v7001_v25 = vadd.f32 %v7000_v38, %v6999_v1  ;;  %v7023_v26 = vadd.f32 %v7022_v6, %v7021_v37  ;;  %7223 = vmatprep.subr.bf16.mxu1 %v8327_v29  ;;  %v8294_v38 = vld [vmem:[%s10790_s5 + $0x18] sm:$0xff]  }
 0x31b   :  { %v5110_v40 = vadd.f32 %v7020_v49, %v5069_v2  ;;  %v5072_v41 = vadd.f32 %v7001_v25, %v5031_v31 }
 0x31c   :  { %7224 = vmatpush3.bf16.msra.mxu1 %v8294_v38 }
 0x31d   :  { %v5113_v42 = vadd.f32 %v7023_v26, %v5072_v41  ;;  %7229 = vmatprep.subr.bf16.mxu1 %v8327_v29 }
 0x335   :  { %v7040_v43 = vpop.f32.mrb[12].mxu0  ;;  %v7062_v44 = vpop.f32.mrb[12].mxu1 }
 0x336   :  { %v7041_v46 = vpop.f32.mrb[13].mxu0  ;;  %v7063_v51 = vpop.f32.mrb[13].mxu1 }
 0x337   :  { %v7042_v52 = vadd.f32 %v7041_v46, %v7040_v43  ;;  %v7064_v21 = vadd.f32 %v7063_v51, %v7062_v44  ;;  %v7043_v27 = vpop.f32.mrb[14].mxu0  ;;  %v7065_v53 = vpop.f32.mrb[14].mxu1  ;;  %v8295_v46 = vld [vmem:[%s10792_s7] sm:$0xff]  }
 0x338   :  { %v7044_v33 = vpop.f32.mrb[15].mxu0  ;;  %v7066_v54 = vpop.f32.mrb[15].mxu1 }
 0x339   :  { %v5151_v55 = vadd.f32 %v7042_v52, %v5110_v40  ;;  %v7045_v56 = vadd.f32 %v7044_v33, %v7043_v27  ;;  %v7067_v57 = vadd.f32 %v7066_v54, %v7065_v53  ;;  %v8296_v52 = vld [vmem:[%s10792_s7 + $0x8] sm:$0xff]   ;;  %v8298_v27 = vld [vmem:[%s10792_s7 + $0x18] sm:$0xff]   ;;  %v8299_v53 = vld [vmem:[%s10792_s7 + $0x20] sm:$0xff]  }
 0x33a   :  { %v8300_v33 = vld [vmem:[%s10792_s7 + $0x28] sm:$0xff]   ;;  %v8301_v54 = vld [vmem:[%s10792_s7 + $0x30] sm:$0xff]  }
 0x33b   :  { %v5192_v50 = vadd.f32 %v7064_v21, %v5151_v55  ;;  %v5154_v34 = vadd.f32 %v7045_v56, %v5113_v42  ;;  %v8297_v21 = vld [vmem:[%s10792_s7 + $0x10] sm:$0xff]   ;;  %v8302_v55 = vld [vmem:[%s10792_s7 + $0x38] sm:$0xff]   ;;  %v8303_v56 = vld [vmem:[%s10793_s9] sm:$0xff]  }
 0x33d   :  { %v5195_v60 = vadd.f32 %v7067_v57, %v5154_v34  ;;  %v8304_v57 = vld [vmem:[%s10793_s9 + $0x8] sm:$0xff]   ;;  %v8307_v34 = vld [vmem:[%s10793_s9 + $0x20] sm:$0xff]  }
 0x355   :  { %v7084_v61 = vpop.f32.mrb[16].mxu0  ;;  %v7106_v24 = vpop.f32.mrb[16].mxu1 }
 0x356   :  { %v7085_v35 = vpop.f32.mrb[17].mxu0  ;;  %v7107_v16 = vpop.f32.mrb[17].mxu1 }
 0x357   :  { %v7086_v45 = vadd.f32 %v7085_v35, %v7084_v61  ;;  %v7108_v62 = vadd.f32 %v7107_v16, %v7106_v24  ;;  %v7087_v63 = vpop.f32.mrb[18].mxu0  ;;  %v7109_v39 = vpop.f32.mrb[18].mxu1 }
 0x358   :  { %v7088_v36 = vpop.f32.mrb[19].mxu0  ;;  %v7110_v0 = vpop.f32.mrb[19].mxu1 }
 0x359   :  { %v5233_v4 = vadd.f32 %v7086_v45, %v5192_v50  ;;  %v7089_v47 = vadd.f32 %v7088_v36, %v7087_v63  ;;  %v7111_v48 = vadd.f32 %v7110_v0, %v7109_v39  ;;  %v8306_v50 = vld [vmem:[%s10793_s9 + $0x18] sm:$0xff]   ;;  %v8309_v0 = vld [vmem:[%s10793_s9 + $0x30] sm:$0xff]  }
 0x35b   :  { %v5274_v7 = vadd.f32 %v7108_v62, %v5233_v4  ;;  %v5236_v8 = vadd.f32 %v7089_v47, %v5195_v60  ;;  %v6903_v60 = vld [vmem:[%s10794_s6] ss:$0 sm:$0xff]  ;;  %v8310_v4 = vld [vmem:[%s10793_s9 + $0x38] sm:$0xff]  }
 0x35c   :  { %v8311_v47 = vld [vmem:[%s10795_s11] sm:$0xff]  }
 0x35d   :  { %v5277_v9 = vadd.f32 %v7111_v48, %v5236_v8  ;;  %v5284_v10 = vmax.f32 %v5274_v7, 0.0  ;;  %v8312_v48 = vld [vmem:[%s10795_s11 + $0x8] sm:$0xff]   ;;  %v8313_v7 = vld [vmem:[%s10795_s11 + $0x10] sm:$0xff]   ;;  %v8314_v8 = vld [vmem:[%s10795_s11 + $0x18] sm:$0xff]  }
 0x35f   :  { %v5289_v12 = vmax.f32 %v5277_v9, 0.0  ;;  %v8315_v9 = vld [vmem:[%s10795_s11 + $0x20] sm:$0xff]  }
 0x361   :  { %v5294_v13 = vpack.c.bf16 %v5289_v12, %v5284_v10  ;;  %v8316_v10 = vld [vmem:[%s10795_s11 + $0x28] sm:$0xff]   ;;  %v6909_v12 = vld [vmem:[%s10796_s8] ss:$0 sm:$0xff] }
 0x363   :  { %7214 = vmatmul.mubr.bf16.vlgmr.msra.gmra.mrb[24].mxu0 %v5294_v13 }
 0x364   :  { %7265 = vmatprep.mubr.msk.bf16.mxu0 %vm8328_vm0, %v8327_v29  ;;  %7250 = vmatpush3.bf16.msra.mxu0 %v8303_v56 }
 0x365   :  { %7251 = vmatprep.subr.bf16.mxu0 %v8327_v29 }
 0x368   :  { %7252 = vmatpush3.bf16.msra.mxu0 %v8304_v57 }
 0x369   :  { %7253 = vmatprep.subr.bf16.mxu0 %v8327_v29 }
 0x36c   :  { %7254 = vmatpush3.bf16.msra.mxu0 %v8305_v58 }
 0x36d   :  { %7255 = vmatprep.subr.bf16.mxu0 %v8327_v29 }
 0x370   :  { %7256 = vmatpush3.bf16.msra.mxu0 %v8306_v50 }
 0x371   :  { %7257 = vmatprep.subr.bf16.mxu0 %v8327_v29 }
 0x374   :  { %7258 = vmatpush3.bf16.msra.mxu0 %v8307_v34 }
 0x375   :  { %7259 = vmatprep.subr.bf16.mxu0 %v8327_v29 }
 0x378   :  { %7260 = vmatpush3.bf16.msra.mxu0 %v8308_v59 }
 0x379   :  { %7261 = vmatprep.subr.bf16.mxu0 %v8327_v29 }
 0x37c   :  { %7262 = vmatpush3.bf16.msra.mxu0 %v8309_v0 }
 0x37d   :  { %7263 = vmatprep.subr.bf16.mxu0 %v8327_v29 }
 0x380   :  { %7264 = vmatpush3.bf16.msra.mxu0 %v8310_v4 }
 0x3b3   :  { %v7128_v14 = vpop.f32.mrb[20].mxu0  ;;  %v7150_v15 = vpop.f32.mrb[20].mxu1 }
 0x3b4   :  { %v7129_v20 = vpop.f32.mrb[21].mxu0  ;;  %v7151_v22 = vpop.f32.mrb[21].mxu1 }
 0x3b5   :  { %v7130_v23 = vadd.f32 %v7129_v20, %v7128_v14  ;;  %v7152_v28 = vadd.f32 %v7151_v22, %v7150_v15  ;;  %v7131_v3 = vpop.f32.mrb[22].mxu0  ;;  %v7153_v31 = vpop.f32.mrb[22].mxu1 }
 0x3b6   :  { %v7132_v5 = vpop.f32.mrb[23].mxu0  ;;  %v7154_v11 = vpop.f32.mrb[23].mxu1 }
 0x3b7   :  { %v5657_v18 = vadd.f32 %v7130_v23, %v6862_v19  ;;  %v7133_v17 = vadd.f32 %v7132_v5, %v7131_v3  ;;  %v7155_v49 = vadd.f32 %v7154_v11, %v7153_v31  ;;  %v8317_v31 = vld [vmem:[%s10795_s11 + $0x30] sm:$0xff]   ;;  %v8318_v5 = vld [vmem:[%s10795_s11 + $0x38] sm:$0xff]   ;;  %v6918_v11 = vld [vmem:[%s10797_s10] ss:$0 sm:$0xff] }
 0x3b9   :  { %v5660_v1 = vadd.f32 %v7133_v17, %v6862_v19  ;;  %v5698_v37 = vadd.f32 %v7152_v28, %v5657_v18 }
 0x3bb   :  { %v5701_v6 = vadd.f32 %v7155_v49, %v5660_v1 }
 0x436   :  { %v5738_v2 = vpop.f32.mrb[24].mxu0 }
 0x437   :  { %v5739_v25 = vadd.f32 %v5738_v2, %v5698_v37  ;;  %v7215_v26 = vpop.f32.mrb[25].mxu0 }
 0x438   :  { %v5741_v40 = vpop.f32.mrb[26].mxu0 }
 0x439   :  { %v5742_v41 = vadd.f32 %v5741_v40, %v5701_v6  ;;  %v7216_v42 = vpop.f32.mrb[27].mxu0  ;;  %v5745_v43 = vmax.f32 %v5739_v25, 0.0  ;;  %v6927_v25 = vld [vmem:[%s10798_s12] ss:$0 sm:$0xff] }
 0x43b   :  { %v5746_v44 = vmax.f32 %v5742_v41, 0.0 }
 0x43d   :  { %v5747_v51 = vpack.c.bf16 %v5746_v44, %v5745_v43 }
 0x43f   :  { %7226 = vmatmul.mubr.msk.bf16.vlgmr.msra.gmra.mrb[24].mxu1 %vm5787_vm1, %v5747_v51 }
 0x440   :  { %7230 = vmatpush3.bf16.msra.mxu1 %v8295_v46  ;;  %7245 = vmatprep.mubr.msk.bf16.mxu1 %vm8328_vm0, %v8327_v29 }
 0x441   :  { %7231 = vmatprep.subr.bf16.mxu1 %v8327_v29 }
 0x444   :  { %7232 = vmatpush3.bf16.msra.mxu1 %v8296_v52 }
 0x445   :  { %7233 = vmatprep.subr.bf16.mxu1 %v8327_v29 }
 0x448   :  { %7234 = vmatpush3.bf16.msra.mxu1 %v8297_v21 }
 0x449   :  { %7235 = vmatprep.subr.bf16.mxu1 %v8327_v29 }
 0x44c   :  { %7236 = vmatpush3.bf16.msra.mxu1 %v8298_v27 }
 0x44d   :  { %7237 = vmatprep.subr.bf16.mxu1 %v8327_v29 }
 0x450   :  { %7238 = vmatpush3.bf16.msra.mxu1 %v8299_v53 }
 0x451   :  { %7239 = vmatprep.subr.bf16.mxu1 %v8327_v29 }
 0x454   :  { %7240 = vmatpush3.bf16.msra.mxu1 %v8300_v33 }
 0x455   :  { %7241 = vmatprep.subr.bf16.mxu1 %v8327_v29 }
 0x458   :  { %7242 = vmatpush3.bf16.msra.mxu1 %v8301_v54 }
 0x459   :  { %7243 = vmatprep.subr.bf16.mxu1 %v8327_v29 }
 0x45c   :  { %7244 = vmatpush3.bf16.msra.mxu1 %v8302_v55 }
 0x45d   :  { %7269 = vmatprep.subr.bf16.mxu1 %v8327_v29 }
 0x512   :  { %v5825_v61 = vpop.f32.mrb[24].mxu1 }
 0x513   :  { %v5826_v24 = vadd.f32 %v6903_v60, %v5825_v61  ;;  %v7227_v35 = vpop.f32.mrb[25].mxu1 }
 0x514   :  { %v5828_v16 = vpop.f32.mrb[26].mxu1 }
 0x515   :  { %v5829_v45 = vadd.f32 %v6903_v60, %v5828_v16  ;;  %v7228_v62 = vpop.f32.mrb[27].mxu1  ;;  %v5832_v63 = vmax.f32 %v5826_v24, 0.0 }
 0x517   :  { %v5833_v39 = vmax.f32 %v5829_v45, 0.0 }
 0x519   :  { %v5834_v36 = vpack.c.bf16 %v5833_v39, %v5832_v63 }
 0x51b   :  { %7246 = vmatmul.mubr.bf16.vlgmr.msra.gmra.mrb[28].mxu1 %v5834_v36 }
 0x51c   :  { %7285 = vmatprep.mubr.msk.bf16.mxu1 %vm8328_vm0, %v8327_v29  ;;  %7270 = vmatpush3.bf16.msra.mxu1 %v8311_v47 }
 0x51d   :  { %7271 = vmatprep.subr.bf16.mxu1 %v8327_v29 }
 0x520   :  { %7272 = vmatpush3.bf16.msra.mxu1 %v8312_v48 }
 0x521   :  { %7273 = vmatprep.subr.bf16.mxu1 %v8327_v29 }
 0x524   :  { %7274 = vmatpush3.bf16.msra.mxu1 %v8313_v7 }
 0x525   :  { %7275 = vmatprep.subr.bf16.mxu1 %v8327_v29 }
 0x528   :  { %7276 = vmatpush3.bf16.msra.mxu1 %v8314_v8 }
 0x529   :  { %7277 = vmatprep.subr.bf16.mxu1 %v8327_v29 }
 0x52c   :  { %7278 = vmatpush3.bf16.msra.mxu1 %v8315_v9 }
 0x52d   :  { %7279 = vmatprep.subr.bf16.mxu1 %v8327_v29 }
 0x530   :  { %7280 = vmatpush3.bf16.msra.mxu1 %v8316_v10 }
 0x531   :  { %7281 = vmatprep.subr.bf16.mxu1 %v8327_v29 }
 0x534   :  { %7282 = vmatpush3.bf16.msra.mxu1 %v8317_v31 }
 0x535   :  { %7283 = vmatprep.subr.bf16.mxu1 %v8327_v29  ;;  %v6178_v29 = vand.u32 127, %v831_v30 }
 0x537   :  { %vm6179_vm2 = vcmp.lt.s32.totalorder %v6178_v29, 6 }
 0x538   :  { %7284 = vmatpush3.bf16.msra.mxu1 %v8318_v5 }
 0x5ee   :  { %v5940_v13 = vpop.f32.mrb[28].mxu1 }
 0x5ef   :  { %v5941_v14 = vadd.f32 %v6909_v12, %v5940_v13  ;;  %v7247_v15 = vpop.f32.mrb[29].mxu1 }
 0x5f0   :  { %v5943_v19 = vpop.f32.mrb[30].mxu1 }
 0x5f1   :  { %v5944_v20 = vadd.f32 %v6909_v12, %v5943_v19  ;;  %v7248_v22 = vpop.f32.mrb[31].mxu1  ;;  %v5947_v23 = vmax.f32 %v5941_v14, 0.0 }
 0x5f3   :  { %v5948_v28 = vmax.f32 %v5944_v20, 0.0 }
 0x5f5   :  { %v5949_v3 = vpack.c.bf16 %v5948_v28, %v5947_v23 }
 0x5f7   :  { %7266 = vmatmul.mubr.bf16.vlgmr.msra.gmra.mrb[28].mxu0 %v5949_v3 }
 0x6ca   :  { %v6055_v32 = vpop.f32.mrb[28].mxu0 }
 0x6cb   :  { %v6056_v18 = vadd.f32 %v6918_v11, %v6055_v32  ;;  %v7267_v17 = vpop.f32.mrb[29].mxu0 }
 0x6cc   :  { %v6058_v49 = vpop.f32.mrb[30].mxu0 }
 0x6cd   :  { %v6059_v1 = vadd.f32 %v6918_v11, %v6058_v49  ;;  %v7268_v37 = vpop.f32.mrb[31].mxu0  ;;  %v6062_v38 = vmax.f32 %v6056_v18, 0.0 }
 0x6cf   :  { %v6063_v6 = vmax.f32 %v6059_v1, 0.0 }
 0x6d1   :  { %v6064_v2 = vpack.c.bf16 %v6063_v6, %v6062_v38 }
 0x6d3   :  { %7286 = vmatmul.mubr.bf16.vlgmr.msra.gmra.mrb[32].mxu1 %v6064_v2 }
 0x7a6   :  { %v6170_v26 = vpop.f32.mrb[32].mxu1 }
 0x7a7   :  { %v6171_v40 = vadd.f32 %v6927_v25, %v6170_v26  ;;  %v7287_v41 = vpop.f32.mrb[33].mxu1 }
 0x7a8   :  { %v6173_v42 = vpop.f32.mrb[34].mxu1 }
 0x7a9   :  { %v6174_v43 = vadd.f32 %v6927_v25, %v6173_v42  ;;  %v7288_v44 = vpop.f32.mrb[35].mxu1  ;;  %v6180_v46 = vsel %vm6179_vm2, %v6171_v40, -1e+30 }
 0x7aa   :  { %6182 = vmax.xlane.f32.xlu0 %v6180_v46 }
 0x7ab   :  { %v6181_v51 = vsel %vm6179_vm2, %v6174_v43, -1e+30 }
 0x7ae   :  { %6184 = vmax.xlane.f32.xlu0 %v6181_v51 }
 0x837   :  { %v6183_v52 = vpop.xlane.xlu0 %6182 }
 0x838   :  { %v6186_v21 = vsub.f32 %v6180_v46, %v6183_v52 }
 0x83a   :  { %v6188_v27 = vmul.f32 1.442695, %v6186_v21 }
 0x83b   :  { %v6185_v53 = vpop.xlane.xlu0 %6184 }
 0x83c   :  { %8319 = vpow2.f32 %v6188_v27  ;;  %v6187_v30 = vsub.f32 %v6181_v51, %v6185_v53 }
 0x83e   :  { %v6190_v33 = vmul.f32 1.442695, %v6187_v30 }
 0x840   :  { %8321 = vpow2.f32 %v6190_v33 }
 0x846   :  { %v8320_v54 = vpop.eup %8319 }
 0x847   :  { %6192 = vadd.xlane.f32.xlu1 %v8320_v54 }
 0x84a   :  { %v8322_v55 = vpop.eup %8321 }
 0x84b   :  { %6194 = vadd.xlane.f32.xlu1 %v8322_v55 }
 0x8d4   :  { %v6193_v56 = vpop.xlane.xlu1 %6192 }
 0x8d5   :  { %8323 = vrcp.f32 %v6193_v56 }
 0x8d8   :  { %v6195_v57 = vpop.xlane.xlu1 %6194 }
 0x8d9   :  { %8325 = vrcp.f32 %v6195_v57 }
 0x8df   :  { %v8324_v58 = vpop.eup %8323 }
 0x8e0   :  { %v6197_v50 = vmul.f32 %v8324_v58, %v8320_v54 }
 0x8e2   :  { %6200 = vst [vmem:[%s10799_s13] sm:$0xff] %v6197_v50 }
 0x8e3   :  { %v8326_v34 = vpop.eup %8325 }
 0x8e4   :  { %v6199_v59 = vmul.f32 %v8326_v34, %v8322_v55 }
 0x8e6   :  { %6201 = vst [vmem:[%s10799_s13 + $0x8] sm:$0xff] %v6199_v59 }

</bundles_post_ra>
